<compile_context>
chip_gen: v7x
topology: tpu7x:2x2x1
jax: 0.10.0
libtpu: 0.0.40
codegen_flags: <defaults>
</compile_context>

<pallas_src>
import functools
import math

import jax
import jax.numpy as jnp
from jax import lax
from jax.experimental import pallas as pl
from jax.experimental.pallas import tpu as pltpu


def _silu(x):
    return x * jax.nn.sigmoid(x)


def _softplus(x):
    # matches torch.nn.functional.softplus(threshold=20)
    return jnp.where(x > 20.0, x, jnp.log1p(jnp.exp(jnp.minimum(x, 20.0))))


# --------------------------------------------------------------------------
# Fused kernel: all layers + final RMSNorm, whole (flattened) batch in one
# block.  Rows are L-major: row = l*B + b.
# --------------------------------------------------------------------------
def mamba_net_kernel(
    x_ref,          # (L*B, D) f32
    w_in_ref,       # (nlayers, D, 2*d_inner) bf16, RMSNorm weight folded in
    convw_ref,      # (nlayers, d_conv, d_inner) f32
    convb_ref,      # (nlayers, 1, d_inner) f32
    w_dbc_ref,      # (nlayers, d_inner, >=d_inner+2*d_state) bf16
                    #   cols [:d_inner]=W_delta, next d_state=W_B, next=W_C, rest 0-pad
    dtb_ref,        # (nlayers, 1, d_inner) f32
    a_ref,          # (nlayers, 8, n_half*d_inner) f32, A=-exp(A_log) packed
                    #   A_p[s%8, (s//8)*d_inner + d] = A[s, d]
    dpar_ref,       # (nlayers, 1, d_inner) f32
    w_out_ref,      # (nlayers, d_inner, D) bf16
    normf_ref,      # (1, D) f32
    out_ref,        # (L*B, D) f32
    *, eps, d_conv, nlayers, B, L, d_state, d_inner,
):
    BL = B * L
    n_half = d_state // 8                      # state halves packed along lanes
    lanes = n_half * d_inner                   # packed lane width (=128 for defaults)

    h = x_ref[...]                             # (BL, D)
    res = jnp.zeros_like(h)

    # Causal-conv pad masks (layer-invariant, hoisted): in L-major layout the
    # rows that would read across the t<0 boundary are exactly row < shift*B.
    row_idx = lax.broadcasted_iota(jnp.int32, (BL, d_inner), 0)
    pad_masks = [row_idx < (shift * B) for shift in range(1, d_conv)]

    def pack_states(v):
        # (BL, d_state) -> (BL, 8, lanes): state s -> sublane s%8, lane half s//8,
        # each value splat across the d_inner lanes of its half.
        parts = [jnp.broadcast_to(v[:, i * 8:(i + 1) * 8][:, :, None],
                                  (BL, 8, d_inner)) for i in range(n_half)]
        return parts[0] if n_half == 1 else jnp.concatenate(parts, axis=-1)

    def tile_halves(v):
        # (BL, d_inner) -> (BL, lanes): same d_inner vector repeated per half.
        return v if n_half == 1 else jnp.concatenate([v] * n_half, axis=-1)

    for layer in range(nlayers):
        # ---- residual add + RMSNorm (weight pre-folded into W_in) ----
        res = h + res
        var = jnp.mean(res * res, axis=-1, keepdims=True)
        xn = res * lax.rsqrt(var + eps)                        # (BL, D) f32

        # ---- in_proj: one bf16 matmul, split x / z ----
        xz = jnp.dot(xn.astype(jnp.bfloat16), w_in_ref[layer],
                     preferred_element_type=jnp.float32)       # (BL, 2*d_inner) f32
        xc = xz[:, :d_inner]
        z = xz[:, d_inner:]

        # ---- causal depthwise conv1d (+bias) + SiLU ----
        cw = convw_ref[layer]                                  # (d_conv, d_inner) f32
        acc = xc * cw[d_conv - 1:d_conv, :]
        for k in range(d_conv - 1):
            shift = d_conv - 1 - k
            xs = pltpu.roll(xc, shift * B, axis=0)             # L-major: stride B
            xs = jnp.where(pad_masks[shift - 1], 0.0, xs)
            acc = acc + xs * cw[k:k + 1, :]
        u = _silu(acc + convb_ref[layer])                      # (BL, d_inner) f32

        # ---- fused delta / B / C projection: single lane-dense bf16 matmul ----
        dbc = jnp.dot(u.astype(jnp.bfloat16), w_dbc_ref[layer],
                      preferred_element_type=jnp.float32)      # (BL, >=96) f32
        delta = _softplus(dbc[:, :d_inner] + dtb_ref[layer])   # (BL, d_inner)

        # ---- build (8, lanes)-packed scan operands once per layer (hoisted) ----
        A_p = a_ref[layer]                                     # (8, lanes)
        delta2 = tile_halves(delta)                            # (BL, lanes)
        du2 = tile_halves(delta * u)                           # (BL, lanes)
        dA = jnp.exp(delta2[:, None, :] * A_p[None])           # (BL, 8, lanes)
        Bp = pack_states(dbc[:, d_inner:d_inner + d_state])
        Cp = pack_states(dbc[:, d_inner + d_state:d_inner + 2 * d_state])
        dBu = Bp * du2[:, None, :]                             # (BL, 8, lanes)

        dA = dA.reshape(L, B, 8, lanes)
        dBu = dBu.reshape(L, B, 8, lanes)
        Cp = Cp.reshape(L, B, 8, lanes)

        # ---- selective scan: state = one full (8, lanes) vreg per sequence ----
        state = jnp.zeros((B, 8, lanes), jnp.float32)
        ys = []
        for l in range(L):                                     # static unroll (L small)
            state = dA[l] * state + dBu[l]                     # (B, 8, lanes)
            s = jnp.sum(state * Cp[l], axis=1)                 # (B, lanes) sublane reduce
            yl = s[:, :d_inner]
            for i in range(1, n_half):                         # add lane halves
                yl = yl + s[:, i * d_inner:(i + 1) * d_inner]
            ys.append(yl)                                      # (B, d_inner)
        y = jnp.concatenate(ys, axis=0)                        # (BL, d_inner), L-major

        y = (y + u * dpar_ref[layer]) * _silu(z)

        # ---- out_proj (bf16 matmul, f32 accumulate) ----
        h = jnp.dot(y.astype(jnp.bfloat16), w_out_ref[layer],
                    preferred_element_type=jnp.float32)        # (BL, D)

    # ---- final add + RMSNorm ----
    res = h + res
    var = jnp.mean(res * res, axis=-1, keepdims=True)
    out_ref[...] = res * lax.rsqrt(var + eps) * normf_ref[...]


# --------------------------------------------------------------------------
# Wrapper: whole network in a single pallas_call; batch flattened L-major.
# --------------------------------------------------------------------------
def mamba_net_forward(x, packed, norm_f_w, *, eps, d_conv, d_state, d_inner):
    B, L, D = x.shape
    nlayers = packed["w_in"].shape[0]
    assert d_state % 8 == 0, "packed scan layout assumes d_state % 8 == 0"
    # L-major flatten: row = l*B + b (per-step scan rows are contiguous)
    x2 = jnp.transpose(x, (1, 0, 2)).reshape(L * B, D)

    def fullspec(a):
        nd = a.ndim
        return pl.BlockSpec(a.shape, lambda i, nd=nd: (0,) * nd)

    weights = [packed["w_in"], packed["conv_w"], packed["conv_b"],
               packed["w_dbc"], packed["dt_b"], packed["A"],
               packed["D"], packed["w_out"], norm_f_w]

    kern = functools.partial(
        mamba_net_kernel, eps=eps, d_conv=d_conv, nlayers=nlayers,
        B=B, L=L, d_state=d_state, d_inner=d_inner)

    out = pl.pallas_call(
        kern,
        out_shape=jax.ShapeDtypeStruct((L * B, D), jnp.float32),
        grid=(1,),
        in_specs=[fullspec(x2)] + [fullspec(w) for w in weights],
        out_specs=pl.BlockSpec((L * B, D), lambda i: (0, 0)),
        compiler_params=pltpu.CompilerParams(
            dimension_semantics=("arbitrary",)),
    )(x2, *weights)
    return out.reshape(L, B, D).transpose(1, 0, 2)
    # TODO(synk): inference_params (incremental decoding cache) and
    # return_activations dict are host-side features, not implemented.


# --------------------------------------------------------------------------
# Deterministic parameter init (shapes follow mamba_ssm / torch layout),
# then host-side packing:
#   * RMSNorm weight folded into W_in,
#   * dt_proj folded into x_proj (exact), delta/B/C weights fused into one
#     lane-dense (d_inner, 128) matrix,
#   * A = -exp(A_log) precomputed and repacked to (8, n_half*d_inner),
#   * matmul weights cast to bf16; everything stacked on a layer axis.
# --------------------------------------------------------------------------
def init_raw_params(key, nlayers, D, d_inner, d_state, d_conv, dt_rank):
    def rn(k, shape, scale):
        return jax.random.normal(k, shape, jnp.float32) * scale

    layers = []
    for _ in range(nlayers):
        key, *ks = jax.random.split(key, 9)
        w_in = rn(ks[0], (2 * d_inner, D), 0.05)                 # in_proj.weight
        conv_w = rn(ks[1], (d_inner, d_conv), 0.2)               # conv1d.weight[:,0,:]
        conv_b = rn(ks[2], (d_inner,), 0.05)                     # conv1d.bias
        x_proj_w = rn(ks[3], (dt_rank + 2 * d_state, d_inner), 0.05)
        dt_w = rn(ks[4], (d_inner, dt_rank), 0.2)                # dt_proj.weight
        dt_b = rn(ks[5], (d_inner,), 0.1) + 0.5                  # dt_proj.bias
        out_w = rn(ks[6], (D, d_inner), 0.05)                    # out_proj.weight
        A = jnp.tile(jnp.arange(1, d_state + 1, dtype=jnp.float32)[None, :],
                     (d_inner, 1))
        A_log = jnp.log(A)                                       # (d_inner, d_state)
        Dp = jnp.ones((d_inner,), jnp.float32)
        norm_w = jnp.ones((D,), jnp.float32)
        layers.append(dict(w_in=w_in, conv_w=conv_w, conv_b=conv_b,
                           x_proj_w=x_proj_w, dt_w=dt_w, dt_b=dt_b,
                           out_w=out_w, A_log=A_log, D=Dp, norm_w=norm_w))
    norm_f_w = jnp.ones((1, D), jnp.float32)
    return layers, norm_f_w


def pack_params(layers_raw, D, d_inner, d_state, dt_rank):
    n_half = d_state // 8
    width = d_inner + 2 * d_state
    pad_cols = (-width) % 128                                    # lane-dense pad

    def stack(fn):
        return jnp.stack([fn(p) for p in layers_raw], axis=0)

    def w_in_fold(p):                                            # RMSNorm weight fold
        return (p["norm_w"][:, None] * p["w_in"].T).astype(jnp.bfloat16)

    def w_dbc(p):                                                # fused delta|B|C|pad
        w_delta = p["x_proj_w"][:dt_rank].T @ p["dt_w"].T        # (d_inner, d_inner)
        w_b = p["x_proj_w"][dt_rank:dt_rank + d_state].T         # (d_inner, d_state)
        w_c = p["x_proj_w"][dt_rank + d_state:].T                # (d_inner, d_state)
        pad = jnp.zeros((d_inner, pad_cols), jnp.float32)
        return jnp.concatenate([w_delta, w_b, w_c, pad],
                               axis=1).astype(jnp.bfloat16)

    def a_pack(p):                                               # (8, n_half*d_inner)
        a_t = (-jnp.exp(p["A_log"])).T                           # (d_state, d_inner)
        return a_t.reshape(n_half, 8, d_inner).transpose(1, 0, 2).reshape(
            8, n_half * d_inner)

    return dict(
        w_in=stack(w_in_fold),                                   # bf16 (D, 2*d_inner)
        conv_w=stack(lambda p: p["conv_w"].T),                   # f32 (d_conv, d_inner)
        conv_b=stack(lambda p: p["conv_b"].reshape(1, d_inner)),
        w_dbc=stack(w_dbc),                                      # bf16 (d_inner, 128)
        dt_b=stack(lambda p: p["dt_b"].reshape(1, d_inner)),
        A=stack(a_pack),                                         # f32 packed
        D=stack(lambda p: p["D"].reshape(1, d_inner)),
        w_out=stack(lambda p: p["out_w"].T.astype(jnp.bfloat16)),  # bf16 (d_inner, D)
    )


if __name__ == "__main__":
    B, L, D = 2, 8, 32
    d_state, d_conv, expand = 16, 4, 2
    d_inner = expand * D
    dt_rank = math.ceil(D / 16)
    nlayers = 2
    eps = 1e-5

    key = jax.random.PRNGKey(0)
    kx, kp = jax.random.split(key)
    x = jax.random.normal(kx, (B, L, D), jnp.float32)
    raw, norm_f_w = init_raw_params(kp, nlayers, D, d_inner, d_state,
                                    d_conv, dt_rank)
    packed = pack_params(raw, D, d_inner, d_state, dt_rank)

    out = mamba_net_forward(x, packed, norm_f_w, eps=eps, d_conv=d_conv,
                            d_state=d_state, d_inner=d_inner)
    jax.block_until_ready(out)
    assert out.shape == (B, L, D) and out.dtype == jnp.float32
    print("KERNEL_OK")
</pallas_src>

<mosaic_0001>
module attributes {stable_mosaic.version = 11 : i64} {
  func.func @mamba_net_kernel(%arg0: i32, %arg1: memref<16x32xf32, #tpu.memory_space<vmem>>, %arg2: memref<2x32x128xbf16, #tpu.memory_space<vmem>>, %arg3: memref<2x4x64xf32, #tpu.memory_space<vmem>>, %arg4: memref<2x1x64xf32, #tpu.memory_space<vmem>>, %arg5: memref<2x64x128xbf16, #tpu.memory_space<vmem>>, %arg6: memref<2x1x64xf32, #tpu.memory_space<vmem>>, %arg7: memref<2x8x128xf32, #tpu.memory_space<vmem>>, %arg8: memref<2x1x64xf32, #tpu.memory_space<vmem>>, %arg9: memref<2x64x32xbf16, #tpu.memory_space<vmem>>, %arg10: memref<1x32xf32, #tpu.memory_space<vmem>>, %arg11: memref<16x32xf32, #tpu.memory_space<vmem>>) attributes {dimension_semantics = [#tpu.dimension_semantics<arbitrary>], iteration_bounds = array<i64: 1>, scalar_prefetch = 0 : i64, scratch_operands = 0 : i64, tpu.core_type = #tpu.core_type<tc>, window_params = [{pipeline_mode = #tpu.pipeline_mode<synchronous>, transform_indices = @transform_0, window_bounds = array<i64: 16, 32>}, {pipeline_mode = #tpu.pipeline_mode<synchronous>, transform_indices = @transform_1, window_bounds = array<i64: 2, 32, 128>}, {pipeline_mode = #tpu.pipeline_mode<synchronous>, transform_indices = @transform_2, window_bounds = array<i64: 2, 4, 64>}, {pipeline_mode = #tpu.pipeline_mode<synchronous>, transform_indices = @transform_3, window_bounds = array<i64: 2, 1, 64>}, {pipeline_mode = #tpu.pipeline_mode<synchronous>, transform_indices = @transform_4, window_bounds = array<i64: 2, 64, 128>}, {pipeline_mode = #tpu.pipeline_mode<synchronous>, transform_indices = @transform_5, window_bounds = array<i64: 2, 1, 64>}, {pipeline_mode = #tpu.pipeline_mode<synchronous>, transform_indices = @transform_6, window_bounds = array<i64: 2, 8, 128>}, {pipeline_mode = #tpu.pipeline_mode<synchronous>, transform_indices = @transform_7, window_bounds = array<i64: 2, 1, 64>}, {pipeline_mode = #tpu.pipeline_mode<synchronous>, transform_indices = @transform_8, window_bounds = array<i64: 2, 64, 32>}, {pipeline_mode = #tpu.pipeline_mode<synchronous>, transform_indices = @transform_9, window_bounds = array<i64: 1, 32>}, {pipeline_mode = #tpu.pipeline_mode<synchronous>, transform_indices = @transform_10, window_bounds = array<i64: 16, 32>}]} {
    %c0 = arith.constant 0 : index
    %c0_0 = arith.constant 0 : index
    %0 = vector.load %arg1[%c0, %c0_0] : memref<16x32xf32, #tpu.memory_space<vmem>>, vector<16x32xf32>
    %cst = arith.constant 0.000000e+00 : f32
    %1 = vector.broadcast %cst : f32 to vector<16x32xf32>
    %2 = tpu.iota {dimensions = array<i32: 0>} : vector<16x64xi32>
    %c2_i32 = arith.constant 2 : i32
    %3 = vector.broadcast %c2_i32 : i32 to vector<16x64xi32>
    %4 = arith.cmpi slt, %2, %3 : vector<16x64xi32>
    %c4_i32 = arith.constant 4 : i32
    %5 = vector.broadcast %c4_i32 : i32 to vector<16x64xi32>
    %6 = arith.cmpi slt, %2, %5 : vector<16x64xi32>
    %c6_i32 = arith.constant 6 : i32
    %7 = vector.broadcast %c6_i32 : i32 to vector<16x64xi32>
    %8 = arith.cmpi slt, %2, %7 : vector<16x64xi32>
    %9 = arith.addf %0, %1 : vector<16x32xf32>
    %10 = arith.mulf %9, %9 : vector<16x32xf32>
    %cst_1 = arith.constant dense<0.000000e+00> : vector<16xf32>
    %11 = vector.multi_reduction <add>, %10, %cst_1 [1] : vector<16x32xf32> to vector<16xf32>
    %12 = vector.shape_cast %11 : vector<16xf32> to vector<16x1xf32>
    %cst_2 = arith.constant 3.200000e+01 : f32
    %13 = vector.broadcast %cst_2 : f32 to vector<16x1xf32>
    %14 = arith.divf %12, %13 : vector<16x1xf32>
    %cst_3 = arith.constant 9.99999974E-6 : f32
    %15 = vector.broadcast %cst_3 : f32 to vector<16x1xf32>
    %16 = arith.addf %14, %15 : vector<16x1xf32>
    %17 = math.rsqrt %16 : vector<16x1xf32>
    %18 = vector.broadcast %17 : vector<16x1xf32> to vector<16x32xf32>
    %19 = arith.mulf %9, %18 : vector<16x32xf32>
    %20 = arith.truncf %19 : vector<16x32xf32> to vector<16x32xbf16>
    %c0_4 = arith.constant 0 : index
    %c0_5 = arith.constant 0 : index
    %c0_6 = arith.constant 0 : index
    %21 = vector.load %arg2[%c0_4, %c0_5, %c0_6] : memref<2x32x128xbf16, #tpu.memory_space<vmem>>, vector<1x32x128xbf16>
    %22 = vector.shape_cast %21 : vector<1x32x128xbf16> to vector<32x128xbf16>
    %cst_7 = arith.constant dense<0.000000e+00> : vector<16x128xf32>
    %23 = tpu.matmul %20, %22, %cst_7 {dimension_numbers = #tpu.dot_dimension_numbers<[1], [0], [0], [1], [0, 0, 1, 1], [], []>} : vector<16x32xbf16>, vector<32x128xbf16>, vector<16x128xf32> -> vector<16x128xf32>
    %24 = vector.extract_strided_slice %23 {offsets = [0, 0], sizes = [16, 64], strides = [1, 1]} : vector<16x128xf32> to vector<16x64xf32>
    %25 = vector.extract_strided_slice %23 {offsets = [0, 64], sizes = [16, 64], strides = [1, 1]} : vector<16x128xf32> to vector<16x64xf32>
    %c0_8 = arith.constant 0 : index
    %c0_9 = arith.constant 0 : index
    %c0_10 = arith.constant 0 : index
    %26 = vector.load %arg3[%c0_8, %c0_9, %c0_10] : memref<2x4x64xf32, #tpu.memory_space<vmem>>, vector<1x4x64xf32>
    %27 = vector.shape_cast %26 : vector<1x4x64xf32> to vector<4x64xf32>
    %28 = vector.extract_strided_slice %27 {offsets = [3, 0], sizes = [1, 64], strides = [1, 1]} : vector<4x64xf32> to vector<1x64xf32>
    %29 = vector.broadcast %28 : vector<1x64xf32> to vector<16x64xf32>
    %30 = arith.mulf %24, %29 : vector<16x64xf32>
    %c6_i32_11 = arith.constant 6 : i32
    %31 = tpu.dynamic_rotate %24 by %c6_i32_11 dim 0 : vector<16x64xf32>, i32 -> vector<16x64xf32>
    %cst_12 = arith.constant 0.000000e+00 : f32
    %32 = vector.broadcast %cst_12 : f32 to vector<16x64xf32>
    %33 = arith.select %8, %32, %31 : vector<16x64xi1>, vector<16x64xf32>
    %34 = vector.extract_strided_slice %27 {offsets = [0, 0], sizes = [1, 64], strides = [1, 1]} : vector<4x64xf32> to vector<1x64xf32>
    %35 = vector.broadcast %34 : vector<1x64xf32> to vector<16x64xf32>
    %36 = arith.mulf %33, %35 : vector<16x64xf32>
    %37 = arith.addf %30, %36 : vector<16x64xf32>
    %c4_i32_13 = arith.constant 4 : i32
    %38 = tpu.dynamic_rotate %24 by %c4_i32_13 dim 0 : vector<16x64xf32>, i32 -> vector<16x64xf32>
    %cst_14 = arith.constant 0.000000e+00 : f32
    %39 = vector.broadcast %cst_14 : f32 to vector<16x64xf32>
    %40 = arith.select %6, %39, %38 : vector<16x64xi1>, vector<16x64xf32>
    %41 = vector.extract_strided_slice %27 {offsets = [1, 0], sizes = [1, 64], strides = [1, 1]} : vector<4x64xf32> to vector<1x64xf32>
    %42 = vector.broadcast %41 : vector<1x64xf32> to vector<16x64xf32>
    %43 = arith.mulf %40, %42 : vector<16x64xf32>
    %44 = arith.addf %37, %43 : vector<16x64xf32>
    %c2_i32_15 = arith.constant 2 : i32
    %45 = tpu.dynamic_rotate %24 by %c2_i32_15 dim 0 : vector<16x64xf32>, i32 -> vector<16x64xf32>
    %cst_16 = arith.constant 0.000000e+00 : f32
    %46 = vector.broadcast %cst_16 : f32 to vector<16x64xf32>
    %47 = arith.select %4, %46, %45 : vector<16x64xi1>, vector<16x64xf32>
    %48 = vector.extract_strided_slice %27 {offsets = [2, 0], sizes = [1, 64], strides = [1, 1]} : vector<4x64xf32> to vector<1x64xf32>
    %49 = vector.broadcast %48 : vector<1x64xf32> to vector<16x64xf32>
    %50 = arith.mulf %47, %49 : vector<16x64xf32>
    %51 = arith.addf %44, %50 : vector<16x64xf32>
    %c0_17 = arith.constant 0 : index
    %c0_18 = arith.constant 0 : index
    %c0_19 = arith.constant 0 : index
    %52 = vector.load %arg4[%c0_17, %c0_18, %c0_19] : memref<2x1x64xf32, #tpu.memory_space<vmem>>, vector<1x1x64xf32>
    %53 = vector.shape_cast %52 : vector<1x1x64xf32> to vector<1x64xf32>
    %54 = vector.broadcast %53 : vector<1x64xf32> to vector<16x64xf32>
    %55 = arith.addf %51, %54 : vector<16x64xf32>
    %56 = arith.negf %55 : vector<16x64xf32>
    %57 = math.exp %56 : vector<16x64xf32>
    %cst_20 = arith.constant 1.000000e+00 : f32
    %58 = vector.broadcast %cst_20 : f32 to vector<16x64xf32>
    %59 = arith.addf %58, %57 : vector<16x64xf32>
    %60 = arith.divf %58, %59 : vector<16x64xf32>
    %61 = arith.mulf %55, %60 : vector<16x64xf32>
    %62 = arith.truncf %61 : vector<16x64xf32> to vector<16x64xbf16>
    %c0_21 = arith.constant 0 : index
    %c0_22 = arith.constant 0 : index
    %c0_23 = arith.constant 0 : index
    %63 = vector.load %arg5[%c0_21, %c0_22, %c0_23] : memref<2x64x128xbf16, #tpu.memory_space<vmem>>, vector<1x64x128xbf16>
    %64 = vector.shape_cast %63 : vector<1x64x128xbf16> to vector<64x128xbf16>
    %cst_24 = arith.constant dense<0.000000e+00> : vector<16x128xf32>
    %65 = tpu.matmul %62, %64, %cst_24 {dimension_numbers = #tpu.dot_dimension_numbers<[1], [0], [0], [1], [0, 0, 1, 1], [], []>} : vector<16x64xbf16>, vector<64x128xbf16>, vector<16x128xf32> -> vector<16x128xf32>
    %66 = vector.extract_strided_slice %65 {offsets = [0, 0], sizes = [16, 64], strides = [1, 1]} : vector<16x128xf32> to vector<16x64xf32>
    %c0_25 = arith.constant 0 : index
    %c0_26 = arith.constant 0 : index
    %c0_27 = arith.constant 0 : index
    %67 = vector.load %arg6[%c0_25, %c0_26, %c0_27] : memref<2x1x64xf32, #tpu.memory_space<vmem>>, vector<1x1x64xf32>
    %68 = vector.shape_cast %67 : vector<1x1x64xf32> to vector<1x64xf32>
    %69 = vector.broadcast %68 : vector<1x64xf32> to vector<16x64xf32>
    %70 = arith.addf %66, %69 : vector<16x64xf32>
    %cst_28 = arith.constant 2.000000e+01 : f32
    %71 = vector.broadcast %cst_28 : f32 to vector<16x64xf32>
    %72 = arith.cmpf ogt, %70, %71 : vector<16x64xf32>
    %cst_29 = arith.constant 2.000000e+01 : f32
    %73 = vector.broadcast %cst_29 : f32 to vector<16x64xf32>
    %74 = arith.minimumf %70, %73 : vector<16x64xf32>
    %75 = math.exp %74 : vector<16x64xf32>
    %76 = math.log1p %75 : vector<16x64xf32>
    %77 = arith.select %72, %70, %76 : vector<16x64xi1>, vector<16x64xf32>
    %c0_30 = arith.constant 0 : index
    %c0_31 = arith.constant 0 : index
    %c0_32 = arith.constant 0 : index
    %78 = vector.load %arg7[%c0_30, %c0_31, %c0_32] : memref<2x8x128xf32, #tpu.memory_space<vmem>>, vector<1x8x128xf32>
    %79 = vector.shape_cast %78 : vector<1x8x128xf32> to vector<8x128xf32>
    %80 = tpu.concatenate %77, %77 in 1 : vector<16x64xf32>, vector<16x64xf32> -> vector<16x128xf32>
    %81 = arith.mulf %77, %61 : vector<16x64xf32>
    %82 = tpu.concatenate %81, %81 in 1 : vector<16x64xf32>, vector<16x64xf32> -> vector<16x128xf32>
    %83 = vector.shape_cast %80 : vector<16x128xf32> to vector<16x1x128xf32>
    %84 = vector.shape_cast %79 : vector<8x128xf32> to vector<1x8x128xf32>
    %85 = vector.broadcast %83 : vector<16x1x128xf32> to vector<16x8x128xf32>
    %86 = vector.broadcast %84 : vector<1x8x128xf32> to vector<16x8x128xf32>
    %87 = arith.mulf %85, %86 : vector<16x8x128xf32>
    %88 = math.exp %87 : vector<16x8x128xf32>
    %89 = vector.extract_strided_slice %65 {offsets = [0, 64], sizes = [16, 16], strides = [1, 1]} : vector<16x128xf32> to vector<16x16xf32>
    %90 = vector.extract_strided_slice %89 {offsets = [0, 0], sizes = [16, 8], strides = [1, 1]} : vector<16x16xf32> to vector<16x8xf32>
    %91 = vector.shape_cast %90 : vector<16x8xf32> to vector<16x8x1xf32>
    %92 = vector.shape_cast %91 : vector<16x8x1xf32> to vector<16x8x1xf32>
    %93 = vector.broadcast %92 : vector<16x8x1xf32> to vector<16x8x64xf32>
    %94 = vector.extract_strided_slice %89 {offsets = [0, 8], sizes = [16, 8], strides = [1, 1]} : vector<16x16xf32> to vector<16x8xf32>
    %95 = vector.shape_cast %94 : vector<16x8xf32> to vector<16x8x1xf32>
    %96 = vector.shape_cast %95 : vector<16x8x1xf32> to vector<16x8x1xf32>
    %97 = vector.broadcast %96 : vector<16x8x1xf32> to vector<16x8x64xf32>
    %98 = tpu.concatenate %93, %97 in 2 : vector<16x8x64xf32>, vector<16x8x64xf32> -> vector<16x8x128xf32>
    %99 = vector.extract_strided_slice %65 {offsets = [0, 80], sizes = [16, 16], strides = [1, 1]} : vector<16x128xf32> to vector<16x16xf32>
    %100 = vector.extract_strided_slice %99 {offsets = [0, 0], sizes = [16, 8], strides = [1, 1]} : vector<16x16xf32> to vector<16x8xf32>
    %101 = vector.shape_cast %100 : vector<16x8xf32> to vector<16x8x1xf32>
    %102 = vector.shape_cast %101 : vector<16x8x1xf32> to vector<16x8x1xf32>
    %103 = vector.broadcast %102 : vector<16x8x1xf32> to vector<16x8x64xf32>
    %104 = vector.extract_strided_slice %99 {offsets = [0, 8], sizes = [16, 8], strides = [1, 1]} : vector<16x16xf32> to vector<16x8xf32>
    %105 = vector.shape_cast %104 : vector<16x8xf32> to vector<16x8x1xf32>
    %106 = vector.shape_cast %105 : vector<16x8x1xf32> to vector<16x8x1xf32>
    %107 = vector.broadcast %106 : vector<16x8x1xf32> to vector<16x8x64xf32>
    %108 = tpu.concatenate %103, %107 in 2 : vector<16x8x64xf32>, vector<16x8x64xf32> -> vector<16x8x128xf32>
    %109 = vector.shape_cast %82 : vector<16x128xf32> to vector<16x1x128xf32>
    %110 = vector.broadcast %109 : vector<16x1x128xf32> to vector<16x8x128xf32>
    %111 = arith.mulf %98, %110 : vector<16x8x128xf32>
    %112 = vector.shape_cast %88 : vector<16x8x128xf32> to vector<8x2x8x128xf32>
    %113 = vector.shape_cast %111 : vector<16x8x128xf32> to vector<8x2x8x128xf32>
    %114 = vector.shape_cast %108 : vector<16x8x128xf32> to vector<8x2x8x128xf32>
    %cst_33 = arith.constant 0.000000e+00 : f32
    %115 = vector.broadcast %cst_33 : f32 to vector<2x8x128xf32>
    %116 = vector.extract_strided_slice %112 {offsets = [0, 0, 0, 0], sizes = [1, 2, 8, 128], strides = [1, 1, 1, 1]} : vector<8x2x8x128xf32> to vector<1x2x8x128xf32>
    %117 = vector.shape_cast %116 : vector<1x2x8x128xf32> to vector<2x8x128xf32>
    %118 = arith.mulf %117, %115 : vector<2x8x128xf32>
    %119 = vector.extract_strided_slice %113 {offsets = [0, 0, 0, 0], sizes = [1, 2, 8, 128], strides = [1, 1, 1, 1]} : vector<8x2x8x128xf32> to vector<1x2x8x128xf32>
    %120 = vector.shape_cast %119 : vector<1x2x8x128xf32> to vector<2x8x128xf32>
    %121 = arith.addf %118, %120 : vector<2x8x128xf32>
    %122 = vector.extract_strided_slice %114 {offsets = [0, 0, 0, 0], sizes = [1, 2, 8, 128], strides = [1, 1, 1, 1]} : vector<8x2x8x128xf32> to vector<1x2x8x128xf32>
    %123 = vector.shape_cast %122 : vector<1x2x8x128xf32> to vector<2x8x128xf32>
    %124 = arith.mulf %121, %123 : vector<2x8x128xf32>
    %cst_34 = arith.constant dense<0.000000e+00> : vector<2x128xf32>
    %125 = vector.multi_reduction <add>, %124, %cst_34 [1] : vector<2x8x128xf32> to vector<2x128xf32>
    %126 = vector.extract_strided_slice %125 {offsets = [0, 0], sizes = [2, 64], strides = [1, 1]} : vector<2x128xf32> to vector<2x64xf32>
    %127 = vector.extract_strided_slice %125 {offsets = [0, 64], sizes = [2, 64], strides = [1, 1]} : vector<2x128xf32> to vector<2x64xf32>
    %128 = arith.addf %126, %127 : vector<2x64xf32>
    %129 = vector.extract_strided_slice %112 {offsets = [1, 0, 0, 0], sizes = [1, 2, 8, 128], strides = [1, 1, 1, 1]} : vector<8x2x8x128xf32> to vector<1x2x8x128xf32>
    %130 = vector.shape_cast %129 : vector<1x2x8x128xf32> to vector<2x8x128xf32>
    %131 = arith.mulf %130, %121 : vector<2x8x128xf32>
    %132 = vector.extract_strided_slice %113 {offsets = [1, 0, 0, 0], sizes = [1, 2, 8, 128], strides = [1, 1, 1, 1]} : vector<8x2x8x128xf32> to vector<1x2x8x128xf32>
    %133 = vector.shape_cast %132 : vector<1x2x8x128xf32> to vector<2x8x128xf32>
    %134 = arith.addf %131, %133 : vector<2x8x128xf32>
    %135 = vector.extract_strided_slice %114 {offsets = [1, 0, 0, 0], sizes = [1, 2, 8, 128], strides = [1, 1, 1, 1]} : vector<8x2x8x128xf32> to vector<1x2x8x128xf32>
    %136 = vector.shape_cast %135 : vector<1x2x8x128xf32> to vector<2x8x128xf32>
    %137 = arith.mulf %134, %136 : vector<2x8x128xf32>
    %cst_35 = arith.constant dense<0.000000e+00> : vector<2x128xf32>
    %138 = vector.multi_reduction <add>, %137, %cst_35 [1] : vector<2x8x128xf32> to vector<2x128xf32>
    %139 = vector.extract_strided_slice %138 {offsets = [0, 0], sizes = [2, 64], strides = [1, 1]} : vector<2x128xf32> to vector<2x64xf32>
    %140 = vector.extract_strided_slice %138 {offsets = [0, 64], sizes = [2, 64], strides = [1, 1]} : vector<2x128xf32> to vector<2x64xf32>
    %141 = arith.addf %139, %140 : vector<2x64xf32>
    %142 = vector.extract_strided_slice %112 {offsets = [2, 0, 0, 0], sizes = [1, 2, 8, 128], strides = [1, 1, 1, 1]} : vector<8x2x8x128xf32> to vector<1x2x8x128xf32>
    %143 = vector.shape_cast %142 : vector<1x2x8x128xf32> to vector<2x8x128xf32>
    %144 = arith.mulf %143, %134 : vector<2x8x128xf32>
    %145 = vector.extract_strided_slice %113 {offsets = [2, 0, 0, 0], sizes = [1, 2, 8, 128], strides = [1, 1, 1, 1]} : vector<8x2x8x128xf32> to vector<1x2x8x128xf32>
    %146 = vector.shape_cast %145 : vector<1x2x8x128xf32> to vector<2x8x128xf32>
    %147 = arith.addf %144, %146 : vector<2x8x128xf32>
    %148 = vector.extract_strided_slice %114 {offsets = [2, 0, 0, 0], sizes = [1, 2, 8, 128], strides = [1, 1, 1, 1]} : vector<8x2x8x128xf32> to vector<1x2x8x128xf32>
    %149 = vector.shape_cast %148 : vector<1x2x8x128xf32> to vector<2x8x128xf32>
    %150 = arith.mulf %147, %149 : vector<2x8x128xf32>
    %cst_36 = arith.constant dense<0.000000e+00> : vector<2x128xf32>
    %151 = vector.multi_reduction <add>, %150, %cst_36 [1] : vector<2x8x128xf32> to vector<2x128xf32>
    %152 = vector.extract_strided_slice %151 {offsets = [0, 0], sizes = [2, 64], strides = [1, 1]} : vector<2x128xf32> to vector<2x64xf32>
    %153 = vector.extract_strided_slice %151 {offsets = [0, 64], sizes = [2, 64], strides = [1, 1]} : vector<2x128xf32> to vector<2x64xf32>
    %154 = arith.addf %152, %153 : vector<2x64xf32>
    %155 = vector.extract_strided_slice %112 {offsets = [3, 0, 0, 0], sizes = [1, 2, 8, 128], strides = [1, 1, 1, 1]} : vector<8x2x8x128xf32> to vector<1x2x8x128xf32>
    %156 = vector.shape_cast %155 : vector<1x2x8x128xf32> to vector<2x8x128xf32>
    %157 = arith.mulf %156, %147 : vector<2x8x128xf32>
    %158 = vector.extract_strided_slice %113 {offsets = [3, 0, 0, 0], sizes = [1, 2, 8, 128], strides = [1, 1, 1, 1]} : vector<8x2x8x128xf32> to vector<1x2x8x128xf32>
    %159 = vector.shape_cast %158 : vector<1x2x8x128xf32> to vector<2x8x128xf32>
    %160 = arith.addf %157, %159 : vector<2x8x128xf32>
    %161 = vector.extract_strided_slice %114 {offsets = [3, 0, 0, 0], sizes = [1, 2, 8, 128], strides = [1, 1, 1, 1]} : vector<8x2x8x128xf32> to vector<1x2x8x128xf32>
    %162 = vector.shape_cast %161 : vector<1x2x8x128xf32> to vector<2x8x128xf32>
    %163 = arith.mulf %160, %162 : vector<2x8x128xf32>
    %cst_37 = arith.constant dense<0.000000e+00> : vector<2x128xf32>
    %164 = vector.multi_reduction <add>, %163, %cst_37 [1] : vector<2x8x128xf32> to vector<2x128xf32>
    %165 = vector.extract_strided_slice %164 {offsets = [0, 0], sizes = [2, 64], strides = [1, 1]} : vector<2x128xf32> to vector<2x64xf32>
    %166 = vector.extract_strided_slice %164 {offsets = [0, 64], sizes = [2, 64], strides = [1, 1]} : vector<2x128xf32> to vector<2x64xf32>
    %167 = arith.addf %165, %166 : vector<2x64xf32>
    %168 = vector.extract_strided_slice %112 {offsets = [4, 0, 0, 0], sizes = [1, 2, 8, 128], strides = [1, 1, 1, 1]} : vector<8x2x8x128xf32> to vector<1x2x8x128xf32>
    %169 = vector.shape_cast %168 : vector<1x2x8x128xf32> to vector<2x8x128xf32>
    %170 = arith.mulf %169, %160 : vector<2x8x128xf32>
    %171 = vector.extract_strided_slice %113 {offsets = [4, 0, 0, 0], sizes = [1, 2, 8, 128], strides = [1, 1, 1, 1]} : vector<8x2x8x128xf32> to vector<1x2x8x128xf32>
    %172 = vector.shape_cast %171 : vector<1x2x8x128xf32> to vector<2x8x128xf32>
    %173 = arith.addf %170, %172 : vector<2x8x128xf32>
    %174 = vector.extract_strided_slice %114 {offsets = [4, 0, 0, 0], sizes = [1, 2, 8, 128], strides = [1, 1, 1, 1]} : vector<8x2x8x128xf32> to vector<1x2x8x128xf32>
    %175 = vector.shape_cast %174 : vector<1x2x8x128xf32> to vector<2x8x128xf32>
    %176 = arith.mulf %173, %175 : vector<2x8x128xf32>
    %cst_38 = arith.constant dense<0.000000e+00> : vector<2x128xf32>
    %177 = vector.multi_reduction <add>, %176, %cst_38 [1] : vector<2x8x128xf32> to vector<2x128xf32>
    %178 = vector.extract_strided_slice %177 {offsets = [0, 0], sizes = [2, 64], strides = [1, 1]} : vector<2x128xf32> to vector<2x64xf32>
    %179 = vector.extract_strided_slice %177 {offsets = [0, 64], sizes = [2, 64], strides = [1, 1]} : vector<2x128xf32> to vector<2x64xf32>
    %180 = arith.addf %178, %179 : vector<2x64xf32>
    %181 = vector.extract_strided_slice %112 {offsets = [5, 0, 0, 0], sizes = [1, 2, 8, 128], strides = [1, 1, 1, 1]} : vector<8x2x8x128xf32> to vector<1x2x8x128xf32>
    %182 = vector.shape_cast %181 : vector<1x2x8x128xf32> to vector<2x8x128xf32>
    %183 = arith.mulf %182, %173 : vector<2x8x128xf32>
    %184 = vector.extract_strided_slice %113 {offsets = [5, 0, 0, 0], sizes = [1, 2, 8, 128], strides = [1, 1, 1, 1]} : vector<8x2x8x128xf32> to vector<1x2x8x128xf32>
    %185 = vector.shape_cast %184 : vector<1x2x8x128xf32> to vector<2x8x128xf32>
    %186 = arith.addf %183, %185 : vector<2x8x128xf32>
    %187 = vector.extract_strided_slice %114 {offsets = [5, 0, 0, 0], sizes = [1, 2, 8, 128], strides = [1, 1, 1, 1]} : vector<8x2x8x128xf32> to vector<1x2x8x128xf32>
    %188 = vector.shape_cast %187 : vector<1x2x8x128xf32> to vector<2x8x128xf32>
    %189 = arith.mulf %186, %188 : vector<2x8x128xf32>
    %cst_39 = arith.constant dense<0.000000e+00> : vector<2x128xf32>
    %190 = vector.multi_reduction <add>, %189, %cst_39 [1] : vector<2x8x128xf32> to vector<2x128xf32>
    %191 = vector.extract_strided_slice %190 {offsets = [0, 0], sizes = [2, 64], strides = [1, 1]} : vector<2x128xf32> to vector<2x64xf32>
    %192 = vector.extract_strided_slice %190 {offsets = [0, 64], sizes = [2, 64], strides = [1, 1]} : vector<2x128xf32> to vector<2x64xf32>
    %193 = arith.addf %191, %192 : vector<2x64xf32>
    %194 = vector.extract_strided_slice %112 {offsets = [6, 0, 0, 0], sizes = [1, 2, 8, 128], strides = [1, 1, 1, 1]} : vector<8x2x8x128xf32> to vector<1x2x8x128xf32>
    %195 = vector.shape_cast %194 : vector<1x2x8x128xf32> to vector<2x8x128xf32>
    %196 = arith.mulf %195, %186 : vector<2x8x128xf32>
    %197 = vector.extract_strided_slice %113 {offsets = [6, 0, 0, 0], sizes = [1, 2, 8, 128], strides = [1, 1, 1, 1]} : vector<8x2x8x128xf32> to vector<1x2x8x128xf32>
    %198 = vector.shape_cast %197 : vector<1x2x8x128xf32> to vector<2x8x128xf32>
    %199 = arith.addf %196, %198 : vector<2x8x128xf32>
    %200 = vector.extract_strided_slice %114 {offsets = [6, 0, 0, 0], sizes = [1, 2, 8, 128], strides = [1, 1, 1, 1]} : vector<8x2x8x128xf32> to vector<1x2x8x128xf32>
    %201 = vector.shape_cast %200 : vector<1x2x8x128xf32> to vector<2x8x128xf32>
    %202 = arith.mulf %199, %201 : vector<2x8x128xf32>
    %cst_40 = arith.constant dense<0.000000e+00> : vector<2x128xf32>
    %203 = vector.multi_reduction <add>, %202, %cst_40 [1] : vector<2x8x128xf32> to vector<2x128xf32>
    %204 = vector.extract_strided_slice %203 {offsets = [0, 0], sizes = [2, 64], strides = [1, 1]} : vector<2x128xf32> to vector<2x64xf32>
    %205 = vector.extract_strided_slice %203 {offsets = [0, 64], sizes = [2, 64], strides = [1, 1]} : vector<2x128xf32> to vector<2x64xf32>
    %206 = arith.addf %204, %205 : vector<2x64xf32>
    %207 = vector.extract_strided_slice %112 {offsets = [7, 0, 0, 0], sizes = [1, 2, 8, 128], strides = [1, 1, 1, 1]} : vector<8x2x8x128xf32> to vector<1x2x8x128xf32>
    %208 = vector.shape_cast %207 : vector<1x2x8x128xf32> to vector<2x8x128xf32>
    %209 = arith.mulf %208, %199 : vector<2x8x128xf32>
    %210 = vector.extract_strided_slice %113 {offsets = [7, 0, 0, 0], sizes = [1, 2, 8, 128], strides = [1, 1, 1, 1]} : vector<8x2x8x128xf32> to vector<1x2x8x128xf32>
    %211 = vector.shape_cast %210 : vector<1x2x8x128xf32> to vector<2x8x128xf32>
    %212 = arith.addf %209, %211 : vector<2x8x128xf32>
    %213 = vector.extract_strided_slice %114 {offsets = [7, 0, 0, 0], sizes = [1, 2, 8, 128], strides = [1, 1, 1, 1]} : vector<8x2x8x128xf32> to vector<1x2x8x128xf32>
    %214 = vector.shape_cast %213 : vector<1x2x8x128xf32> to vector<2x8x128xf32>
    %215 = arith.mulf %212, %214 : vector<2x8x128xf32>
    %cst_41 = arith.constant dense<0.000000e+00> : vector<2x128xf32>
    %216 = vector.multi_reduction <add>, %215, %cst_41 [1] : vector<2x8x128xf32> to vector<2x128xf32>
    %217 = vector.extract_strided_slice %216 {offsets = [0, 0], sizes = [2, 64], strides = [1, 1]} : vector<2x128xf32> to vector<2x64xf32>
    %218 = vector.extract_strided_slice %216 {offsets = [0, 64], sizes = [2, 64], strides = [1, 1]} : vector<2x128xf32> to vector<2x64xf32>
    %219 = arith.addf %217, %218 : vector<2x64xf32>
    %220 = tpu.concatenate %128, %141, %154, %167, %180, %193, %206, %219 in 0 : vector<2x64xf32>, vector<2x64xf32>, vector<2x64xf32>, vector<2x64xf32>, vector<2x64xf32>, vector<2x64xf32>, vector<2x64xf32>, vector<2x64xf32> -> vector<16x64xf32>
    %c0_42 = arith.constant 0 : index
    %c0_43 = arith.constant 0 : index
    %c0_44 = arith.constant 0 : index
    %221 = vector.load %arg8[%c0_42, %c0_43, %c0_44] : memref<2x1x64xf32, #tpu.memory_space<vmem>>, vector<1x1x64xf32>
    %222 = vector.shape_cast %221 : vector<1x1x64xf32> to vector<1x64xf32>
    %223 = vector.broadcast %222 : vector<1x64xf32> to vector<16x64xf32>
    %224 = arith.mulf %61, %223 : vector<16x64xf32>
    %225 = arith.addf %220, %224 : vector<16x64xf32>
    %226 = arith.negf %25 : vector<16x64xf32>
    %227 = math.exp %226 : vector<16x64xf32>
    %cst_45 = arith.constant 1.000000e+00 : f32
    %228 = vector.broadcast %cst_45 : f32 to vector<16x64xf32>
    %229 = arith.addf %228, %227 : vector<16x64xf32>
    %230 = arith.divf %228, %229 : vector<16x64xf32>
    %231 = arith.mulf %25, %230 : vector<16x64xf32>
    %232 = arith.mulf %225, %231 : vector<16x64xf32>
    %233 = arith.truncf %232 : vector<16x64xf32> to vector<16x64xbf16>
    %c0_46 = arith.constant 0 : index
    %c0_47 = arith.constant 0 : index
    %c0_48 = arith.constant 0 : index
    %234 = vector.load %arg9[%c0_46, %c0_47, %c0_48] : memref<2x64x32xbf16, #tpu.memory_space<vmem>>, vector<1x64x32xbf16>
    %235 = vector.shape_cast %234 : vector<1x64x32xbf16> to vector<64x32xbf16>
    %cst_49 = arith.constant dense<0.000000e+00> : vector<16x32xf32>
    %236 = tpu.matmul %233, %235, %cst_49 {dimension_numbers = #tpu.dot_dimension_numbers<[1], [0], [0], [1], [0, 0, 1, 1], [], []>} : vector<16x64xbf16>, vector<64x32xbf16>, vector<16x32xf32> -> vector<16x32xf32>
    %237 = arith.addf %236, %9 : vector<16x32xf32>
    %238 = arith.mulf %237, %237 : vector<16x32xf32>
    %cst_50 = arith.constant dense<0.000000e+00> : vector<16xf32>
    %239 = vector.multi_reduction <add>, %238, %cst_50 [1] : vector<16x32xf32> to vector<16xf32>
    %240 = vector.shape_cast %239 : vector<16xf32> to vector<16x1xf32>
    %cst_51 = arith.constant 3.200000e+01 : f32
    %241 = vector.broadcast %cst_51 : f32 to vector<16x1xf32>
    %242 = arith.divf %240, %241 : vector<16x1xf32>
    %cst_52 = arith.constant 9.99999974E-6 : f32
    %243 = vector.broadcast %cst_52 : f32 to vector<16x1xf32>
    %244 = arith.addf %242, %243 : vector<16x1xf32>
    %245 = math.rsqrt %244 : vector<16x1xf32>
    %246 = vector.broadcast %245 : vector<16x1xf32> to vector<16x32xf32>
    %247 = arith.mulf %237, %246 : vector<16x32xf32>
    %248 = arith.truncf %247 : vector<16x32xf32> to vector<16x32xbf16>
    %c1 = arith.constant 1 : index
    %c0_53 = arith.constant 0 : index
    %c0_54 = arith.constant 0 : index
    %249 = vector.load %arg2[%c1, %c0_53, %c0_54] : memref<2x32x128xbf16, #tpu.memory_space<vmem>>, vector<1x32x128xbf16>
    %250 = vector.shape_cast %249 : vector<1x32x128xbf16> to vector<32x128xbf16>
    %cst_55 = arith.constant dense<0.000000e+00> : vector<16x128xf32>
    %251 = tpu.matmul %248, %250, %cst_55 {dimension_numbers = #tpu.dot_dimension_numbers<[1], [0], [0], [1], [0, 0, 1, 1], [], []>} : vector<16x32xbf16>, vector<32x128xbf16>, vector<16x128xf32> -> vector<16x128xf32>
    %252 = vector.extract_strided_slice %251 {offsets = [0, 0], sizes = [16, 64], strides = [1, 1]} : vector<16x128xf32> to vector<16x64xf32>
    %253 = vector.extract_strided_slice %251 {offsets = [0, 64], sizes = [16, 64], strides = [1, 1]} : vector<16x128xf32> to vector<16x64xf32>
    %c1_56 = arith.constant 1 : index
    %c0_57 = arith.constant 0 : index
    %c0_58 = arith.constant 0 : index
    %254 = vector.load %arg3[%c1_56, %c0_57, %c0_58] : memref<2x4x64xf32, #tpu.memory_space<vmem>>, vector<1x4x64xf32>
    %255 = vector.shape_cast %254 : vector<1x4x64xf32> to vector<4x64xf32>
    %256 = vector.extract_strided_slice %255 {offsets = [3, 0], sizes = [1, 64], strides = [1, 1]} : vector<4x64xf32> to vector<1x64xf32>
    %257 = vector.broadcast %256 : vector<1x64xf32> to vector<16x64xf32>
    %258 = arith.mulf %252, %257 : vector<16x64xf32>
    %c6_i32_59 = arith.constant 6 : i32
    %259 = tpu.dynamic_rotate %252 by %c6_i32_59 dim 0 : vector<16x64xf32>, i32 -> vector<16x64xf32>
    %cst_60 = arith.constant 0.000000e+00 : f32
    %260 = vector.broadcast %cst_60 : f32 to vector<16x64xf32>
    %261 = arith.select %8, %260, %259 : vector<16x64xi1>, vector<16x64xf32>
    %262 = vector.extract_strided_slice %255 {offsets = [0, 0], sizes = [1, 64], strides = [1, 1]} : vector<4x64xf32> to vector<1x64xf32>
    %263 = vector.broadcast %262 : vector<1x64xf32> to vector<16x64xf32>
    %264 = arith.mulf %261, %263 : vector<16x64xf32>
    %265 = arith.addf %258, %264 : vector<16x64xf32>
    %c4_i32_61 = arith.constant 4 : i32
    %266 = tpu.dynamic_rotate %252 by %c4_i32_61 dim 0 : vector<16x64xf32>, i32 -> vector<16x64xf32>
    %cst_62 = arith.constant 0.000000e+00 : f32
    %267 = vector.broadcast %cst_62 : f32 to vector<16x64xf32>
    %268 = arith.select %6, %267, %266 : vector<16x64xi1>, vector<16x64xf32>
    %269 = vector.extract_strided_slice %255 {offsets = [1, 0], sizes = [1, 64], strides = [1, 1]} : vector<4x64xf32> to vector<1x64xf32>
    %270 = vector.broadcast %269 : vector<1x64xf32> to vector<16x64xf32>
    %271 = arith.mulf %268, %270 : vector<16x64xf32>
    %272 = arith.addf %265, %271 : vector<16x64xf32>
    %c2_i32_63 = arith.constant 2 : i32
    %273 = tpu.dynamic_rotate %252 by %c2_i32_63 dim 0 : vector<16x64xf32>, i32 -> vector<16x64xf32>
    %cst_64 = arith.constant 0.000000e+00 : f32
    %274 = vector.broadcast %cst_64 : f32 to vector<16x64xf32>
    %275 = arith.select %4, %274, %273 : vector<16x64xi1>, vector<16x64xf32>
    %276 = vector.extract_strided_slice %255 {offsets = [2, 0], sizes = [1, 64], strides = [1, 1]} : vector<4x64xf32> to vector<1x64xf32>
    %277 = vector.broadcast %276 : vector<1x64xf32> to vector<16x64xf32>
    %278 = arith.mulf %275, %277 : vector<16x64xf32>
    %279 = arith.addf %272, %278 : vector<16x64xf32>
    %c1_65 = arith.constant 1 : index
    %c0_66 = arith.constant 0 : index
    %c0_67 = arith.constant 0 : index
    %280 = vector.load %arg4[%c1_65, %c0_66, %c0_67] : memref<2x1x64xf32, #tpu.memory_space<vmem>>, vector<1x1x64xf32>
    %281 = vector.shape_cast %280 : vector<1x1x64xf32> to vector<1x64xf32>
    %282 = vector.broadcast %281 : vector<1x64xf32> to vector<16x64xf32>
    %283 = arith.addf %279, %282 : vector<16x64xf32>
    %284 = arith.negf %283 : vector<16x64xf32>
    %285 = math.exp %284 : vector<16x64xf32>
    %cst_68 = arith.constant 1.000000e+00 : f32
    %286 = vector.broadcast %cst_68 : f32 to vector<16x64xf32>
    %287 = arith.addf %286, %285 : vector<16x64xf32>
    %288 = arith.divf %286, %287 : vector<16x64xf32>
    %289 = arith.mulf %283, %288 : vector<16x64xf32>
    %290 = arith.truncf %289 : vector<16x64xf32> to vector<16x64xbf16>
    %c1_69 = arith.constant 1 : index
    %c0_70 = arith.constant 0 : index
    %c0_71 = arith.constant 0 : index
    %291 = vector.load %arg5[%c1_69, %c0_70, %c0_71] : memref<2x64x128xbf16, #tpu.memory_space<vmem>>, vector<1x64x128xbf16>
    %292 = vector.shape_cast %291 : vector<1x64x128xbf16> to vector<64x128xbf16>
    %cst_72 = arith.constant dense<0.000000e+00> : vector<16x128xf32>
    %293 = tpu.matmul %290, %292, %cst_72 {dimension_numbers = #tpu.dot_dimension_numbers<[1], [0], [0], [1], [0, 0, 1, 1], [], []>} : vector<16x64xbf16>, vector<64x128xbf16>, vector<16x128xf32> -> vector<16x128xf32>
    %294 = vector.extract_strided_slice %293 {offsets = [0, 0], sizes = [16, 64], strides = [1, 1]} : vector<16x128xf32> to vector<16x64xf32>
    %c1_73 = arith.constant 1 : index
    %c0_74 = arith.constant 0 : index
    %c0_75 = arith.constant 0 : index
    %295 = vector.load %arg6[%c1_73, %c0_74, %c0_75] : memref<2x1x64xf32, #tpu.memory_space<vmem>>, vector<1x1x64xf32>
    %296 = vector.shape_cast %295 : vector<1x1x64xf32> to vector<1x64xf32>
    %297 = vector.broadcast %296 : vector<1x64xf32> to vector<16x64xf32>
    %298 = arith.addf %294, %297 : vector<16x64xf32>
    %cst_76 = arith.constant 2.000000e+01 : f32
    %299 = vector.broadcast %cst_76 : f32 to vector<16x64xf32>
    %300 = arith.cmpf ogt, %298, %299 : vector<16x64xf32>
    %cst_77 = arith.constant 2.000000e+01 : f32
    %301 = vector.broadcast %cst_77 : f32 to vector<16x64xf32>
    %302 = arith.minimumf %298, %301 : vector<16x64xf32>
    %303 = math.exp %302 : vector<16x64xf32>
    %304 = math.log1p %303 : vector<16x64xf32>
    %305 = arith.select %300, %298, %304 : vector<16x64xi1>, vector<16x64xf32>
    %c1_78 = arith.constant 1 : index
    %c0_79 = arith.constant 0 : index
    %c0_80 = arith.constant 0 : index
    %306 = vector.load %arg7[%c1_78, %c0_79, %c0_80] : memref<2x8x128xf32, #tpu.memory_space<vmem>>, vector<1x8x128xf32>
    %307 = vector.shape_cast %306 : vector<1x8x128xf32> to vector<8x128xf32>
    %308 = tpu.concatenate %305, %305 in 1 : vector<16x64xf32>, vector<16x64xf32> -> vector<16x128xf32>
    %309 = arith.mulf %305, %289 : vector<16x64xf32>
    %310 = tpu.concatenate %309, %309 in 1 : vector<16x64xf32>, vector<16x64xf32> -> vector<16x128xf32>
    %311 = vector.shape_cast %308 : vector<16x128xf32> to vector<16x1x128xf32>
    %312 = vector.shape_cast %307 : vector<8x128xf32> to vector<1x8x128xf32>
    %313 = vector.broadcast %311 : vector<16x1x128xf32> to vector<16x8x128xf32>
    %314 = vector.broadcast %312 : vector<1x8x128xf32> to vector<16x8x128xf32>
    %315 = arith.mulf %313, %314 : vector<16x8x128xf32>
    %316 = math.exp %315 : vector<16x8x128xf32>
    %317 = vector.extract_strided_slice %293 {offsets = [0, 64], sizes = [16, 16], strides = [1, 1]} : vector<16x128xf32> to vector<16x16xf32>
    %318 = vector.extract_strided_slice %317 {offsets = [0, 0], sizes = [16, 8], strides = [1, 1]} : vector<16x16xf32> to vector<16x8xf32>
    %319 = vector.shape_cast %318 : vector<16x8xf32> to vector<16x8x1xf32>
    %320 = vector.shape_cast %319 : vector<16x8x1xf32> to vector<16x8x1xf32>
    %321 = vector.broadcast %320 : vector<16x8x1xf32> to vector<16x8x64xf32>
    %322 = vector.extract_strided_slice %317 {offsets = [0, 8], sizes = [16, 8], strides = [1, 1]} : vector<16x16xf32> to vector<16x8xf32>
    %323 = vector.shape_cast %322 : vector<16x8xf32> to vector<16x8x1xf32>
    %324 = vector.shape_cast %323 : vector<16x8x1xf32> to vector<16x8x1xf32>
    %325 = vector.broadcast %324 : vector<16x8x1xf32> to vector<16x8x64xf32>
    %326 = tpu.concatenate %321, %325 in 2 : vector<16x8x64xf32>, vector<16x8x64xf32> -> vector<16x8x128xf32>
    %327 = vector.extract_strided_slice %293 {offsets = [0, 80], sizes = [16, 16], strides = [1, 1]} : vector<16x128xf32> to vector<16x16xf32>
    %328 = vector.extract_strided_slice %327 {offsets = [0, 0], sizes = [16, 8], strides = [1, 1]} : vector<16x16xf32> to vector<16x8xf32>
    %329 = vector.shape_cast %328 : vector<16x8xf32> to vector<16x8x1xf32>
    %330 = vector.shape_cast %329 : vector<16x8x1xf32> to vector<16x8x1xf32>
    %331 = vector.broadcast %330 : vector<16x8x1xf32> to vector<16x8x64xf32>
    %332 = vector.extract_strided_slice %327 {offsets = [0, 8], sizes = [16, 8], strides = [1, 1]} : vector<16x16xf32> to vector<16x8xf32>
    %333 = vector.shape_cast %332 : vector<16x8xf32> to vector<16x8x1xf32>
    %334 = vector.shape_cast %333 : vector<16x8x1xf32> to vector<16x8x1xf32>
    %335 = vector.broadcast %334 : vector<16x8x1xf32> to vector<16x8x64xf32>
    %336 = tpu.concatenate %331, %335 in 2 : vector<16x8x64xf32>, vector<16x8x64xf32> -> vector<16x8x128xf32>
    %337 = vector.shape_cast %310 : vector<16x128xf32> to vector<16x1x128xf32>
    %338 = vector.broadcast %337 : vector<16x1x128xf32> to vector<16x8x128xf32>
    %339 = arith.mulf %326, %338 : vector<16x8x128xf32>
    %340 = vector.shape_cast %316 : vector<16x8x128xf32> to vector<8x2x8x128xf32>
    %341 = vector.shape_cast %339 : vector<16x8x128xf32> to vector<8x2x8x128xf32>
    %342 = vector.shape_cast %336 : vector<16x8x128xf32> to vector<8x2x8x128xf32>
    %cst_81 = arith.constant 0.000000e+00 : f32
    %343 = vector.broadcast %cst_81 : f32 to vector<2x8x128xf32>
    %344 = vector.extract_strided_slice %340 {offsets = [0, 0, 0, 0], sizes = [1, 2, 8, 128], strides = [1, 1, 1, 1]} : vector<8x2x8x128xf32> to vector<1x2x8x128xf32>
    %345 = vector.shape_cast %344 : vector<1x2x8x128xf32> to vector<2x8x128xf32>
    %346 = arith.mulf %345, %343 : vector<2x8x128xf32>
    %347 = vector.extract_strided_slice %341 {offsets = [0, 0, 0, 0], sizes = [1, 2, 8, 128], strides = [1, 1, 1, 1]} : vector<8x2x8x128xf32> to vector<1x2x8x128xf32>
    %348 = vector.shape_cast %347 : vector<1x2x8x128xf32> to vector<2x8x128xf32>
    %349 = arith.addf %346, %348 : vector<2x8x128xf32>
    %350 = vector.extract_strided_slice %342 {offsets = [0, 0, 0, 0], sizes = [1, 2, 8, 128], strides = [1, 1, 1, 1]} : vector<8x2x8x128xf32> to vector<1x2x8x128xf32>
    %351 = vector.shape_cast %350 : vector<1x2x8x128xf32> to vector<2x8x128xf32>
    %352 = arith.mulf %349, %351 : vector<2x8x128xf32>
    %cst_82 = arith.constant dense<0.000000e+00> : vector<2x128xf32>
    %353 = vector.multi_reduction <add>, %352, %cst_82 [1] : vector<2x8x128xf32> to vector<2x128xf32>
    %354 = vector.extract_strided_slice %353 {offsets = [0, 0], sizes = [2, 64], strides = [1, 1]} : vector<2x128xf32> to vector<2x64xf32>
    %355 = vector.extract_strided_slice %353 {offsets = [0, 64], sizes = [2, 64], strides = [1, 1]} : vector<2x128xf32> to vector<2x64xf32>
    %356 = arith.addf %354, %355 : vector<2x64xf32>
    %357 = vector.extract_strided_slice %340 {offsets = [1, 0, 0, 0], sizes = [1, 2, 8, 128], strides = [1, 1, 1, 1]} : vector<8x2x8x128xf32> to vector<1x2x8x128xf32>
    %358 = vector.shape_cast %357 : vector<1x2x8x128xf32> to vector<2x8x128xf32>
    %359 = arith.mulf %358, %349 : vector<2x8x128xf32>
    %360 = vector.extract_strided_slice %341 {offsets = [1, 0, 0, 0], sizes = [1, 2, 8, 128], strides = [1, 1, 1, 1]} : vector<8x2x8x128xf32> to vector<1x2x8x128xf32>
    %361 = vector.shape_cast %360 : vector<1x2x8x128xf32> to vector<2x8x128xf32>
    %362 = arith.addf %359, %361 : vector<2x8x128xf32>
    %363 = vector.extract_strided_slice %342 {offsets = [1, 0, 0, 0], sizes = [1, 2, 8, 128], strides = [1, 1, 1, 1]} : vector<8x2x8x128xf32> to vector<1x2x8x128xf32>
    %364 = vector.shape_cast %363 : vector<1x2x8x128xf32> to vector<2x8x128xf32>
    %365 = arith.mulf %362, %364 : vector<2x8x128xf32>
    %cst_83 = arith.constant dense<0.000000e+00> : vector<2x128xf32>
    %366 = vector.multi_reduction <add>, %365, %cst_83 [1] : vector<2x8x128xf32> to vector<2x128xf32>
    %367 = vector.extract_strided_slice %366 {offsets = [0, 0], sizes = [2, 64], strides = [1, 1]} : vector<2x128xf32> to vector<2x64xf32>
    %368 = vector.extract_strided_slice %366 {offsets = [0, 64], sizes = [2, 64], strides = [1, 1]} : vector<2x128xf32> to vector<2x64xf32>
    %369 = arith.addf %367, %368 : vector<2x64xf32>
    %370 = vector.extract_strided_slice %340 {offsets = [2, 0, 0, 0], sizes = [1, 2, 8, 128], strides = [1, 1, 1, 1]} : vector<8x2x8x128xf32> to vector<1x2x8x128xf32>
    %371 = vector.shape_cast %370 : vector<1x2x8x128xf32> to vector<2x8x128xf32>
    %372 = arith.mulf %371, %362 : vector<2x8x128xf32>
    %373 = vector.extract_strided_slice %341 {offsets = [2, 0, 0, 0], sizes = [1, 2, 8, 128], strides = [1, 1, 1, 1]} : vector<8x2x8x128xf32> to vector<1x2x8x128xf32>
    %374 = vector.shape_cast %373 : vector<1x2x8x128xf32> to vector<2x8x128xf32>
    %375 = arith.addf %372, %374 : vector<2x8x128xf32>
    %376 = vector.extract_strided_slice %342 {offsets = [2, 0, 0, 0], sizes = [1, 2, 8, 128], strides = [1, 1, 1, 1]} : vector<8x2x8x128xf32> to vector<1x2x8x128xf32>
    %377 = vector.shape_cast %376 : vector<1x2x8x128xf32> to vector<2x8x128xf32>
    %378 = arith.mulf %375, %377 : vector<2x8x128xf32>
    %cst_84 = arith.constant dense<0.000000e+00> : vector<2x128xf32>
    %379 = vector.multi_reduction <add>, %378, %cst_84 [1] : vector<2x8x128xf32> to vector<2x128xf32>
    %380 = vector.extract_strided_slice %379 {offsets = [0, 0], sizes = [2, 64], strides = [1, 1]} : vector<2x128xf32> to vector<2x64xf32>
    %381 = vector.extract_strided_slice %379 {offsets = [0, 64], sizes = [2, 64], strides = [1, 1]} : vector<2x128xf32> to vector<2x64xf32>
    %382 = arith.addf %380, %381 : vector<2x64xf32>
    %383 = vector.extract_strided_slice %340 {offsets = [3, 0, 0, 0], sizes = [1, 2, 8, 128], strides = [1, 1, 1, 1]} : vector<8x2x8x128xf32> to vector<1x2x8x128xf32>
    %384 = vector.shape_cast %383 : vector<1x2x8x128xf32> to vector<2x8x128xf32>
    %385 = arith.mulf %384, %375 : vector<2x8x128xf32>
    %386 = vector.extract_strided_slice %341 {offsets = [3, 0, 0, 0], sizes = [1, 2, 8, 128], strides = [1, 1, 1, 1]} : vector<8x2x8x128xf32> to vector<1x2x8x128xf32>
    %387 = vector.shape_cast %386 : vector<1x2x8x128xf32> to vector<2x8x128xf32>
    %388 = arith.addf %385, %387 : vector<2x8x128xf32>
    %389 = vector.extract_strided_slice %342 {offsets = [3, 0, 0, 0], sizes = [1, 2, 8, 128], strides = [1, 1, 1, 1]} : vector<8x2x8x128xf32> to vector<1x2x8x128xf32>
    %390 = vector.shape_cast %389 : vector<1x2x8x128xf32> to vector<2x8x128xf32>
    %391 = arith.mulf %388, %390 : vector<2x8x128xf32>
    %cst_85 = arith.constant dense<0.000000e+00> : vector<2x128xf32>
    %392 = vector.multi_reduction <add>, %391, %cst_85 [1] : vector<2x8x128xf32> to vector<2x128xf32>
    %393 = vector.extract_strided_slice %392 {offsets = [0, 0], sizes = [2, 64], strides = [1, 1]} : vector<2x128xf32> to vector<2x64xf32>
    %394 = vector.extract_strided_slice %392 {offsets = [0, 64], sizes = [2, 64], strides = [1, 1]} : vector<2x128xf32> to vector<2x64xf32>
    %395 = arith.addf %393, %394 : vector<2x64xf32>
    %396 = vector.extract_strided_slice %340 {offsets = [4, 0, 0, 0], sizes = [1, 2, 8, 128], strides = [1, 1, 1, 1]} : vector<8x2x8x128xf32> to vector<1x2x8x128xf32>
    %397 = vector.shape_cast %396 : vector<1x2x8x128xf32> to vector<2x8x128xf32>
    %398 = arith.mulf %397, %388 : vector<2x8x128xf32>
    %399 = vector.extract_strided_slice %341 {offsets = [4, 0, 0, 0], sizes = [1, 2, 8, 128], strides = [1, 1, 1, 1]} : vector<8x2x8x128xf32> to vector<1x2x8x128xf32>
    %400 = vector.shape_cast %399 : vector<1x2x8x128xf32> to vector<2x8x128xf32>
    %401 = arith.addf %398, %400 : vector<2x8x128xf32>
    %402 = vector.extract_strided_slice %342 {offsets = [4, 0, 0, 0], sizes = [1, 2, 8, 128], strides = [1, 1, 1, 1]} : vector<8x2x8x128xf32> to vector<1x2x8x128xf32>
    %403 = vector.shape_cast %402 : vector<1x2x8x128xf32> to vector<2x8x128xf32>
    %404 = arith.mulf %401, %403 : vector<2x8x128xf32>
    %cst_86 = arith.constant dense<0.000000e+00> : vector<2x128xf32>
    %405 = vector.multi_reduction <add>, %404, %cst_86 [1] : vector<2x8x128xf32> to vector<2x128xf32>
    %406 = vector.extract_strided_slice %405 {offsets = [0, 0], sizes = [2, 64], strides = [1, 1]} : vector<2x128xf32> to vector<2x64xf32>
    %407 = vector.extract_strided_slice %405 {offsets = [0, 64], sizes = [2, 64], strides = [1, 1]} : vector<2x128xf32> to vector<2x64xf32>
    %408 = arith.addf %406, %407 : vector<2x64xf32>
    %409 = vector.extract_strided_slice %340 {offsets = [5, 0, 0, 0], sizes = [1, 2, 8, 128], strides = [1, 1, 1, 1]} : vector<8x2x8x128xf32> to vector<1x2x8x128xf32>
    %410 = vector.shape_cast %409 : vector<1x2x8x128xf32> to vector<2x8x128xf32>
    %411 = arith.mulf %410, %401 : vector<2x8x128xf32>
    %412 = vector.extract_strided_slice %341 {offsets = [5, 0, 0, 0], sizes = [1, 2, 8, 128], strides = [1, 1, 1, 1]} : vector<8x2x8x128xf32> to vector<1x2x8x128xf32>
    %413 = vector.shape_cast %412 : vector<1x2x8x128xf32> to vector<2x8x128xf32>
    %414 = arith.addf %411, %413 : vector<2x8x128xf32>
    %415 = vector.extract_strided_slice %342 {offsets = [5, 0, 0, 0], sizes = [1, 2, 8, 128], strides = [1, 1, 1, 1]} : vector<8x2x8x128xf32> to vector<1x2x8x128xf32>
    %416 = vector.shape_cast %415 : vector<1x2x8x128xf32> to vector<2x8x128xf32>
    %417 = arith.mulf %414, %416 : vector<2x8x128xf32>
    %cst_87 = arith.constant dense<0.000000e+00> : vector<2x128xf32>
    %418 = vector.multi_reduction <add>, %417, %cst_87 [1] : vector<2x8x128xf32> to vector<2x128xf32>
    %419 = vector.extract_strided_slice %418 {offsets = [0, 0], sizes = [2, 64], strides = [1, 1]} : vector<2x128xf32> to vector<2x64xf32>
    %420 = vector.extract_strided_slice %418 {offsets = [0, 64], sizes = [2, 64], strides = [1, 1]} : vector<2x128xf32> to vector<2x64xf32>
    %421 = arith.addf %419, %420 : vector<2x64xf32>
    %422 = vector.extract_strided_slice %340 {offsets = [6, 0, 0, 0], sizes = [1, 2, 8, 128], strides = [1, 1, 1, 1]} : vector<8x2x8x128xf32> to vector<1x2x8x128xf32>
    %423 = vector.shape_cast %422 : vector<1x2x8x128xf32> to vector<2x8x128xf32>
    %424 = arith.mulf %423, %414 : vector<2x8x128xf32>
    %425 = vector.extract_strided_slice %341 {offsets = [6, 0, 0, 0], sizes = [1, 2, 8, 128], strides = [1, 1, 1, 1]} : vector<8x2x8x128xf32> to vector<1x2x8x128xf32>
    %426 = vector.shape_cast %425 : vector<1x2x8x128xf32> to vector<2x8x128xf32>
    %427 = arith.addf %424, %426 : vector<2x8x128xf32>
    %428 = vector.extract_strided_slice %342 {offsets = [6, 0, 0, 0], sizes = [1, 2, 8, 128], strides = [1, 1, 1, 1]} : vector<8x2x8x128xf32> to vector<1x2x8x128xf32>
    %429 = vector.shape_cast %428 : vector<1x2x8x128xf32> to vector<2x8x128xf32>
    %430 = arith.mulf %427, %429 : vector<2x8x128xf32>
    %cst_88 = arith.constant dense<0.000000e+00> : vector<2x128xf32>
    %431 = vector.multi_reduction <add>, %430, %cst_88 [1] : vector<2x8x128xf32> to vector<2x128xf32>
    %432 = vector.extract_strided_slice %431 {offsets = [0, 0], sizes = [2, 64], strides = [1, 1]} : vector<2x128xf32> to vector<2x64xf32>
    %433 = vector.extract_strided_slice %431 {offsets = [0, 64], sizes = [2, 64], strides = [1, 1]} : vector<2x128xf32> to vector<2x64xf32>
    %434 = arith.addf %432, %433 : vector<2x64xf32>
    %435 = vector.extract_strided_slice %340 {offsets = [7, 0, 0, 0], sizes = [1, 2, 8, 128], strides = [1, 1, 1, 1]} : vector<8x2x8x128xf32> to vector<1x2x8x128xf32>
    %436 = vector.shape_cast %435 : vector<1x2x8x128xf32> to vector<2x8x128xf32>
    %437 = arith.mulf %436, %427 : vector<2x8x128xf32>
    %438 = vector.extract_strided_slice %341 {offsets = [7, 0, 0, 0], sizes = [1, 2, 8, 128], strides = [1, 1, 1, 1]} : vector<8x2x8x128xf32> to vector<1x2x8x128xf32>
    %439 = vector.shape_cast %438 : vector<1x2x8x128xf32> to vector<2x8x128xf32>
    %440 = arith.addf %437, %439 : vector<2x8x128xf32>
    %441 = vector.extract_strided_slice %342 {offsets = [7, 0, 0, 0], sizes = [1, 2, 8, 128], strides = [1, 1, 1, 1]} : vector<8x2x8x128xf32> to vector<1x2x8x128xf32>
    %442 = vector.shape_cast %441 : vector<1x2x8x128xf32> to vector<2x8x128xf32>
    %443 = arith.mulf %440, %442 : vector<2x8x128xf32>
    %cst_89 = arith.constant dense<0.000000e+00> : vector<2x128xf32>
    %444 = vector.multi_reduction <add>, %443, %cst_89 [1] : vector<2x8x128xf32> to vector<2x128xf32>
    %445 = vector.extract_strided_slice %444 {offsets = [0, 0], sizes = [2, 64], strides = [1, 1]} : vector<2x128xf32> to vector<2x64xf32>
    %446 = vector.extract_strided_slice %444 {offsets = [0, 64], sizes = [2, 64], strides = [1, 1]} : vector<2x128xf32> to vector<2x64xf32>
    %447 = arith.addf %445, %446 : vector<2x64xf32>
    %448 = tpu.concatenate %356, %369, %382, %395, %408, %421, %434, %447 in 0 : vector<2x64xf32>, vector<2x64xf32>, vector<2x64xf32>, vector<2x64xf32>, vector<2x64xf32>, vector<2x64xf32>, vector<2x64xf32>, vector<2x64xf32> -> vector<16x64xf32>
    %c1_90 = arith.constant 1 : index
    %c0_91 = arith.constant 0 : index
    %c0_92 = arith.constant 0 : index
    %449 = vector.load %arg8[%c1_90, %c0_91, %c0_92] : memref<2x1x64xf32, #tpu.memory_space<vmem>>, vector<1x1x64xf32>
    %450 = vector.shape_cast %449 : vector<1x1x64xf32> to vector<1x64xf32>
    %451 = vector.broadcast %450 : vector<1x64xf32> to vector<16x64xf32>
    %452 = arith.mulf %289, %451 : vector<16x64xf32>
    %453 = arith.addf %448, %452 : vector<16x64xf32>
    %454 = arith.negf %253 : vector<16x64xf32>
    %455 = math.exp %454 : vector<16x64xf32>
    %cst_93 = arith.constant 1.000000e+00 : f32
    %456 = vector.broadcast %cst_93 : f32 to vector<16x64xf32>
    %457 = arith.addf %456, %455 : vector<16x64xf32>
    %458 = arith.divf %456, %457 : vector<16x64xf32>
    %459 = arith.mulf %253, %458 : vector<16x64xf32>
    %460 = arith.mulf %453, %459 : vector<16x64xf32>
    %461 = arith.truncf %460 : vector<16x64xf32> to vector<16x64xbf16>
    %c1_94 = arith.constant 1 : index
    %c0_95 = arith.constant 0 : index
    %c0_96 = arith.constant 0 : index
    %462 = vector.load %arg9[%c1_94, %c0_95, %c0_96] : memref<2x64x32xbf16, #tpu.memory_space<vmem>>, vector<1x64x32xbf16>
    %463 = vector.shape_cast %462 : vector<1x64x32xbf16> to vector<64x32xbf16>
    %cst_97 = arith.constant dense<0.000000e+00> : vector<16x32xf32>
    %464 = tpu.matmul %461, %463, %cst_97 {dimension_numbers = #tpu.dot_dimension_numbers<[1], [0], [0], [1], [0, 0, 1, 1], [], []>} : vector<16x64xbf16>, vector<64x32xbf16>, vector<16x32xf32> -> vector<16x32xf32>
    %465 = arith.addf %464, %237 : vector<16x32xf32>
    %466 = arith.mulf %465, %465 : vector<16x32xf32>
    %cst_98 = arith.constant dense<0.000000e+00> : vector<16xf32>
    %467 = vector.multi_reduction <add>, %466, %cst_98 [1] : vector<16x32xf32> to vector<16xf32>
    %468 = vector.shape_cast %467 : vector<16xf32> to vector<16x1xf32>
    %cst_99 = arith.constant 3.200000e+01 : f32
    %469 = vector.broadcast %cst_99 : f32 to vector<16x1xf32>
    %470 = arith.divf %468, %469 : vector<16x1xf32>
    %cst_100 = arith.constant 9.99999974E-6 : f32
    %471 = vector.broadcast %cst_100 : f32 to vector<16x1xf32>
    %472 = arith.addf %470, %471 : vector<16x1xf32>
    %473 = math.rsqrt %472 : vector<16x1xf32>
    %474 = vector.broadcast %473 : vector<16x1xf32> to vector<16x32xf32>
    %475 = arith.mulf %465, %474 : vector<16x32xf32>
    %c0_101 = arith.constant 0 : index
    %c0_102 = arith.constant 0 : index
    %476 = vector.load %arg10[%c0_101, %c0_102] : memref<1x32xf32, #tpu.memory_space<vmem>>, vector<1x32xf32>
    %477 = vector.broadcast %476 : vector<1x32xf32> to vector<16x32xf32>
    %478 = arith.mulf %475, %477 : vector<16x32xf32>
    %c0_103 = arith.constant 0 : index
    %c0_104 = arith.constant 0 : index
    %479 = vector.load %arg11[%c0_103, %c0_104] : memref<16x32xf32, #tpu.memory_space<vmem>>, vector<16x32xf32>
    tpu.vector_store %arg11[%c0_103, %c0_104], %478 {strides = array<i32>} : memref<16x32xf32, #tpu.memory_space<vmem>>, vector<16x32xf32>,
    return
  }
  func.func @transform_0(%arg0: i32) -> (i32, i32) {
    %c0_i32 = arith.constant 0 : i32
    %c0_i32_0 = arith.constant 0 : i32
    %c0_i32_1 = arith.constant 0 : i32
    return %c0_i32, %c0_i32_0 : i32, i32
  }
  func.func @transform_1(%arg0: i32) -> (i32, i32, i32) {
    %c0_i32 = arith.constant 0 : i32
    %c0_i32_0 = arith.constant 0 : i32
    %c0_i32_1 = arith.constant 0 : i32
    %c0_i32_2 = arith.constant 0 : i32
    return %c0_i32, %c0_i32_0, %c0_i32_1 : i32, i32, i32
  }
  func.func @transform_2(%arg0: i32) -> (i32, i32, i32) {
    %c0_i32 = arith.constant 0 : i32
    %c0_i32_0 = arith.constant 0 : i32
    %c0_i32_1 = arith.constant 0 : i32
    %c0_i32_2 = arith.constant 0 : i32
    return %c0_i32, %c0_i32_0, %c0_i32_1 : i32, i32, i32
  }
  func.func @transform_3(%arg0: i32) -> (i32, i32, i32) {
    %c0_i32 = arith.constant 0 : i32
    %c0_i32_0 = arith.constant 0 : i32
    %c0_i32_1 = arith.constant 0 : i32
    %c0_i32_2 = arith.constant 0 : i32
    return %c0_i32, %c0_i32_0, %c0_i32_1 : i32, i32, i32
  }
  func.func @transform_4(%arg0: i32) -> (i32, i32, i32) {
    %c0_i32 = arith.constant 0 : i32
    %c0_i32_0 = arith.constant 0 : i32
    %c0_i32_1 = arith.constant 0 : i32
    %c0_i32_2 = arith.constant 0 : i32
    return %c0_i32, %c0_i32_0, %c0_i32_1 : i32, i32, i32
  }
  func.func @transform_5(%arg0: i32) -> (i32, i32, i32) {
    %c0_i32 = arith.constant 0 : i32
    %c0_i32_0 = arith.constant 0 : i32
    %c0_i32_1 = arith.constant 0 : i32
    %c0_i32_2 = arith.constant 0 : i32
    return %c0_i32, %c0_i32_0, %c0_i32_1 : i32, i32, i32
  }
  func.func @transform_6(%arg0: i32) -> (i32, i32, i32) {
    %c0_i32 = arith.constant 0 : i32
    %c0_i32_0 = arith.constant 0 : i32
    %c0_i32_1 = arith.constant 0 : i32
    %c0_i32_2 = arith.constant 0 : i32
    return %c0_i32, %c0_i32_0, %c0_i32_1 : i32, i32, i32
  }
  func.func @transform_7(%arg0: i32) -> (i32, i32, i32) {
    %c0_i32 = arith.constant 0 : i32
    %c0_i32_0 = arith.constant 0 : i32
    %c0_i32_1 = arith.constant 0 : i32
    %c0_i32_2 = arith.constant 0 : i32
    return %c0_i32, %c0_i32_0, %c0_i32_1 : i32, i32, i32
  }
  func.func @transform_8(%arg0: i32) -> (i32, i32, i32) {
    %c0_i32 = arith.constant 0 : i32
    %c0_i32_0 = arith.constant 0 : i32
    %c0_i32_1 = arith.constant 0 : i32
    %c0_i32_2 = arith.constant 0 : i32
    return %c0_i32, %c0_i32_0, %c0_i32_1 : i32, i32, i32
  }
  func.func @transform_9(%arg0: i32) -> (i32, i32) {
    %c0_i32 = arith.constant 0 : i32
    %c0_i32_0 = arith.constant 0 : i32
    %c0_i32_1 = arith.constant 0 : i32
    return %c0_i32, %c0_i32_0 : i32, i32
  }
  func.func @transform_10(%arg0: i32) -> (i32, i32) {
    %c0_i32 = arith.constant 0 : i32
    %c0_i32_0 = arith.constant 0 : i32
    %c0_i32_1 = arith.constant 0 : i32
    return %c0_i32, %c0_i32_0 : i32, i32
  }
}

</mosaic_0001>

<bundles_post_ra>
// kernel: tpu_custom_call.1
= control target key start
LH: loop header
LB: loop body
LE: loop exit
PB: predicated region body
PF: predicated region fallthrough
CT: control target
= control target key end

     0   :  { %15 = vsyncpa [#allocation3], 0  ;;  %s4889_s0 = inlined_call_operand.hbm [shape: f32[16,32], index: 0, kind: input, shape index: {}]   ;;  %s4890_s1 = inlined_call_operand.vmem [shape: bf16[2,32,128], index: 1, kind: input, shape index: {}]   ;;  %s4891_s2 = inlined_call_operand.hbm [shape: f32[2,4,64], index: 2, kind: input, shape index: {}]   ;;  %s4892_s3 = inlined_call_operand.vmem [shape: f32[2,1,64], index: 3, kind: input, shape index: {}]   ;;  %s4893_s4 = inlined_call_operand.vmem [shape: bf16[2,64,128], index: 4, kind: input, shape index: {}]   ;;  %s4894_s5 = inlined_call_operand.hbm [shape: f32[2,1,64], index: 5, kind: input, shape index: {}]   ;;  %s4895_s6 = inlined_call_operand.vmem [shape: f32[2,8,128], index: 6, kind: input, shape index: {}]   ;;  %s4896_s7 = inlined_call_operand.vmem [shape: f32[2,1,64], index: 7, kind: input, shape index: {}]   ;;  %s4897_s8 = inlined_call_operand.vmem [shape: bf16[2,64,32], index: 8, kind: input, shape index: {}]   ;;  %s4898_s9 = inlined_call_operand.vmem [shape: f32[1,32], index: 9, kind: input, shape index: {}]   ;;  %s4899_s10 = inlined_call_operand.hbm [shape: f32[16,32], index: 10, kind: output, shape index: {}]  }
   0x1   :  { %16 = vsyncpa [#allocation6], 0 }
   0x2   :  { %17 = vsyncpa [#allocation4], 0  ;;  %s3461_s13 = smov [#allocation5]   ;;  %s3367_s17 = scalar_lea.hbm %s4891_s2, 128 }
   0x3   :  { %s37_s14 = sshll.u32 %s3461_s13, 4  ;;  %p3368_p0 = scmp.ne.s32.totalorder %s4891_s2, %s3367_s17  ;;  %s38_s14 = int_to_ptr.vmem [resolvable:$true] %s37_s14 }
   0x4   :  { %p3371_p1 = scmp.lt.u32.totalorder %s3367_s17, %s4891_s2 }
   0x6   :  { %p3373_p2 = pnand %p3371_p1, %p3368_p0 }
   0x8   :  { %3376 = shalt.err (!%p3373_p2)
}
   0x9   :  { %s3377_s22 = scalar_lea.vmem %s38_s14, 128  ;;  %p3382_p4 = scmp.lt.s32.totalorder %s38_s14, %s38_s14 }
   0xa   :  { %p3378_p3 = scmp.ne.s32.totalorder %s38_s14, %s3377_s22  ;;  %p3383_p5 = scmp.lt.s32.totalorder %s3377_s22, %s3377_s22 }
   0xc   :  { %p3384_p6 = por %p3383_p5, %p3382_p4 }
   0xe   :  { %p3385_p7 = pnand %p3384_p6, %p3378_p3 }
  0x10   :  { %3388 = shalt.err (!%p3385_p7)
}
  0x11   :  { %s3462_s23 = smov 64   ;;  %s3463_s24 = smov 4  }
  0x12   :  { %43 = dma.hbm_to_vmem [thread:$0]  %s4891_s2, 128, %s38_s14, [#allocation6], %s3462_s23, %s3462_s23, %s3463_s24  }
  0x13   :  { %s3464_s27 = smov [#allocation2]   ;;  %s3389_s11 = scalar_lea.hbm %s4889_s0, 256 }
  0x14   :  { %s23_s28 = sshll.u32 %s3464_s27, 4  ;;  %p3390_p8 = scmp.ne.s32.totalorder %s4889_s0, %s3389_s11  ;;  %s24_s28 = int_to_ptr.vmem [resolvable:$true] %s23_s28 }
  0x15   :  { %p3393_p9 = scmp.lt.u32.totalorder %s3389_s11, %s4889_s0 }
  0x17   :  { %p3395_p10 = pnand %p3393_p9, %p3390_p8 }
  0x19   :  { %3398 = shalt.err (!%p3395_p10)
}
  0x1a   :  { %s3399_s17 = scalar_lea.vmem %s24_s28, 256  ;;  %p3404_p12 = scmp.lt.s32.totalorder %s24_s28, %s24_s28 }
  0x1b   :  { %p3400_p11 = scmp.ne.s32.totalorder %s24_s28, %s3399_s17  ;;  %p3405_p13 = scmp.lt.s32.totalorder %s3399_s17, %s3399_s17 }
  0x1d   :  { %p3406_p0 = por %p3405_p13, %p3404_p12 }
  0x1f   :  { %p3407_p1 = pnand %p3406_p0, %p3400_p11 }
  0x21   :  { %3410 = shalt.err (!%p3407_p1)
}
  0x22   :  { %s3465_s2 = smov 128   ;;  %s3466_s14 = smov 8  }
  0x23   :  { %29 = dma.hbm_to_vmem [thread:$0]  %s4889_s0, 256, %s24_s28, [#allocation3], %s3465_s2, %s3465_s2, %s3466_s14  }
  0x24   :  { %s3467_s20 = smov [#allocation7]   ;;  %s3411_s25 = scalar_lea.hbm %s4894_s5, 32 }
  0x25   :  { %s53_s21 = sshll.u32 %s3467_s20, 4  ;;  %p3412_p2 = scmp.ne.s32.totalorder %s4894_s5, %s3411_s25  ;;  %s54_s21 = int_to_ptr.vmem [resolvable:$true] %s53_s21 }
  0x26   :  { %p3415_p3 = scmp.lt.u32.totalorder %s3411_s25, %s4894_s5 }
  0x28   :  { %p3417_p4 = pnand %p3415_p3, %p3412_p2 }
  0x2a   :  { %3420 = shalt.err (!%p3417_p4)
}
  0x2b   :  { %s3421_s11 = scalar_lea.vmem %s54_s21, 32  ;;  %p3426_p6 = scmp.lt.s32.totalorder %s54_s21, %s54_s21 }
  0x2c   :  { %p3422_p5 = scmp.ne.s32.totalorder %s54_s21, %s3421_s11  ;;  %p3427_p7 = scmp.lt.s32.totalorder %s3421_s11, %s3421_s11 }
  0x2e   :  { %p3428_p8 = por %p3427_p7, %p3426_p6 }
  0x30   :  { %p3429_p9 = pnand %p3428_p8, %p3422_p5 }
  0x32   :  { %3432 = shalt.err (!%p3429_p9)
}
  0x33   :  { %s3468_s0 = smov 16   ;;  %s3469_s28 = smov 1  }
  0x34   :  { %59 = dma.hbm_to_vmem [thread:$0]  %s4894_s5, 32, %s54_s21, [#allocation6], %s3468_s0, %s3468_s0, %s3469_s28  }
  0x35   :  { %3455 = dma.done.wait [#allocation3], 256  }
  0x36   :  { %3456 = vsyncadd [#allocation3], 4294967040 }
  0x37   :  { %3457 = dma.done.wait [#allocation6], 160  }
  0x38   :  { %3458 = vsyncadd [#allocation6], 4294967136  ;;  %v78_v0 = vld [vmem:[#allocation2] sm:$0xff]  ;;  %vm93_vm0 = vcmask 261120   ;;  %v79_v1 = vld [vmem:[#allocation2 + $0x8] sm:$0xff]  ;;  %v4900_v7 = vmov 0.0   ;;  %v80_v24 = vlaneseq }
  0x39   :  { %v91_v2 = vmul.f32 %v78_v0, %v78_v0  ;;  %v92_v3 = vmul.f32 %v79_v1, %v79_v1  ;;  %v3221_v6 = vld [vmem:[%s4890_s1] sm:$0xff]   ;;  %3144 = vmatprep.subr.bf16.mxu0 %v4900_v7  ;;  %vm3471_vm1 = vmmov 0   ;;  %v3222_v8 = vld [vmem:[%s4890_s1 + $0x8] sm:$0xff]   ;;  %3152 = vmatprep.subr.bf16.mxu1 %v4900_v7  ;;  %v3225_v22 = vld [vmem:[%s4893_s4 + $0x10] sm:$0xff]   ;;  %vm275_vm5 = vcmask 523264   ;;  %s3473_s21 = smov [#allocation8]  }
  0x3a   :  { %3148 = vmatprep.mubr.msk.bf16.mxu0 %vm3471_vm1, %v4900_v7  ;;  %3145 = vmatpush3.bf16.msra.mxu0 %v3221_v6  ;;  %v3223_v20 = vld [vmem:[%s4893_s4] sm:$0xff]   ;;  %v3224_v21 = vld [vmem:[%s4893_s4 + $0x8] sm:$0xff]   ;;  %v3226_v23 = vld [vmem:[%s4893_s4 + $0x18] sm:$0xff]   ;;  %v3605_v25 = vshrl.u32 %v80_v24, 7  ;;  %vm1383_vm10 = vcmask 1041409   ;;  %vm1390_vm11 = vcmask 1043459  }
  0x3b   :  { %v94_v4 = vsel %vm93_vm0, %v91_v2, 0.0  ;;  %v97_v5 = vsel %vm93_vm0, %v92_v3, 0.0  ;;  %3146 = vmatprep.subr.bf16.mxu0 %v4900_v7  ;;  %3160 = vmatprep.mubr.msk.bf16.mxu1 %vm3471_vm1, %v4900_v7  ;;  %v170_v27 = vld [vmem:[#allocation5] sm:$0xf]  ;;  %v3057_v2 = vld [vmem:[%s4892_s3] ss:$0 sm:$0xff] }
  0x3c   :  { %95 = vadd.xlane.f32.xlu0 %v94_v4  ;;  %3153 = vmatpush3.bf16.msra.mxu1 %v3223_v20  ;;  %4931 = vst [vmem:[#allocation12_spill] sm:$0xff] %v3605_v25  ;;  %v3608_v26 = vsub.s32 3, %v3605_v25  ;;  %v3611_v28 = vsub.s32 0, %v3605_v25  ;;  %v3616_v30 = vsub.s32 1, %v3605_v25  ;;  %v3619_v31 = vsub.s32 2, %v3605_v25  ;;  %s3041_s22 = sshll.u32 %s3473_s21, 4  ;;  %s3042_s22 = int_to_ptr.vmem [resolvable:$true] %s3041_s22 }
  0x3d   :  { %3154 = vmatprep.subr.bf16.mxu1 %v4900_v7  ;;  %vm85_vm2 = vcmp.lt.s32.totalorder %v3605_v25, 4  ;;  %vm87_vm3 = vcmp.lt.s32.totalorder %v3605_v25, 6  ;;  %vm83_vm4 = vcmp.lt.s32.totalorder %v3605_v25, 2  ;;  %vm1397_vm12 = vcmask 1045509   ;;  %s3433_s24 = scalar_lea.vmem %s3042_s22, 256  ;;  %p3438_p11 = scmp.lt.s32.totalorder %s3042_s22, %s3042_s22 }
  0x3e   :  { %3147 = vmatpush3.bf16.msra.mxu0 %v3222_v8  ;;  %4932 = vst [vmem:[#allocation13_spill] sm:$0xff] %v3608_v26  ;;  %4934 = vst [vmem:[#allocation15_spill] sm:$0xff] %v3616_v30  ;;  %v174_v32 = vrot.slane %v170_v27, %v3608_v26  ;;  %v186_v36 = vrot.slane %v170_v27, %v3611_v28  ;;  %v200_v43 = vrot.slane %v170_v27, %v3616_v30  ;;  %vm1430_vm13 = vcmask 1041408   ;;  %p3434_p10 = scmp.ne.s32.totalorder %s3042_s22, %s3433_s24  ;;  %p3439_p12 = scmp.lt.s32.totalorder %s3433_s24, %s3433_s24 }
  0x3f   :  { %3164 = vmatprep.subr.bf16.mxu0 %v4900_v7  ;;  %4935 = vst [vmem:[#allocation16_spill] sm:$0xff] %v3619_v31  ;;  %v214_v44 = vrot.slane %v170_v27, %v3619_v31  ;;  %vm1432_vm14 = vcmask 1043456   ;;  %vm1404_vm15 = vcmask 1047559  }
  0x40   :  { %98 = vadd.xlane.f32.xlu0 %v97_v5  ;;  %3155 = vmatpush3.bf16.msra.mxu1 %v3224_v21  ;;  %p3440_p13 = por %p3439_p12, %p3438_p11 }
  0x41   :  { %3156 = vmatprep.subr.bf16.mxu1 %v4900_v7 }
  0x42   :  { %p3441_p0 = pnand %p3440_p13, %p3434_p10 }
  0x44   :  { %3157 = vmatpush3.bf16.msra.mxu1 %v3225_v22 }
  0x45   :  { %3158 = vmatprep.subr.bf16.mxu1 %v4900_v7 }
  0x48   :  { %3159 = vmatpush3.bf16.msra.mxu1 %v3226_v23  ;;  %v3675_v23 = vsub.s32 5, %v3605_v25 }
  0x49   :  { %3176 = vmatprep.subr.bf16.mxu1 %v4900_v7 }
  0x4a   :  { %4939 = vst [vmem:[#allocation20_spill] sm:$0xff] %v3675_v23 }
  0xc9   :  { %v96_v9 = vpop.xlane.xlu0 %95 }
  0xca   :  { %v101_v10 = vmul.f32 0.03125, %v96_v9 }
  0xcc   :  { %v103_v11 = vadd.f32 1e-05, %v101_v10 }
  0xcd   :  { %v99_v12 = vpop.xlane.xlu0 %98 }
  0xce   :  { %v102_v13 = vmul.f32 0.03125, %v99_v12  ;;  %3241 = vrsqrt.f32 %v103_v11 }
  0xd0   :  { %v104_v14 = vadd.f32 1e-05, %v102_v13 }
  0xd2   :  { %3243 = vrsqrt.f32 %v104_v14 }
  0xd8   :  { %v3242_v15 = vpop.eup %3241 }
  0xd9   :  { %v107_v17 = vmul.f32 %v3242_v15, %v78_v0 }
  0xdc   :  { %v3244_v16 = vpop.eup %3243 }
  0xdd   :  { %v108_v18 = vmul.f32 %v3244_v16, %v79_v1 }
  0xdf   :  { %v109_v19 = vpack.c.bf16 %v108_v18, %v107_v17 }
  0xe1   :  { %3149 = vmatmul.mubr.msk.bf16.vlgmr.msra.gmra.mrb[0].mxu0 %vm93_vm0, %v109_v19 }
  0xe2   :  { %3172 = vmatprep.mubr.msk.bf16.mxu0 %vm3471_vm1, %v4900_v7 }
 0x1b4   :  { %v3613_v29 = vpop.f32.mrb[0].mxu0 }
 0x1b5   :  { %4933 = vst [vmem:[#allocation14_spill] sm:$0xff] %v3613_v29  ;;  %v3150_v33 = vpop.f32.mrb[1].mxu0  ;;  %v177_v34 = vrot.slane %v3613_v29, 2  ;;  %v191_v37 = vrot.slane %v3613_v29, 4  ;;  %v205_v42 = vrot.slane %v3613_v29, 6  ;;  %v175_v53 = vmul.f32 %v174_v32, %v3613_v29 }
 0x1b6   :  { %v3625_v35 = vpop.f32.mrb[2].mxu0 }
 0x1b7   :  { %4936 = vst [vmem:[#allocation17_spill] sm:$0xff] %v3625_v35  ;;  %v178_v38 = vrot.slane %v3625_v35, 2  ;;  %v192_v39 = vrot.slane %v3625_v35, 4  ;;  %v206_v40 = vrot.slane %v3625_v35, 6  ;;  %v3151_v41 = vpop.f32.mrb[3].mxu0  ;;  %v176_v49 = vmul.f32 %v174_v32, %v3625_v35 }
 0x1b8   :  { %v3065_v41 = vld [vmem:[#allocation7] ss:$0 sm:$0xff] }
 0x1b9   :  { %v179_v45 = vsel %vm87_vm3, %v177_v34, %v178_v38  ;;  %v180_v46 = vsel %vm87_vm3, %v178_v38, %v177_v34  ;;  %v193_v47 = vsel %vm85_vm2, %v191_v37, %v192_v39  ;;  %v194_v48 = vsel %vm85_vm2, %v192_v39, %v191_v37 }
 0x1ba   :  { %v181_v50 = vsel %vm87_vm3, 0.0, %v180_v46  ;;  %v188_v51 = vmul.f32 %v186_v36, %v179_v45  ;;  %v195_v52 = vsel %vm85_vm2, 0.0, %v194_v48  ;;  %v207_v55 = vsel %vm83_vm4, %v205_v42, %v206_v40 }
 0x1bb   :  { %v187_v54 = vmul.f32 %v186_v36, %v181_v50  ;;  %v208_v56 = vsel %vm83_vm4, %v206_v40, %v205_v42  ;;  %v202_v58 = vmul.f32 %v200_v43, %v193_v47  ;;  %v201_v60 = vmul.f32 %v200_v43, %v195_v52 }
 0x1bc   :  { %v190_v57 = vadd.f32 %v188_v51, %v176_v49  ;;  %v209_v59 = vsel %vm83_vm4, 0.0, %v208_v56  ;;  %v216_v63 = vmul.f32 %v214_v44, %v207_v55  ;;  %v3690_v34 = vsub.s32 7, %v3605_v25 }
 0x1bd   :  { %v189_v61 = vadd.f32 %v187_v54, %v175_v53  ;;  %v215_v1 = vmul.f32 %v214_v44, %v209_v59  ;;  %v3709_v39 = vsub.s32 4, %v3605_v25  ;;  %v3719_v43 = vsub.s32 6, %v3605_v25 }
 0x1be   :  { %v204_v62 = vadd.f32 %v202_v58, %v190_v57  ;;  %4940 = vst [vmem:[#allocation21_spill] sm:$0xff] %v3690_v34 }
 0x1bf   :  { %v203_v0 = vadd.f32 %v201_v60, %v189_v61  ;;  %4941 = vst [vmem:[#allocation22_spill] sm:$0xff] %v3709_v39  ;;  %4942 = vst [vmem:[#allocation23_spill] sm:$0xff] %v3719_v43 }
 0x1c0   :  { %v218_v3 = vadd.f32 %v216_v63, %v204_v62 }
 0x1c1   :  { %v217_v4 = vadd.f32 %v215_v1, %v203_v0 }
 0x1c2   :  { %v227_v5 = vadd.f32 %v3057_v2, %v218_v3 }
 0x1c3   :  { %v226_v6 = vadd.f32 %v3057_v2, %v217_v4 }
 0x1c4   :  { %v3059_v8 = vmul.f32 -1.442695, %v227_v5 }
 0x1c5   :  { %v3058_v9 = vmul.f32 -1.442695, %v226_v6 }
 0x1c6   :  { %3245 = vpow2.f32 %v3059_v8 }
 0x1c7   :  { %3247 = vpow2.f32 %v3058_v9 }
 0x1d0   :  { %v3246_v10 = vpop.eup %3245 }
 0x1d1   :  { %v3248_v11 = vpop.eup %3247  ;;  %v235_v12 = vadd.f32 1.0, %v3246_v10 }
 0x1d2   :  { %v234_v13 = vadd.f32 1.0, %v3248_v11 }
 0x1d3   :  { %3249 = vrcp.f32 %v235_v12 }
 0x1d4   :  { %3251 = vrcp.f32 %v234_v13 }
 0x1dd   :  { %v3250_v14 = vpop.eup %3249 }
 0x1de   :  { %v3252_v15 = vpop.eup %3251  ;;  %v3659_v16 = vmul.f32 %v3250_v14, %v227_v5 }
 0x1df   :  { %v3661_v17 = vmul.f32 %v3252_v15, %v226_v6 }
 0x1e0   :  { %4937 = vst [vmem:[#allocation18_spill] sm:$0xff] %v3659_v16 }
 0x1e1   :  { %4938 = vst [vmem:[#allocation19_spill] sm:$0xff] %v3661_v17  ;;  %v242_v18 = vpack.c.bf16 %v3659_v16, %v3661_v17 }
 0x1e3   :  { %3161 = vmatmul.mubr.msk.bf16.vlgmr.msra.gmra.mrb[0].mxu1 %vm275_vm5, %v242_v18 }
 0x1e4   :  { %3180 = vmatprep.mubr.msk.bf16.mxu1 %vm3471_vm1, %v4900_v7 }
 0x2b6   :  { %v313_v19 = vpop.f32.mrb[0].mxu1 }
 0x2b7   :  { %v3162_v20 = vpop.f32.mrb[1].mxu1  ;;  %v3669_v21 = vrot.slane %v313_v19, %v3619_v31  ;;  %v3672_v22 = vrot.slane %v313_v19, %v3611_v28  ;;  %v3682_v32 = vrot.slane %v313_v19, %v3675_v23  ;;  %v3685_v33 = vrot.slane %v313_v19, %v3616_v30 }
 0x2b8   :  { %v3677_v24 = vpop.f32.mrb[2].mxu1  ;;  %v3695_v36 = vrot.slane %v313_v19, %v3690_v34  ;;  %v3702_v37 = vrot.slane %v313_v19, %v3608_v26  ;;  %v3713_v40 = vrot.slane %v313_v19, %v3709_v39  ;;  %v3724_v45 = vrot.slane %v313_v19, %v3719_v43 }
 0x2b9   :  { %746 = vbcast.lane.b32.xlu0 %v3669_v21, 328  ;;  %614 = vbcast.lane.b32.xlu1 %v3672_v22, 320  ;;  %v3163_v27 = vpop.f32.mrb[3].mxu1  ;;  %v683_v38 = vrot.slane %v3677_v24, %v3616_v30  ;;  %v699_v42 = vrot.slane %v3677_v24, %v3608_v26  ;;  %v328_v44 = vadd.f32 %v3065_v41, %v3677_v24 }
 0x2ba   :  { %v3729_v47 = vrot.slane %v3677_v24, %v3675_v23  ;;  %v327_v49 = vadd.f32 %v3065_v41, %v313_v19  ;;  %v3737_v51 = vrot.slane %v3677_v24, %v3690_v34  ;;  %v3743_v53 = vrot.slane %v3677_v24, %v3611_v28 }
 0x2bb   :  { %v332_v46 = vmin.f32 %v328_v44, 20.0  ;;  %v691_v56 = vrot.slane %v3677_v24, %v3619_v31  ;;  %v707_v59 = vrot.slane %v3677_v24, %v3709_v39  ;;  %v723_v1 = vrot.slane %v3677_v24, %v3719_v43 }
 0x2bc   :  { %v331_v50 = vmin.f32 %v327_v49, 20.0  ;;  %vm330_vm7 = vcmp.gt.f32.partialorder %v328_v44, 20.0  ;;  %vm329_vm9 = vcmp.gt.f32.partialorder %v327_v49, 20.0 }
 0x2bd   :  { %654 = vbcast.lane.b32.xlu0 %v3682_v32, 320  ;;  %622 = vbcast.lane.b32.xlu1 %v3685_v33, 320  ;;  %v335_v48 = vmul.f32 1.442695, %v332_v46 }
 0x2be   :  { %v333_v52 = vmul.f32 1.442695, %v331_v50 }
 0x2bf   :  { %3253 = vpow2.f32 %v335_v48 }
 0x2c0   :  { %3255 = vpow2.f32 %v333_v52 }
 0x2c1   :  { %758 = vbcast.lane.b32.xlu0 %v3682_v32, 328  ;;  %738 = vbcast.lane.b32.xlu1 %v3672_v22, 328 }
 0x2c5   :  { %670 = vbcast.lane.b32.xlu0 %v3695_v36, 320  ;;  %742 = vbcast.lane.b32.xlu1 %v3685_v33, 328 }
 0x2c9   :  { %766 = vbcast.lane.b32.xlu0 %v3695_v36, 328  ;;  %630 = vbcast.lane.b32.xlu1 %v3669_v21, 320  ;;  %v3254_v54 = vpop.eup %3253 }
 0x2ca   :  { %v346_v55 = vadd.f32 1.0, %v3254_v54  ;;  %v3256_v57 = vpop.eup %3255  ;;  %v349_v60 = vmul.f32 -0.5, %v3254_v54  ;;  %v352_v63 = vand.u32 2147483647, %v3254_v54 }
 0x2cb   :  { %v337_v58 = vadd.f32 1.0, %v3256_v57  ;;  %v340_v3 = vmul.f32 -0.5, %v3256_v57  ;;  %v343_v9 = vand.u32 2147483647, %v3256_v57 }
 0x2cc   :  { %3257 = vlog2.f32 %v346_v55  ;;  %v350_v62 = vadd.f32 1.0, %v349_v60  ;;  %vm353_vm6 = vcmp.lt.f32.partialorder %v352_v63, 0.0004427343 }
 0x2cd   :  { %826 = vbcast.lane.b32.xlu0 %v3669_v21, 336  ;;  %638 = vbcast.lane.b32.xlu1 %v3702_v37, 320  ;;  %3259 = vlog2.f32 %v337_v58  ;;  %v341_v6 = vadd.f32 1.0, %v340_v3  ;;  %vm344_vm8 = vcmp.lt.f32.partialorder %v343_v9, 0.0004427343 }
 0x2ce   :  { %v351_v2 = vmul.f32 %v3254_v54, %v350_v62 }
 0x2cf   :  { %v342_v11 = vmul.f32 %v3256_v57, %v341_v6 }
 0x2d1   :  { %750 = vbcast.lane.b32.xlu1 %v3702_v37, 328  ;;  %686 = vbcast.lane.b32.xlu0 %v683_v38, 320 }
 0x2d5   :  { %646 = vbcast.lane.b32.xlu1 %v3713_v40, 320  ;;  %774 = vbcast.lane.b32.xlu0 %v683_v38, 328 }
 0x2d6   :  { %v3258_v61 = vpop.eup %3257 }
 0x2d7   :  { %v348_v0 = vmul.f32 0.6931472, %v3258_v61  ;;  %v3260_v5 = vpop.eup %3259 }
 0x2d8   :  { %v339_v10 = vmul.f32 0.6931472, %v3260_v5 }
 0x2d9   :  { %754 = vbcast.lane.b32.xlu1 %v3713_v40, 328  ;;  %702 = vbcast.lane.b32.xlu0 %v699_v42, 320  ;;  %v354_v4 = vsel %vm353_vm6, %v351_v2, %v348_v0  ;;  %vm1434_vm6 = vcmask 1045504  }
 0x2da   :  { %v3756_v8 = vsel %vm330_vm7, %v328_v44, %v354_v4  ;;  %v345_v12 = vsel %vm344_vm8, %v342_v11, %v339_v10  ;;  %v3067_v11 = vmul.f32 -1.442695, %v3613_v29 }
 0x2db   :  { %v3761_v13 = vsel %vm329_vm9, %v327_v49, %v345_v12  ;;  %v3770_v14 = vmul.f32 %v3756_v8, %v3659_v16  ;;  %v3068_v12 = vmul.f32 -1.442695, %v3625_v35 }
 0x2dc   :  { %v3778_v15 = vmul.f32 %v3761_v13, %v3661_v17  ;;  %3261 = vpow2.f32 %v3067_v11 }
 0x2dd   :  { %662 = vbcast.lane.b32.xlu1 %v3724_v45, 320  ;;  %782 = vbcast.lane.b32.xlu0 %v699_v42, 328  ;;  %3263 = vpow2.f32 %v3068_v12 }
 0x2e1   :  { %762 = vbcast.lane.b32.xlu1 %v3724_v45, 328  ;;  %718 = vbcast.lane.b32.xlu0 %v3729_v47, 320 }
 0x2e5   :  { %822 = vbcast.lane.b32.xlu1 %v3685_v33, 336  ;;  %790 = vbcast.lane.b32.xlu0 %v3729_v47, 328 }
 0x2e9   :  { %830 = vbcast.lane.b32.xlu1 %v3702_v37, 336  ;;  %734 = vbcast.lane.b32.xlu0 %v3737_v51, 320 }
 0x2ed   :  { %798 = vbcast.lane.b32.xlu0 %v3737_v51, 328  ;;  %678 = vbcast.lane.b32.xlu1 %v3743_v53, 320 }
 0x2f1   :  { %854 = vbcast.lane.b32.xlu0 %v683_v38, 336  ;;  %770 = vbcast.lane.b32.xlu1 %v3743_v53, 328 }
 0x2f5   :  { %862 = vbcast.lane.b32.xlu0 %v699_v42, 336  ;;  %694 = vbcast.lane.b32.xlu1 %v691_v56, 320 }
 0x2f9   :  { %890 = vbcast.lane.b32.xlu0 %v3669_v21, 344  ;;  %778 = vbcast.lane.b32.xlu1 %v691_v56, 328 }
 0x2fd   :  { %918 = vbcast.lane.b32.xlu0 %v683_v38, 344  ;;  %710 = vbcast.lane.b32.xlu1 %v707_v59, 320 }
 0x301   :  { %926 = vbcast.lane.b32.xlu0 %v699_v42, 344  ;;  %786 = vbcast.lane.b32.xlu1 %v707_v59, 328 }
 0x305   :  { %838 = vbcast.lane.b32.xlu0 %v3682_v32, 336  ;;  %726 = vbcast.lane.b32.xlu1 %v723_v1, 320 }
 0x309   :  { %794 = vbcast.lane.b32.xlu1 %v723_v1, 328  ;;  %362 = vrot.lane.b32.xlu0 %v3756_v8, %s3462_s23 }
 0x30d   :  { %858 = vbcast.lane.b32.xlu1 %v691_v56, 336  ;;  %870 = vbcast.lane.b32.xlu0 %v3729_v47, 336 }
 0x311   :  { %360 = vrot.lane.b32.xlu1 %v3761_v13, %s3462_s23  ;;  %902 = vbcast.lane.b32.xlu0 %v3682_v32, 344 }
 0x315   :  { %886 = vbcast.lane.b32.xlu1 %v3685_v33, 344  ;;  %934 = vbcast.lane.b32.xlu0 %v3729_v47, 344 }
 0x319   :  { %894 = vbcast.lane.b32.xlu1 %v3702_v37, 344  ;;  %374 = vrot.lane.b32.xlu0 %v3770_v14, %s3462_s23 }
 0x31d   :  { %922 = vbcast.lane.b32.xlu1 %v691_v56, 344  ;;  %842 = vbcast.lane.b32.xlu0 %v3724_v45, 336 }
 0x321   :  { %372 = vrot.lane.b32.xlu1 %v3778_v15, %s3462_s23  ;;  %850 = vbcast.lane.b32.xlu0 %v3743_v53, 336 }
 0x325   :  { %834 = vbcast.lane.b32.xlu1 %v3713_v40, 336  ;;  %878 = vbcast.lane.b32.xlu0 %v3737_v51, 336 }
 0x329   :  { %866 = vbcast.lane.b32.xlu1 %v707_v59, 336  ;;  %906 = vbcast.lane.b32.xlu0 %v3724_v45, 344 }
 0x32b   :  { %v3786_v18 = vpop.permute.xlu0 %746  ;;  %v3788_v19 = vpop.permute.xlu1 %614 }
 0x32d   :  { %898 = vbcast.lane.b32.xlu1 %v3713_v40, 344  ;;  %914 = vbcast.lane.b32.xlu0 %v3743_v53, 344 }
 0x32f   :  { %v655_v20 = vpop.permute.xlu0 %654  ;;  %v3792_v21 = vpop.permute.xlu1 %622 }
 0x331   :  { %930 = vbcast.lane.b32.xlu1 %v707_v59, 344  ;;  %942 = vbcast.lane.b32.xlu0 %v3737_v51, 344 }
 0x333   :  { %v759_v24 = vpop.permute.xlu0 %758  ;;  %v739_v27 = vpop.permute.xlu1 %738 }
 0x334   :  { %v3848_v23 = vsel %vm275_vm5, %v655_v20, %v759_v24  ;;  %v3874_v24 = vld [vmem:[%s4895_s6] sm:$0xff] }
 0x335   :  { %818 = vbcast.lane.b32.xlu1 %v3672_v22, 336 }
 0x337   :  { %v671_v32 = vpop.permute.xlu0 %670  ;;  %v743_v33 = vpop.permute.xlu1 %742 }
 0x339   :  { %846 = vbcast.lane.b32.xlu1 %v3695_v36, 336 }
 0x33b   :  { %v767_v37 = vpop.permute.xlu0 %766  ;;  %v631_v38 = vpop.permute.xlu1 %630 }
 0x33c   :  { %v3865_v20 = vsel %vm275_vm5, %v671_v32, %v767_v37 }
 0x33d   :  { %874 = vbcast.lane.b32.xlu1 %v723_v1, 336 }
 0x33f   :  { %v3797_v40 = vpop.permute.xlu0 %826  ;;  %v639_v41 = vpop.permute.xlu1 %638 }
 0x341   :  { %882 = vbcast.lane.b32.xlu1 %v3672_v22, 344 }
 0x343   :  { %v751_v42 = vpop.permute.xlu1 %750  ;;  %v687_v44 = vpop.permute.xlu0 %686 }
 0x345   :  { %910 = vbcast.lane.b32.xlu1 %v3695_v36, 344 }
 0x347   :  { %v647_v45 = vpop.permute.xlu1 %646  ;;  %v775_v46 = vpop.permute.xlu0 %774 }
 0x348   :  { %v3882_v32 = vsel %vm275_vm5, %v687_v44, %v775_v46 }
 0x349   :  { %938 = vbcast.lane.b32.xlu1 %v723_v1, 344  ;;  %v3472_v1 = vmov 1966171168  }
 0x34a   :  { %v384_v2 = vunpack.c.l.s4 %v3472_v1 }
 0x34b   :  { %v755_v47 = vpop.permute.xlu1 %754  ;;  %v703_v48 = vpop.permute.xlu0 %702 }
 0x34c   :  { %v385_v5 = vunpack.c.0.s8 %v384_v2 }
 0x34e   :  { %v3838_v10 = vsub.s32 %v385_v5, %v3605_v25 }
 0x34f   :  { %v663_v49 = vpop.permute.xlu1 %662  ;;  %v783_v50 = vpop.permute.xlu0 %782 }
 0x350   :  { %4943 = vst [vmem:[#allocation24_spill] sm:$0xff] %v3838_v10 }
 0x353   :  { %v763_v51 = vpop.permute.xlu1 %762  ;;  %v3801_v52 = vpop.permute.xlu0 %718 }
 0x357   :  { %v3803_v53 = vpop.permute.xlu1 %822  ;;  %v3805_v54 = vpop.permute.xlu0 %790 }
 0x35b   :  { %v3807_v55 = vpop.permute.xlu1 %830  ;;  %v3809_v22 = vpop.permute.xlu0 %734 }
 0x35f   :  { %v799_v56 = vpop.permute.xlu0 %798  ;;  %v3811_v36 = vpop.permute.xlu1 %678 }
 0x363   :  { %v3813_v57 = vpop.permute.xlu0 %854  ;;  %v3815_v58 = vpop.permute.xlu1 %770 }
 0x367   :  { %v3817_v59 = vpop.permute.xlu0 %862  ;;  %v3819_v60 = vpop.permute.xlu1 %694 }
 0x36b   :  { %v3821_v61 = vpop.permute.xlu0 %890  ;;  %v3823_v62 = vpop.permute.xlu1 %778 }
 0x36f   :  { %v3825_v63 = vpop.permute.xlu0 %918  ;;  %v3827_v0 = vpop.permute.xlu1 %710 }
 0x373   :  { %v3829_v3 = vpop.permute.xlu0 %926  ;;  %v3831_v4 = vpop.permute.xlu1 %786 }
 0x377   :  { %v3833_v6 = vpop.permute.xlu0 %838  ;;  %v3835_v9 = vpop.permute.xlu1 %726 }
 0x37b   :  { %v3842_v7 = vpop.permute.xlu1 %794  ;;  %v363_v34 = vpop.permute.xlu0 %362 }
 0x37c   :  { %v367_v1 = vsel %vm275_vm5, %v3756_v8, %v363_v34  ;;  %v3858_v34 = vsel %vm275_vm5, %v3788_v19, %v739_v27  ;;  %v3862_v8 = vsel %vm275_vm5, %v3792_v21, %v743_v33  ;;  %v3879_v21 = vsel %vm275_vm5, %v639_v41, %v751_v42 }
 0x37d   :  { %v431_v43 = vcombine.high %v367_v1, %v367_v1  ;;  %v438_v2 = vrot.slane %v367_v1, %v3838_v10  ;;  %v3893_v41 = vsel %vm275_vm5, %v703_v48, %v783_v50  ;;  %v3896_v42 = vsel %vm275_vm5, %v663_v49, %v763_v51  ;;  %v3914_v51 = vpop.eup %3261 }
 0x37e   :  { %v3910_v48 = vsel %vm275_vm5, %v3809_v22, %v799_v56  ;;  %4944 = vst [vmem:[#allocation25_spill] sm:$0xff] %v3914_v51 }
 0x37f   :  { %v445_v5 = vrot.slane %v431_v43, %v3838_v10  ;;  %v446_v39 = vcombine.high %v438_v2, %v438_v2  ;;  %v454_v25 = vrot.slane %v438_v2, %v3838_v10  ;;  %v3852_v31 = vpop.permute.xlu1 %858  ;;  %v3854_v30 = vpop.permute.xlu0 %870  ;;  %v3869_v43 = vsel %vm275_vm5, %v631_v38, %v3786_v18 }
 0x380   :  { %v3885_v18 = vsel %vm275_vm5, %v647_v45, %v755_v47 }
 0x381   :  { %v447_v11 = vcombine.high %v445_v5, %v445_v5  ;;  %v461_v19 = vrot.slane %v445_v5, %v3838_v10  ;;  %v468_v27 = vrot.slane %v446_v39, %v3838_v10  ;;  %v476_v12 = vcombine.high %v454_v25, %v454_v25 }
 0x382   :  { %v515_v33 = vrot.slane %v454_v25, %v3611_v28 }
 0x383   :  { %v475_v37 = vrot.slane %v447_v11, %v3838_v10  ;;  %v477_v38 = vcombine.high %v461_v19, %v461_v19  ;;  %v478_v1 = vcombine.high %v468_v27, %v468_v27  ;;  %v519_v2 = vrot.slane %v468_v27, %v3611_v28  ;;  %v361_v5 = vpop.permute.xlu1 %360  ;;  %v3890_v39 = vpop.permute.xlu0 %902 }
 0x384   :  { %v523_v44 = vrot.slane %v476_v12, %v3611_v28  ;;  %v568_v45 = vmul.f32 %v515_v33, %v3874_v24  ;;  %v531_v47 = vrot.slane %v461_v19, %v3611_v28  ;;  %v3906_v27 = vsel %vm275_vm5, %v3801_v52, %v3805_v54  ;;  %v3929_v33 = vpop.eup %3263 }
 0x385   :  { %v479_v25 = vcombine.high %v475_v37, %v475_v37  ;;  %v527_v46 = vrot.slane %v478_v1, %v3611_v28  ;;  %v535_v11 = vrot.slane %v475_v37, %v3611_v28  ;;  %v569_v49 = vmul.f32 %v519_v2, %v3874_v24  ;;  %4945 = vst [vmem:[#allocation26_spill] sm:$0xff] %v3929_v33 }
 0x386   :  { %v570_v50 = vmul.f32 %v523_v44, %v3874_v24  ;;  %v3919_v19 = vsel %vm275_vm5, %v3811_v36, %v3815_v58  ;;  %v539_v12 = vrot.slane %v477_v38, %v3611_v28  ;;  %v366_v54 = vsel %vm275_vm5, %v3761_v13, %v361_v5 }
 0x387   :  { %v571_v52 = vmul.f32 %v527_v46, %v3874_v24  ;;  %v3925_v22 = vpop.permute.xlu1 %886  ;;  %v3927_v56 = vpop.permute.xlu0 %934  ;;  %v3934_v37 = vsel %vm275_vm5, %v3797_v40, %v3821_v61  ;;  %v3939_v36 = vsel %vm275_vm5, %v3819_v60, %v3823_v62  ;;  %v3944_v13 = vsel %vm275_vm5, %v3813_v57, %v3825_v63 }
 0x388   :  { %v592_v58 = vmul.f32 1.442695, %v568_v45  ;;  %v543_v38 = vrot.slane %v479_v25, %v3611_v28  ;;  %v572_v1 = vmul.f32 %v531_v47, %v3874_v24  ;;  %v573_v2 = vmul.f32 %v535_v11, %v3874_v24 }
 0x389   :  { %v594_v5 = vmul.f32 1.442695, %v569_v49  ;;  %v3952_v40 = vsel %vm275_vm5, %v3817_v59, %v3829_v3  ;;  %v596_v60 = vmul.f32 1.442695, %v570_v50  ;;  %v382_v61 = vcombine.high %v366_v54, %v366_v54 }
 0x38a   :  { %4946 = vst [vmem:[#allocation27_spill] sm:$0xff] %v3952_v40  ;;  %v389_v62 = vrot.slane %v366_v54, %v3838_v10  ;;  %v3958_v57 = vsel %vm275_vm5, %v3827_v0, %v3831_v4  ;;  %v3963_v63 = vsel %vm275_vm5, %v3835_v9, %v3842_v7  ;;  %v574_v44 = vmul.f32 %v539_v12, %v3874_v24 }
 0x38b   :  { %v598_v45 = vmul.f32 1.442695, %v571_v52  ;;  %v3966_v25 = vpop.permute.xlu1 %894  ;;  %v375_v59 = vpop.permute.xlu0 %374  ;;  %3265 = vpow2.f32 %v592_v58  ;;  %v396_v3 = vrot.slane %v382_v61, %v3838_v10  ;;  %v575_v0 = vmul.f32 %v543_v38, %v3874_v24 }
 0x38c   :  { %v397_v46 = vcombine.high %v389_v62, %v389_v62  ;;  %v405_v47 = vrot.slane %v389_v62, %v3838_v10  ;;  %3267 = vpow2.f32 %v594_v5  ;;  %v600_v4 = vmul.f32 1.442695, %v572_v1 }
 0x38d   :  { %v602_v11 = vmul.f32 1.442695, %v573_v2  ;;  %3269 = vpow2.f32 %v596_v60  ;;  %v398_v7 = vcombine.high %v396_v3, %v396_v3  ;;  %v412_v9 = vrot.slane %v396_v3, %v3838_v10 }
 0x38e   :  { %v419_v49 = vrot.slane %v397_v46, %v3838_v10  ;;  %3271 = vpow2.f32 %v598_v45  ;;  %v604_v50 = vmul.f32 1.442695, %v574_v44  ;;  %v427_v12 = vcombine.high %v405_v47, %v405_v47 }
 0x38f   :  { %v483_v52 = vrot.slane %v405_v47, %v3611_v28  ;;  %v3974_v54 = vpop.permute.xlu1 %922  ;;  %v3976_v58 = vpop.permute.xlu0 %842  ;;  %v426_v38 = vrot.slane %v398_v7, %v3838_v10  ;;  %v428_v5 = vcombine.high %v412_v9, %v412_v9  ;;  %v379_v2 = vsel %vm275_vm5, %v3770_v14, %v375_v59 }
 0x390   :  { %v429_v1 = vcombine.high %v419_v49, %v419_v49  ;;  %v487_v60 = vrot.slane %v419_v49, %v3611_v28  ;;  %v491_v61 = vrot.slane %v427_v12, %v3611_v28  ;;  %v499_v62 = vrot.slane %v412_v9, %v3611_v28 }
 0x391   :  { %v560_v44 = vmul.f32 %v483_v52, %v3874_v24  ;;  %v430_v45 = vcombine.high %v426_v38, %v426_v38  ;;  %v503_v46 = vrot.slane %v426_v38, %v3611_v28  ;;  %v507_v47 = vrot.slane %v428_v5, %v3611_v28 }
 0x392   :  { %v495_v3 = vrot.slane %v429_v1, %v3611_v28  ;;  %v561_v7 = vmul.f32 %v487_v60, %v3874_v24  ;;  %v562_v26 = vmul.f32 %v491_v61, %v3874_v24  ;;  %v1011_v59 = vcombine.high %v379_v2, %v379_v2 }
 0x393   :  { %v576_v14 = vmul.f32 1.442695, %v560_v44  ;;  %v373_v49 = vpop.permute.xlu1 %372  ;;  %3273 = vpow2.f32 %v600_v4  ;;  %v606_v12 = vmul.f32 1.442695, %v575_v0  ;;  %v564_v52 = vmul.f32 %v499_v62, %v3874_v24  ;;  %v3994_v5 = vpop.permute.xlu0 %850 }
 0x394   :  { %v563_v9 = vmul.f32 %v495_v3, %v3874_v24  ;;  %v511_v16 = vrot.slane %v430_v45, %v3611_v28  ;;  %v565_v1 = vmul.f32 %v503_v46, %v3874_v24  ;;  %v578_v38 = vmul.f32 1.442695, %v561_v7 }
 0x395   :  { %3275 = vpow2.f32 %v576_v14  ;;  %v3996_v60 = vpop.eup %3265  ;;  %v566_v61 = vmul.f32 %v507_v47, %v3874_v24  ;;  %v580_v44 = vmul.f32 1.442695, %v562_v26  ;;  %v4002_v0 = vsel %vm275_vm5, %v3833_v6, %v3890_v39 }
 0x396   :  { %3277 = vpow2.f32 %v602_v11  ;;  %v4004_v4 = vpop.eup %3267  ;;  %v582_v62 = vmul.f32 1.442695, %v563_v9  ;;  %v1018_v45 = vrot.slane %v379_v2, %v3838_v10  ;;  %v1025_v3 = vrot.slane %v1011_v59, %v3838_v10 }
 0x397   :  { %3279 = vpow2.f32 %v578_v38  ;;  %v4008_v46 = vpop.permute.xlu1 %834  ;;  %v4010_v7 = vpop.eup %3269  ;;  %v584_v11 = vmul.f32 1.442695, %v564_v52  ;;  %v4015_v26 = vsel %vm275_vm5, %v3803_v53, %v3925_v22  ;;  %v378_v6 = vsel %vm275_vm5, %v3778_v15, %v373_v49 }
 0x398   :  { %3281 = vpow2.f32 %v604_v50  ;;  %v4019_v39 = vpop.eup %3271  ;;  %v567_v2 = vmul.f32 %v511_v16, %v3874_v24  ;;  %v586_v47 = vmul.f32 1.442695, %v565_v1  ;;  %v1026_v14 = vcombine.high %v1018_v45, %v1018_v45  ;;  %v4027_v15 = vpop.permute.xlu0 %878 }
 0x399   :  { %3283 = vpow2.f32 %v606_v12  ;;  %v1027_v59 = vcombine.high %v1025_v3, %v1025_v3  ;;  %v962_v9 = vcombine.high %v378_v6, %v378_v6  ;;  %v969_v50 = vrot.slane %v378_v6, %v3838_v10 }
 0x39a   :  { %3285 = vpow2.f32 %v580_v44  ;;  %v588_v52 = vmul.f32 1.442695, %v566_v61  ;;  %v4024_v53 = vrot.slane %v1018_v45, %v3838_v10  ;;  %v1048_v22 = vrot.slane %v1026_v14, %v3838_v10 }
 0x39b   :  { %3287 = vpow2.f32 %v582_v62  ;;  %v4029_v49 = vpop.permute.xlu1 %866  ;;  %v4034_v16 = vsel %vm275_vm5, %v3854_v30, %v3927_v56  ;;  %v4037_v24 = vrot.slane %v1025_v3, %v3838_v10  ;;  %v976_v12 = vrot.slane %v962_v9, %v3838_v10 }
 0x39c   :  { %3289 = vpow2.f32 %v584_v11  ;;  %4947 = vst [vmem:[#allocation28_spill] sm:$0xff] %v4034_v16  ;;  %v590_v1 = vmul.f32 1.442695, %v567_v2  ;;  %v4043_v38 = vsel %vm275_vm5, %v3807_v55, %v3966_v25  ;;  %v4048_v61 = vsel %vm275_vm5, %v3852_v31, %v3974_v54  ;;  %v907_v29 = vpop.permute.xlu0 %906 }
 0x39d   :  { %3291 = vpow2.f32 %v586_v47  ;;  %4948 = vst [vmem:[#allocation29_spill] sm:$0xff] %v4048_v61  ;;  %v4050_v44 = vpop.eup %3273  ;;  %v4053_v30 = vrot.slane %v1027_v59, %v3838_v10  ;;  %v977_v56 = vcombine.high %v969_v50, %v969_v50  ;;  %v978_v62 = vcombine.high %v976_v12, %v976_v12 }
 0x39e   :  { %v985_v45 = vrot.slane %v969_v50, %v3838_v10  ;;  %3293 = vpow2.f32 %v588_v52  ;;  %v1056_v55 = vcombine.high %v4024_v53, %v4024_v53  ;;  %v1058_v25 = vcombine.high %v1048_v22, %v1048_v22 }
 0x39f   :  { %v3276_v3 = vpop.eup %3275  ;;  %v992_v11 = vrot.slane %v976_v12, %v3838_v10  ;;  %v899_v6 = vpop.permute.xlu1 %898  ;;  %v999_v2 = vrot.slane %v977_v56, %v3838_v10  ;;  %v1006_v47 = vrot.slane %v978_v62, %v3838_v10  ;;  %v1099_v50 = vrot.slane %v1048_v22, %v3611_v28 }
 0x3a0   :  { %v4059_v31 = vpop.eup %3277  ;;  %v1007_v14 = vcombine.high %v985_v45, %v985_v45  ;;  %v1156_v9 = vmul.f32 0.0, %v3276_v3  ;;  %v1063_v17 = vrot.slane %v985_v45, %v3611_v28  ;;  %v1095_v56 = vrot.slane %v4024_v53, %v3611_v28 }
 0x3a1   :  { %v3280_v59 = vpop.eup %3279  ;;  %v1008_v52 = vcombine.high %v992_v11, %v992_v11  ;;  %v1009_v51 = vcombine.high %v999_v2, %v999_v2  ;;  %v1010_v33 = vcombine.high %v1006_v47, %v1006_v47  ;;  %v1067_v54 = vrot.slane %v999_v2, %v3611_v28 }
 0x3a2   :  { %v4067_v12 = vpop.eup %3281  ;;  %v1157_v35 = vmul.f32 0.0, %v3280_v59  ;;  %v1107_v62 = vrot.slane %v1058_v25, %v3611_v28  ;;  %v1071_v22 = vrot.slane %v1007_v14, %v3611_v28  ;;  %v1140_v3 = vmul.f32 %v1063_v17, %v3858_v34 }
 0x3a3   :  { %4949 = vst [vmem:[#allocation30_spill] sm:$0xff] %v4067_v12  ;;  %v4070_v61 = vpop.eup %3283  ;;  %v931_v45 = vpop.permute.xlu1 %930  ;;  %v1075_v16 = vrot.slane %v1009_v51, %v3611_v28  ;;  %v1079_v59 = vrot.slane %v992_v11, %v3611_v28  ;;  %v1083_v12 = vrot.slane %v1006_v47, %v3611_v28  ;;  %v1141_v2 = vmul.f32 %v1067_v54, %v3862_v8 }
 0x3a4   :  { %4950 = vst [vmem:[#allocation31_spill] sm:$0xff] %v4070_v61  ;;  %v3286_v10 = vpop.eup %3285  ;;  %3295 = vpow2.f32 %v590_v1  ;;  %v1091_v53 = vrot.slane %v1010_v33, %v3611_v28  ;;  %v4082_v40 = vadd.f32 %v1156_v9, %v1140_v3  ;;  %v1087_v25 = vrot.slane %v1008_v52, %v3611_v28  ;;  %v915_v9 = vpop.permute.xlu0 %914 }
 0x3a5   :  { %v3288_v61 = vpop.eup %3287  ;;  %v1103_v17 = vrot.slane %v1056_v55, %v3611_v28  ;;  %v1115_v34 = vrot.slane %v4053_v30, %v3611_v28  ;;  %v4089_v51 = vmul.f32 %v1099_v50, %v3882_v32  ;;  %v1159_v11 = vadd.f32 %v1157_v35, %v1141_v2 }
 0x3a6   :  { %v3290_v14 = vpop.eup %3289  ;;  %v4092_v8 = vmul.f32 %v1107_v62, %v3893_v41  ;;  %v1142_v33 = vmul.f32 %v1071_v22, %v3869_v43  ;;  %v1184_v1 = vmul.f32 %v3286_v10, %v4082_v40  ;;  %v950_v54 = vsel %vm275_vm5, %v3976_v58, %v907_v29 }
 0x3a7   :  { %v3292_v47 = vpop.eup %3291  ;;  %v819_v55 = vpop.permute.xlu1 %818  ;;  %v1143_v52 = vmul.f32 %v1075_v16, %v3879_v21  ;;  %v1145_v3 = vmul.f32 %v1083_v12, %v3848_v23  ;;  %v1185_v32 = vmul.f32 %v3288_v61, %v1159_v11  ;;  %v1144_v35 = vmul.f32 %v1079_v59, %v3885_v18 }
 0x3a8   :  { %v3294_v50 = vpop.eup %3293  ;;  %v1147_v41 = vmul.f32 %v1091_v53, %v3865_v20  ;;  %v1146_v62 = vmul.f32 %v1087_v25, %v3896_v42  ;;  %v1186_v43 = vadd.f32 %v1184_v1, %v1142_v33  ;;  %v948_v10 = vsel %vm275_vm5, %v4008_v46, %v899_v6  ;;  %v943_v12 = vpop.permute.xlu0 %942 }
 0x3a9   :  { %v1187_v22 = vadd.f32 %v1185_v32, %v1143_v52  ;;  %v1148_v29 = vmul.f32 %v1095_v56, %v3919_v19  ;;  %v952_v21 = vsel %vm275_vm5, %v3994_v5, %v915_v9  ;;  %v1161_v23 = vmul.f32 %v1159_v11, %v4015_v26 }
 0x3aa   :  { %v1212_v58 = vmul.f32 %v3290_v14, %v1186_v43  ;;  %v4111_v18 = vsel %vm275_vm5, %v4029_v49, %v931_v45  ;;  %v1059_v20 = vcombine.high %v4053_v30, %v4053_v30  ;;  %v1188_v16 = vmul.f32 %v1186_v43, %v3934_v37 }
 0x3ab   :  { %v847_v42 = vpop.permute.xlu1 %846  ;;  %v1213_v46 = vmul.f32 %v3292_v47, %v1187_v22  ;;  %v1111_v19 = vrot.slane %v4037_v24, %v3611_v28  ;;  %v1168_v61 = vrot.slane %v1161_v23, 4  ;;  %v1189_v5 = vmul.f32 %v1187_v22, %v4043_v38 }
 0x3ac   :  { %v1214_v6 = vadd.f32 %v1212_v58, %v1144_v35  ;;  %v1150_v26 = vmul.f32 %v1103_v17, %v3939_v36  ;;  %v1190_v56 = vrot.slane %v1188_v16, 4  ;;  %v4951_v49 = vcombine.high %v4037_v24, %v4037_v24 }
 0x3ad   :  { %v1215_v45 = vadd.f32 %v1213_v46, %v1145_v3  ;;  %v4125_v37 = vmul.f32 %v1115_v34, %v3906_v27  ;;  %v1169_v59 = vadd.f32 %v1168_v61, %v1161_v23  ;;  %v1196_v2 = vrot.slane %v1189_v5, 4 }
 0x3ae   :  { %v1119_v30 = vrot.slane %v4951_v49, %v3611_v28  ;;  %v3296_v53 = vpop.eup %3295  ;;  %v1240_v25 = vmul.f32 %v3294_v50, %v1214_v6  ;;  %v1216_v14 = vmul.f32 %v1214_v6, %v948_v10  ;;  %v1123_v38 = vrot.slane %v1059_v20, %v3611_v28 }
 0x3af   :  { %v4128_v11 = vpop.permute.xlu1 %874  ;;  %v1191_v36 = vadd.f32 %v1190_v56, %v1188_v16  ;;  %v1241_v17 = vmul.f32 %v3296_v53, %v1215_v45  ;;  %v4132_v47 = vsel %vm275_vm5, %v4027_v15, %v943_v12  ;;  %v1217_v24 = vmul.f32 %v1215_v45, %v4002_v0 }
 0x3b0   :  { %v1170_v33 = vrot.slane %v1169_v59, 2  ;;  %v1242_v27 = vadd.f32 %v1240_v25, %v1146_v62  ;;  %v1152_v34 = vmul.f32 %v1111_v19, %v3958_v57  ;;  %v4137_v9 = vmul.f32 %v1119_v30, %v3963_v63 }
 0x3b1   :  { %v1192_v1 = vrot.slane %v1191_v36, 2  ;;  %v1243_v52 = vadd.f32 %v1241_v17, %v1147_v41  ;;  %v1218_v3 = vrot.slane %v1216_v14, 4  ;;  %v1224_v32 = vrot.slane %v1217_v24, 4 }
 0x3b2   :  { %v1197_v35 = vadd.f32 %v1196_v2, %v1189_v5  ;;  %v1244_v50 = vmul.f32 %v1242_v27, %v950_v54  ;;  %v1268_v43 = vmul.f32 %v3996_v60, %v1242_v27  ;;  %v4141_v15 = vmul.f32 %v1123_v38, %v3910_v48  ;;  %v4952_v27 = vld [vmem:[#allocation27_spill] sm:$0xff] }
 0x3b3   :  { %v1193_v10 = vadd.f32 %v1192_v1, %v1191_v36  ;;  %v883_v0 = vpop.permute.xlu1 %882  ;;  %v1269_v62 = vmul.f32 %v4004_v4, %v1243_v52  ;;  %v1225_v22 = vadd.f32 %v1224_v32, %v1217_v24  ;;  %v1171_v23 = vadd.f32 %v1170_v33, %v1169_v59 }
 0x3b4   :  { %v944_v57 = vsel %vm275_vm5, %v819_v55, %v883_v0  ;;  %v1246_v63 = vrot.slane %v1244_v50, 4  ;;  %v1270_v58 = vadd.f32 %v1268_v43, %v1148_v29  ;;  %v4146_v16 = vadd.f32 %v1218_v3, %v1216_v14 }
 0x3b5   :  { %v1194_v41 = vrot.slane %v1193_v10, 1  ;;  %v1160_v20 = vmul.f32 %v4082_v40, %v944_v57  ;;  %v1271_v60 = vadd.f32 %v1269_v62, %v4089_v51  ;;  %v1226_v54 = vrot.slane %v1225_v22, 2 }
 0x3b6   :  { %v1198_v48 = vrot.slane %v1197_v35, 2  ;;  %v1247_v46 = vadd.f32 %v1246_v63, %v1244_v50  ;;  %v1296_v19 = vmul.f32 %v4010_v7, %v1270_v58  ;;  %v1272_v61 = vmul.f32 %v1270_v58, %v952_v21 }
 0x3b7   :  { %v4150_v4 = vadd.f32 %v1194_v41, %v1193_v10  ;;  %v911_v55 = vpop.permute.xlu1 %910  ;;  %v1297_v5 = vmul.f32 %v4019_v39, %v1271_v60  ;;  %v1162_v6 = vrot.slane %v1160_v20, 4  ;;  %v1227_v12 = vadd.f32 %v1226_v54, %v1225_v22 }
 0x3b8   :  { %v951_v29 = vsel %vm275_vm5, %v847_v42, %v911_v55  ;;  %v1274_v40 = vrot.slane %v1272_v61, 4  ;;  %v1298_v56 = vadd.f32 %v1296_v19, %v1150_v26  ;;  %v1248_v49 = vrot.slane %v1247_v46, 2 }
 0x3b9   :  { %1204 = vrot.lane.b32.xlu0 %v4150_v4, %s3462_s23  ;;  %v1245_v51 = vmul.f32 %v1243_v52, %v951_v29  ;;  %v1299_v30 = vadd.f32 %v1297_v5, %v4092_v8  ;;  %v1163_v7 = vadd.f32 %v1162_v6, %v1160_v20  ;;  %v1228_v21 = vrot.slane %v1227_v12, 1  ;;  %v4953_v52 = vld [vmem:[#allocation30_spill] sm:$0xff]  ;;  %v4956_v6 = vld [vmem:[#allocation29_spill] sm:$0xff] }
 0x3ba   :  { %v1273_v45 = vmul.f32 %v1271_v60, %v3944_v13  ;;  %v1275_v59 = vadd.f32 %v1274_v40, %v1272_v61  ;;  %v1324_v39 = vmul.f32 %v4050_v44, %v1298_v56  ;;  %v1249_v2 = vadd.f32 %v1248_v49, %v1247_v46  ;;  %v4955_v46 = vld [vmem:[#allocation28_spill] sm:$0xff]  ;;  %v4957_v49 = vld [vmem:[#allocation26_spill] sm:$0xff] }
 0x3bb   :  { %v1172_v53 = vrot.slane %v1171_v23, 1  ;;  %v1325_v42 = vmul.f32 %v4059_v31, %v1299_v30  ;;  %v4160_v25 = vadd.f32 %v1228_v21, %v1227_v12  ;;  %v1164_v26 = vrot.slane %v1163_v7, 2  ;;  %v939_v13 = vpop.permute.xlu1 %938 }
 0x3bc   :  { %v1199_v14 = vadd.f32 %v1198_v48, %v1197_v35  ;;  %v1326_v38 = vadd.f32 %v1324_v39, %v1152_v34  ;;  %v1252_v36 = vrot.slane %v1245_v51, 4  ;;  %v1250_v17 = vrot.slane %v1249_v2, 1  ;;  %v4954_v35 = vld [vmem:[#allocation31_spill] sm:$0xff] }
 0x3bd   :  { %v1276_v24 = vrot.slane %v1275_v59, 2  ;;  %v1327_v8 = vadd.f32 %v1325_v42, %v4125_v37  ;;  %1234 = vrot.lane.b32.xlu0 %v4160_v25, %s3462_s23  ;;  %v1165_v33 = vadd.f32 %v1164_v26, %v1163_v7  ;;  %v1280_v44 = vrot.slane %v1273_v45, 4 }
 0x3be   :  { %v1301_v1 = vmul.f32 %v1299_v30, %v4952_v27  ;;  %v1328_v31 = vmul.f32 %v1326_v38, %v4111_v18  ;;  %v1352_v3 = vmul.f32 %v4953_v52, %v1326_v38  ;;  %v4168_v32 = vadd.f32 %v1250_v17, %v1249_v2 }
 0x3bf   :  { %v1277_v34 = vadd.f32 %v1276_v24, %v1275_v59  ;;  %v1353_v50 = vmul.f32 %v4954_v35, %v1327_v8  ;;  %v1166_v43 = vrot.slane %v1165_v33, 1  ;;  %v1281_v10 = vadd.f32 %v1280_v44, %v1273_v45 }
 0x3c0   :  { %v1308_v37 = vrot.slane %v1301_v1, 4  ;;  %v1253_v0 = vadd.f32 %v1252_v36, %v1245_v51  ;;  %v958_v62 = vsel %vm275_vm5, %v4128_v11, %v939_v13  ;;  %v4173_v22 = vadd.f32 %v1172_v53, %v1171_v23 }
 0x3c1   :  { %v1278_v57 = vrot.slane %v1277_v34, 1  ;;  %v1355_v63 = vadd.f32 %v1353_v50, %v4141_v15  ;;  %1260 = vrot.lane.b32.xlu0 %v4168_v32, %s3462_s23  ;;  %v4178_v18 = vadd.f32 %v1166_v43, %v1165_v33  ;;  %v1282_v58 = vrot.slane %v1281_v10, 2 }
 0x3c2   :  { %v1309_v41 = vadd.f32 %v1308_v37, %v1301_v1  ;;  %v1330_v20 = vrot.slane %v1328_v31, 4  ;;  %v1354_v60 = vadd.f32 %v1352_v3, %v4137_v9  ;;  %v1200_v48 = vrot.slane %v1199_v14, 1 }
 0x3c3   :  { %v4181_v54 = vadd.f32 %v1278_v57, %v1277_v34  ;;  %v1357_v11 = vmul.f32 %v1355_v63, %v4132_v47  ;;  %1176 = vrot.lane.b32.xlu1 %v4178_v18, %s3462_s23  ;;  %v1283_v23 = vadd.f32 %v1282_v58, %v1281_v10  ;;  %v1329_v19 = vmul.f32 %v1327_v8, %v4955_v46  ;;  %v4958_v34 = vld [vmem:[#allocation25_spill] sm:$0xff] }
 0x3c4   :  { %v1310_v15 = vrot.slane %v1309_v41, 2  ;;  %v1356_v61 = vmul.f32 %v1354_v60, %v958_v62  ;;  %v1220_v55 = vrot.slane %v4146_v16, 2  ;;  %v1254_v5 = vrot.slane %v1253_v0, 2  ;;  %v3227_v62 = vld [vmem:[%s4897_s8] sm:$0xff]   ;;  %v3228_v60 = vld [vmem:[%s4897_s8 + $0x8] sm:$0xff]   ;;  %v3229_v46 = vld [vmem:[%s4897_s8 + $0x10] sm:$0xff]  }
 0x3c5   :  { %v1300_v29 = vmul.f32 %v1298_v56, %v4956_v6  ;;  %v1364_v12 = vrot.slane %v1357_v11, 4  ;;  %1288 = vrot.lane.b32.xlu0 %v4181_v54, %s3462_s23  ;;  %v1284_v9 = vrot.slane %v1283_v23, 1  ;;  %v1336_v47 = vrot.slane %v1329_v19, 4  ;;  %3165 = vmatpush3.bf16.msra.mxu0 %v3227_v62 }
 0x3c6   :  { %v1311_v40 = vadd.f32 %v1310_v15, %v1309_v41  ;;  %v1221_v51 = vadd.f32 %v1220_v55, %v4146_v16  ;;  %v1457_v30 = vadd.f32 1.0, %v4957_v49  ;;  %v1331_v39 = vadd.f32 %v1330_v20, %v1328_v31  ;;  %v3230_v55 = vld [vmem:[%s4897_s8 + $0x18] sm:$0xff]  }
 0x3c7   :  { %v1302_v7 = vrot.slane %v1300_v29, 4  ;;  %v1365_v21 = vadd.f32 %v1364_v12, %v1357_v11  ;;  %v4193_v45 = vadd.f32 %v1284_v9, %v1283_v23  ;;  %1178 = vrot.lane.b32.xlu1 %v4173_v22, %s3462_s23  ;;  %v1337_v56 = vadd.f32 %v1336_v47, %v1329_v19 }
 0x3c8   :  { %v1312_v59 = vrot.slane %v1311_v40, 1  ;;  %v1358_v2 = vrot.slane %v1356_v61, 4  ;;  %v1255_v53 = vadd.f32 %v1254_v5, %v1253_v0  ;;  %v4199_v26 = vadd.f32 %v1200_v48, %v1199_v14  ;;  %v4960_v48 = vld [vmem:[#allocation17_spill] sm:$0xff]  ;;  %v4961_v5 = vld [vmem:[#allocation14_spill] sm:$0xff] }
 0x3c9   :  { %v1303_v42 = vadd.f32 %v1302_v7, %v1300_v29  ;;  %1290 = vrot.lane.b32.xlu0 %v4193_v45, %s3462_s23  ;;  %v1338_v16 = vrot.slane %v1337_v56, 2  ;;  %v1222_v38 = vrot.slane %v1221_v51, 1  ;;  %v1366_v36 = vrot.slane %v1365_v21, 2 }
 0x3ca   :  { %3297 = vrcp.f32 %v1457_v30  ;;  %v4201_v24 = vadd.f32 %v1312_v59, %v1311_v40  ;;  %v1359_v33 = vadd.f32 %v1358_v2, %v1356_v61  ;;  %v1256_v44 = vrot.slane %v1255_v53, 1 }
 0x3cb   :  { %v1304_v17 = vrot.slane %v1303_v42, 2  ;;  %1206 = vrot.lane.b32.xlu1 %v4199_v26, %s3462_s23  ;;  %v1339_v8 = vadd.f32 %v1338_v16, %v1337_v56  ;;  %v1367_v13 = vadd.f32 %v1366_v36, %v1365_v21  ;;  %v1223_v14 = vadd.f32 %v1222_v38, %v1221_v51 }
 0x3cc   :  { %v1332_v31 = vrot.slane %v1331_v39, 2  ;;  %v1456_v35 = vadd.f32 1.0, %v4958_v34  ;;  %v1257_v50 = vadd.f32 %v1256_v44, %v1255_v53  ;;  %v1360_v37 = vrot.slane %v1359_v33, 2 }
 0x3cd   :  { %1318 = vrot.lane.b32.xlu0 %v4201_v24, %s3462_s23  ;;  %v1340_v27 = vrot.slane %v1339_v8, 1  ;;  %v1305_v1 = vadd.f32 %v1304_v17, %v1303_v42  ;;  %v1368_v3 = vrot.slane %v1367_v13, 1  ;;  %v4959_v20 = vmov 0.0  }
 0x3ce   :  { %v1333_v10 = vadd.f32 %v1332_v31, %v1331_v39  ;;  %3299 = vrcp.f32 %v1456_v35  ;;  %v1361_v41 = vadd.f32 %v1360_v37, %v1359_v33  ;;  %3166 = vmatprep.subr.bf16.mxu0 %v4959_v20 }
 0x3cf   :  { %v4207_v52 = vadd.f32 %v1340_v27, %v1339_v8  ;;  %1232 = vrot.lane.b32.xlu1 %v1223_v14, %s3462_s23  ;;  %v1306_v43 = vrot.slane %v1305_v1, 1  ;;  %v4213_v0 = vadd.f32 %v1368_v3, %v1367_v13  ;;  %3167 = vmatpush3.bf16.msra.mxu0 %v3228_v60 }
 0x3d0   :  { %v1334_v58 = vrot.slane %v1333_v10, 1  ;;  %v1362_v15 = vrot.slane %v1361_v41, 1  ;;  %3168 = vmatprep.subr.bf16.mxu0 %v4959_v20 }
 0x3d1   :  { %1346 = vrot.lane.b32.xlu0 %v4207_v52, %s3462_s23  ;;  %v1307_v63 = vadd.f32 %v1306_v43, %v1305_v1 }
 0x3d2   :  { %v1335_v23 = vadd.f32 %v1334_v58, %v1333_v10  ;;  %v4233_v19 = vadd.f32 %v1362_v15, %v1361_v41 }
 0x3d3   :  { %1262 = vrot.lane.b32.xlu1 %v1257_v50, %s3462_s23  ;;  %3169 = vmatpush3.bf16.msra.mxu0 %v3229_v46 }
 0x3d4   :  { %v3298_v57 = vpop.eup %3297  ;;  %3170 = vmatprep.subr.bf16.mxu0 %v4959_v20 }
 0x3d5   :  { %1374 = vrot.lane.b32.xlu0 %v4213_v0, %s3462_s23  ;;  %v1463_v11 = vmul.f32 %v3298_v57, %v4960_v48 }
 0x3d7   :  { %1316 = vrot.lane.b32.xlu1 %v1307_v63, %s3462_s23  ;;  %3171 = vmatpush3.bf16.msra.mxu0 %v3230_v55 }
 0x3d8   :  { %v3300_v61 = vpop.eup %3299  ;;  %3184 = vmatprep.subr.bf16.mxu0 %v4959_v20 }
 0x3d9   :  { %1468 = vrot.lane.b32.xlu0 %v1463_v11, %s3462_s23  ;;  %v1462_v6 = vmul.f32 %v3300_v61, %v4961_v5  ;;  %v4962_v5 = vld [vmem:[#allocation19_spill] sm:$0xff] }
 0x3db   :  { %1344 = vrot.lane.b32.xlu1 %v1335_v23, %s3462_s23 }
 0x3df   :  { %1372 = vrot.lane.b32.xlu1 %v4233_v19, %s3462_s23 }
 0x3e3   :  { %1466 = vrot.lane.b32.xlu1 %v1462_v6, %s3462_s23 }
 0x42b   :  { %v1205_v29 = vpop.permute.xlu0 %1204 }
 0x42c   :  { %v1210_v2 = vadd.f32 %v1205_v29, %v4150_v4  ;;  %v4963_v29 = vld [vmem:[#allocation18_spill] sm:$0xff] }
 0x42e   :  { %v1388_v4 = vrot.slane %v1210_v2, 6 }
 0x42f   :  { %v1235_v12 = vpop.permute.xlu0 %1234 }
 0x430   :  { %v1239_v17 = vadd.f32 %v1235_v12, %v4160_v25 }
 0x433   :  { %v1261_v9 = vpop.permute.xlu0 %1260 }
 0x434   :  { %v1266_v8 = vadd.f32 %v1261_v9, %v4168_v32  ;;  %v1396_v32 = vrot.slane %v1239_v17, 3 }
 0x435   :  { %v1177_v40 = vpop.permute.xlu1 %1176 }
 0x436   :  { %v1402_v34 = vrot.slane %v1266_v8, 2 }
 0x437   :  { %v1289_v47 = vpop.permute.xlu0 %1288 }
 0x439   :  { %v1179_v51 = vpop.permute.xlu1 %1178 }
 0x43a   :  { %v1183_v16 = vadd.f32 %v1179_v51, %v4173_v22 }
 0x43b   :  { %v1291_v49 = vpop.permute.xlu0 %1290 }
 0x43c   :  { %v1295_v13 = vadd.f32 %v1291_v49, %v4193_v45  ;;  %v1382_v1 = vrot.slane %v1183_v16, 7  ;;  %v1182_v45 = vadd.f32 %v1177_v40, %v4178_v18 }
 0x43d   :  { %v1207_v30 = vpop.permute.xlu1 %1206 }
 0x43e   :  { %v1211_v39 = vadd.f32 %v1207_v30, %v4199_v26  ;;  %v1409_v35 = vrot.slane %v1295_v13, 7 }
 0x43f   :  { %v1319_v7 = vpop.permute.xlu0 %1318 }
 0x440   :  { %v1323_v33 = vadd.f32 %v1319_v7, %v4201_v24  ;;  %v1389_v26 = vrot.slane %v1211_v39, 5 }
 0x441   :  { %v1233_v21 = vpop.permute.xlu1 %1232 }
 0x442   :  { %v1238_v53 = vadd.f32 %v1233_v21, %v1223_v14  ;;  %v1415_v24 = vrot.slane %v1323_v33, 5  ;;  %v3231_v33 = vld [vmem:[%s4890_s1 + $0x10] sm:$0xff]  }
 0x443   :  { %v1347_v56 = vpop.permute.xlu0 %1346  ;;  %3177 = vmatpush3.bf16.msra.mxu1 %v3231_v33 }
 0x444   :  { %v1351_v44 = vadd.f32 %v1347_v56, %v4207_v52  ;;  %v1395_v27 = vrot.slane %v1238_v53, 4  ;;  %v1294_v52 = vadd.f32 %v1289_v47, %v4181_v54  ;;  %v3365_v56 = vld [vmem:[#allocation2] sm:$0xff]  ;;  %3178 = vmatprep.subr.bf16.mxu1 %v4959_v20 }
 0x445   :  { %v1263_v59 = vpop.permute.xlu1 %1262 }
 0x446   :  { %v1267_v38 = vadd.f32 %v1263_v59, %v1257_v50  ;;  %v1391_v50 = vsel %vm1390_vm11, %v1389_v26, %v1388_v4  ;;  %v1421_v37 = vrot.slane %v1351_v44, 3  ;;  %v1398_v62 = vsel %vm1397_vm12, %v1396_v32, %v1395_v27  ;;  %v3232_v26 = vld [vmem:[%s4890_s1 + $0x18] sm:$0xff]  }
 0x447   :  { %v1375_v22 = vpop.permute.xlu0 %1374  ;;  %v1410_v48 = vsel %vm1383_vm10, %v1409_v35, %v1294_v52  ;;  %3179 = vmatpush3.bf16.msra.mxu1 %v3232_v26  ;;  %v3234_v35 = vld [vmem:[%s4893_s4 + $0x28] sm:$0xff]  }
 0x448   :  { %v1403_v31 = vrot.slane %v1267_v38, 1  ;;  %v1379_v43 = vadd.f32 %v1375_v22, %v4213_v0  ;;  %v3066_v0 = vld [vmem:[%s4896_s7] ss:$0 sm:$0xff]  ;;  %3196 = vmatprep.subr.bf16.mxu1 %v4959_v20 }
 0x449   :  { %v1317_v42 = vpop.permute.xlu1 %1316  ;;  %v1446_v6 = vmul.f32 %v3066_v0, %v4962_v5  ;;  %v1447_v12 = vmul.f32 %v3066_v0, %v4963_v29 }
 0x44a   :  { %v1322_v36 = vadd.f32 %v1317_v42, %v1307_v63  ;;  %v1384_v63 = vsel %vm1383_vm10, %v1382_v1, %v1182_v45  ;;  %v1405_v41 = vsel %vm1404_vm15, %v1403_v31, %v1402_v34  ;;  %v1427_v11 = vrot.slane %v1379_v43, 1  ;;  %v3366_v42 = vld [vmem:[#allocation2 + $0x8] sm:$0xff]  ;;  %v3233_v45 = vld [vmem:[%s4893_s4 + $0x20] sm:$0xff]   ;;  %v1630_v43 = vld [vmem:[#allocation5 + $0x4] sm:$0xf] }
 0x44b   :  { %v1431_v54 = vsel %vm1430_vm13, %v1384_v63, %v1391_v50  ;;  %v1469_v49 = vpop.permute.xlu0 %1468  ;;  %v3236_v50 = vld [vmem:[%s4893_s4 + $0x38] sm:$0xff]  }
 0x44c   :  { %v1414_v25 = vrot.slane %v1322_v36, 6  ;;  %v1433_v15 = vsel %vm1432_vm14, %v1431_v54, %v1398_v62 }
 0x44d   :  { %v1345_v14 = vpop.permute.xlu1 %1344 }
 0x44e   :  { %v1350_v3 = vadd.f32 %v1345_v14, %v1335_v23  ;;  %v1416_v58 = vsel %vm1390_vm11, %v1415_v24, %v1414_v25  ;;  %v3235_v24 = vld [vmem:[%s4893_s4 + $0x30] sm:$0xff]  }
 0x44f   :  { %v1436_v46 = vsel %vm1430_vm13, %v1410_v48, %v1416_v58  ;;  %v1646_v58 = vrot.slane %v1630_v43, %v3611_v28 }
 0x450   :  { %v1420_v10 = vrot.slane %v1350_v3, 4 }
 0x451   :  { %v1373_v57 = vpop.permute.xlu1 %1372 }
 0x452   :  { %v1378_v18 = vadd.f32 %v1373_v57, %v4233_v19  ;;  %v1422_v60 = vsel %vm1397_vm12, %v1421_v37, %v1420_v10  ;;  %v1435_v19 = vsel %vm1434_vm6, %v1433_v15, %v1405_v41  ;;  %v4967_v37 = vld [vmem:[#allocation13_spill] sm:$0xff]  ;;  %v4970_v15 = vld [vmem:[#allocation16_spill] sm:$0xff] }
 0x453   :  { %v1437_v61 = vsel %vm1432_vm14, %v1436_v46, %v1422_v60  ;;  %v1448_v47 = vadd.f32 %v1446_v6, %v1435_v19  ;;  %v1634_v62 = vrot.slane %v1630_v43, %v4967_v37  ;;  %v1674_v46 = vrot.slane %v1630_v43, %v4970_v15 }
 0x454   :  { %v1426_v23 = vrot.slane %v1378_v18, 2 }
 0x455   :  { %v1467_v9 = vpop.permute.xlu1 %1466 }
 0x456   :  { %v1428_v55 = vsel %vm1404_vm15, %v1427_v11, %v1426_v23  ;;  %v1472_v30 = vmul.f32 %v1467_v9, %v1448_v47  ;;  %v4969_v11 = vld [vmem:[#allocation15_spill] sm:$0xff] }
 0x457   :  { %v1438_v40 = vsel %vm1434_vm6, %v1437_v61, %v1428_v55  ;;  %v1660_v23 = vrot.slane %v1630_v43, %v4969_v11 }
 0x458   :  { %v1449_v51 = vadd.f32 %v1447_v12, %v1438_v40 }
 0x45a   :  { %v1473_v7 = vmul.f32 %v1469_v49, %v1449_v51 }
 0x45c   :  { %v1474_v21 = vpack.c.bf16 %v1473_v7, %v1472_v30 }
 0x45e   :  { %3173 = vmatmul.mubr.msk.bf16.vlgmr.msra.gmra.mrb[4].mxu0 %vm275_vm5, %v1474_v21 }
 0x45f   :  { %3192 = vmatprep.mubr.msk.bf16.mxu0 %vm3471_vm1, %v4959_v20  ;;  %3185 = vmatpush3.bf16.msra.mxu0 %v3233_v45 }
 0x460   :  { %3186 = vmatprep.subr.bf16.mxu0 %v4959_v20 }
 0x463   :  { %3187 = vmatpush3.bf16.msra.mxu0 %v3234_v35 }
 0x464   :  { %3188 = vmatprep.subr.bf16.mxu0 %v4959_v20 }
 0x467   :  { %3189 = vmatpush3.bf16.msra.mxu0 %v3235_v24 }
 0x468   :  { %3190 = vmatprep.subr.bf16.mxu0 %v4959_v20 }
 0x46b   :  { %3191 = vmatpush3.bf16.msra.mxu0 %v3236_v50 }
 0x531   :  { %v1544_v59 = vpop.f32.mrb[4].mxu0 }
 0x532   :  { %v4278_v39 = vadd.f32 %v3365_v56, %v1544_v59  ;;  %v3174_v2 = vpop.f32.mrb[5].mxu0 }
 0x533   :  { %v1547_v53 = vpop.f32.mrb[6].mxu0 }
 0x534   :  { %4964 = vst [vmem:[#allocation27_spill] sm:$0xff] %v4278_v39  ;;  %v4280_v16 = vadd.f32 %v3366_v42, %v1547_v53  ;;  %v3175_v38 = vpop.f32.mrb[7].mxu0  ;;  %v1551_v36 = vmul.f32 %v4278_v39, %v4278_v39 }
 0x536   :  { %4965 = vst [vmem:[#allocation30_spill] sm:$0xff] %v4280_v16  ;;  %v1553_v17 = vsel %vm93_vm0, %v1551_v36, 0.0  ;;  %v1552_v8 = vmul.f32 %v4280_v16, %v4280_v16 }
 0x537   :  { %1554 = vadd.xlane.f32.xlu1 %v1553_v17  ;;  %v3082_v17 = vld [vmem:[%s4892_s3 + $0x1] ss:$0 sm:$0xff] }
 0x538   :  { %v1556_v13 = vsel %vm93_vm0, %v1552_v8, 0.0 }
 0x539   :  { %1557 = vadd.xlane.f32.xlu0 %v1556_v13 }
 0x5c4   :  { %v1555_v4 = vpop.xlane.xlu1 %1554 }
 0x5c5   :  { %v1559_v44 = vmul.f32 0.03125, %v1555_v4 }
 0x5c6   :  { %v1558_v27 = vpop.xlane.xlu0 %1557 }
 0x5c7   :  { %v1561_v22 = vadd.f32 1e-05, %v1559_v44  ;;  %v1560_v14 = vmul.f32 0.03125, %v1558_v27 }
 0x5c9   :  { %3301 = vrsqrt.f32 %v1561_v22  ;;  %v1562_v1 = vadd.f32 1e-05, %v1560_v14 }
 0x5cb   :  { %3303 = vrsqrt.f32 %v1562_v1 }
 0x5d3   :  { %v3302_v31 = vpop.eup %3301 }
 0x5d4   :  { %v1565_v3 = vmul.f32 %v3302_v31, %v4278_v39 }
 0x5d5   :  { %v3304_v25 = vpop.eup %3303 }
 0x5d6   :  { %v1566_v32 = vmul.f32 %v3304_v25, %v4280_v16 }
 0x5d8   :  { %v1567_v34 = vpack.c.bf16 %v1566_v32, %v1565_v3 }
 0x5da   :  { %3181 = vmatmul.mubr.msk.bf16.vlgmr.msra.gmra.mrb[4].mxu1 %vm93_vm0, %v1567_v34 }
 0x5db   :  { %3204 = vmatprep.mubr.msk.bf16.mxu1 %vm3471_vm1, %v4959_v20 }
 0x6ad   :  { %v4316_v10 = vpop.f32.mrb[4].mxu1 }
 0x6ae   :  { %4966 = vst [vmem:[#allocation31_spill] sm:$0xff] %v4316_v10  ;;  %v3182_v52 = vpop.f32.mrb[5].mxu1  ;;  %v1637_v57 = vrot.slane %v4316_v10, 2  ;;  %v1651_v18 = vrot.slane %v4316_v10, 4  ;;  %v1665_v48 = vrot.slane %v4316_v10, 6  ;;  %v1635_v47 = vmul.f32 %v1634_v62, %v4316_v10 }
 0x6af   :  { %v4320_v63 = vpop.f32.mrb[6].mxu1 }
 0x6b0   :  { %4968 = vst [vmem:[#allocation28_spill] sm:$0xff] %v4320_v63  ;;  %v1638_v41 = vrot.slane %v4320_v63, 2  ;;  %v1652_v60 = vrot.slane %v4320_v63, 4  ;;  %v1666_v0 = vrot.slane %v4320_v63, 6  ;;  %v3183_v54 = vpop.f32.mrb[7].mxu1  ;;  %v1636_v29 = vmul.f32 %v1634_v62, %v4320_v63 }
 0x6b2   :  { %v1639_v61 = vsel %vm87_vm3, %v1637_v57, %v1638_v41  ;;  %v1640_v55 = vsel %vm87_vm3, %v1638_v41, %v1637_v57  ;;  %v1653_v5 = vsel %vm85_vm2, %v1651_v18, %v1652_v60  ;;  %v1654_v6 = vsel %vm85_vm2, %v1652_v60, %v1651_v18  ;;  %v4975_v41 = vld [vmem:[#allocation20_spill] sm:$0xff] }
 0x6b3   :  { %v1641_v12 = vsel %vm87_vm3, 0.0, %v1640_v55  ;;  %v1648_v9 = vmul.f32 %v1646_v58, %v1639_v61  ;;  %v1655_v40 = vsel %vm85_vm2, 0.0, %v1654_v6  ;;  %v1667_v49 = vsel %vm83_vm4, %v1665_v48, %v1666_v0 }
 0x6b4   :  { %v1647_v51 = vmul.f32 %v1646_v58, %v1641_v12  ;;  %v1668_v30 = vsel %vm83_vm4, %v1666_v0, %v1665_v48  ;;  %v1662_v21 = vmul.f32 %v1660_v23, %v1653_v5  ;;  %v1661_v2 = vmul.f32 %v1660_v23, %v1655_v40  ;;  %v4974_v58 = vld [vmem:[#allocation22_spill] sm:$0xff]  ;;  %v4976_v0 = vld [vmem:[#allocation23_spill] sm:$0xff]  ;;  %v4977_v48 = vld [vmem:[#allocation21_spill] sm:$0xff] }
 0x6b5   :  { %v1650_v7 = vadd.f32 %v1648_v9, %v1636_v29  ;;  %v1669_v59 = vsel %vm83_vm4, 0.0, %v1668_v30  ;;  %v1676_v42 = vmul.f32 %v1674_v46, %v1667_v49 }
 0x6b6   :  { %v1649_v56 = vadd.f32 %v1647_v51, %v1635_v47  ;;  %v1675_v36 = vmul.f32 %v1674_v46, %v1669_v59  ;;  %v3098_v46 = vld [vmem:[#allocation7 + $0x1] ss:$0 sm:$0xff] }
 0x6b7   :  { %v1664_v53 = vadd.f32 %v1662_v21, %v1650_v7 }
 0x6b8   :  { %v1663_v38 = vadd.f32 %v1661_v2, %v1649_v56 }
 0x6b9   :  { %v1678_v8 = vadd.f32 %v1676_v42, %v1664_v53 }
 0x6ba   :  { %v1677_v13 = vadd.f32 %v1675_v36, %v1663_v38 }
 0x6bb   :  { %v1688_v33 = vadd.f32 %v3082_v17, %v1678_v8 }
 0x6bc   :  { %v1687_v26 = vadd.f32 %v3082_v17, %v1677_v13 }
 0x6bd   :  { %v3084_v4 = vmul.f32 -1.442695, %v1688_v33 }
 0x6be   :  { %v3083_v44 = vmul.f32 -1.442695, %v1687_v26 }
 0x6bf   :  { %3305 = vpow2.f32 %v3084_v4 }
 0x6c0   :  { %3307 = vpow2.f32 %v3083_v44 }
 0x6c9   :  { %v3306_v27 = vpop.eup %3305 }
 0x6ca   :  { %v3308_v22 = vpop.eup %3307  ;;  %v1696_v14 = vadd.f32 1.0, %v3306_v27 }
 0x6cb   :  { %v1695_v1 = vadd.f32 1.0, %v3308_v22 }
 0x6cc   :  { %3309 = vrcp.f32 %v1696_v14 }
 0x6cd   :  { %3311 = vrcp.f32 %v1695_v1 }
 0x6d6   :  { %v3310_v31 = vpop.eup %3309 }
 0x6d7   :  { %v3312_v25 = vpop.eup %3311  ;;  %v4353_v3 = vmul.f32 %v3310_v31, %v1688_v33 }
 0x6d8   :  { %v4355_v32 = vmul.f32 %v3312_v25, %v1687_v26 }
 0x6d9   :  { %4972 = vst [vmem:[#allocation29_spill] sm:$0xff] %v4353_v3 }
 0x6da   :  { %4973 = vst [vmem:[#allocation26_spill] sm:$0xff] %v4355_v32  ;;  %v1703_v34 = vpack.c.bf16 %v4353_v3, %v4355_v32 }
 0x6dc   :  { %3193 = vmatmul.mubr.msk.bf16.vlgmr.msra.gmra.mrb[8].mxu0 %vm275_vm5, %v1703_v34 }
 0x7af   :  { %v1774_v45 = vpop.f32.mrb[8].mxu0 }
 0x7b0   :  { %v3194_v35 = vpop.f32.mrb[9].mxu0  ;;  %v2082_v24 = vrot.slane %v1774_v45, %v4969_v11  ;;  %v4362_v50 = vrot.slane %v1774_v45, %v3611_v28  ;;  %v4369_v62 = vrot.slane %v1774_v45, %v4967_v37  ;;  %v4372_v57 = vrot.slane %v1774_v45, %v4970_v15 }
 0x7b1   :  { %v4364_v43 = vpop.f32.mrb[10].mxu0  ;;  %v4379_v18 = vrot.slane %v1774_v45, %v4974_v58  ;;  %v4382_v60 = vrot.slane %v1774_v45, %v4975_v41  ;;  %v4389_v54 = vrot.slane %v1774_v45, %v4976_v0  ;;  %v4392_v23 = vrot.slane %v1774_v45, %v4977_v48 }
 0x7b2   :  { %2085 = vbcast.lane.b32.xlu1 %v2082_v24, 320  ;;  %2077 = vbcast.lane.b32.xlu0 %v4362_v50, 320  ;;  %v3195_v52 = vpop.f32.mrb[11].mxu0  ;;  %v1789_v19 = vadd.f32 %v3098_v46, %v1774_v45  ;;  %v2146_v55 = vrot.slane %v4364_v43, %v4969_v11  ;;  %v2162_v6 = vrot.slane %v4364_v43, %v4967_v37 }
 0x7b3   :  { %v4406_v29 = vrot.slane %v4364_v43, %v3611_v28  ;;  %v1790_v12 = vadd.f32 %v3098_v46, %v4364_v43  ;;  %v2178_v40 = vrot.slane %v4364_v43, %v4975_v41  ;;  %v2154_v37 = vrot.slane %v4364_v43, %v4970_v15 }
 0x7b4   :  { %v1793_v61 = vmin.f32 %v1789_v19, 20.0  ;;  %v4417_v49 = vrot.slane %v4364_v43, %v4977_v48  ;;  %v2170_v30 = vrot.slane %v4364_v43, %v4974_v58  ;;  %v4425_v59 = vrot.slane %v4364_v43, %v4976_v0 }
 0x7b5   :  { %v1794_v11 = vmin.f32 %v1790_v12, 20.0  ;;  %vm1791_vm2 = vcmp.gt.f32.partialorder %v1789_v19, 20.0  ;;  %vm1792_vm4 = vcmp.gt.f32.partialorder %v1790_v12, 20.0 }
 0x7b6   :  { %2205 = vbcast.lane.b32.xlu1 %v2082_v24, 328  ;;  %2201 = vbcast.lane.b32.xlu0 %v4362_v50, 328  ;;  %v1795_v5 = vmul.f32 1.442695, %v1793_v61 }
 0x7b7   :  { %v1797_v47 = vmul.f32 1.442695, %v1794_v11 }
 0x7b8   :  { %3313 = vpow2.f32 %v1795_v5 }
 0x7b9   :  { %3315 = vpow2.f32 %v1797_v47 }
 0x7ba   :  { %2101 = vbcast.lane.b32.xlu1 %v4369_v62, 320  ;;  %2093 = vbcast.lane.b32.xlu0 %v4372_v57, 320 }
 0x7be   :  { %2213 = vbcast.lane.b32.xlu1 %v4369_v62, 328  ;;  %2209 = vbcast.lane.b32.xlu0 %v4372_v57, 328 }
 0x7c2   :  { %2109 = vbcast.lane.b32.xlu1 %v4379_v18, 320  ;;  %2117 = vbcast.lane.b32.xlu0 %v4382_v60, 320  ;;  %v3314_v9 = vpop.eup %3313 }
 0x7c3   :  { %v1799_v51 = vadd.f32 1.0, %v3314_v9  ;;  %v1802_v7 = vmul.f32 -0.5, %v3314_v9  ;;  %v3316_v15 = vpop.eup %3315  ;;  %v1805_v2 = vand.u32 2147483647, %v3314_v9 }
 0x7c4   :  { %v1808_v53 = vadd.f32 1.0, %v3316_v15  ;;  %v1811_v8 = vmul.f32 -0.5, %v3316_v15  ;;  %v1814_v26 = vand.u32 2147483647, %v3316_v15 }
 0x7c5   :  { %3317 = vlog2.f32 %v1799_v51  ;;  %v1803_v56 = vadd.f32 1.0, %v1802_v7  ;;  %vm1806_vm1 = vcmp.lt.f32.partialorder %v1805_v2, 0.0004427343 }
 0x7c6   :  { %2217 = vbcast.lane.b32.xlu1 %v4379_v18, 328  ;;  %2221 = vbcast.lane.b32.xlu0 %v4382_v60, 328  ;;  %3319 = vlog2.f32 %v1808_v53  ;;  %v1812_v33 = vadd.f32 1.0, %v1811_v8  ;;  %vm1815_vm3 = vcmp.lt.f32.partialorder %v1814_v26, 0.0004427343 }
 0x7c7   :  { %v1804_v38 = vmul.f32 %v3314_v9, %v1803_v56 }
 0x7c8   :  { %v1813_v27 = vmul.f32 %v3316_v15, %v1812_v33 }
 0x7ca   :  { %2125 = vbcast.lane.b32.xlu1 %v4389_v54, 320  ;;  %2133 = vbcast.lane.b32.xlu0 %v4392_v23, 320 }
 0x7ce   :  { %2225 = vbcast.lane.b32.xlu1 %v4389_v54, 328  ;;  %2229 = vbcast.lane.b32.xlu0 %v4392_v23, 328 }
 0x7cf   :  { %v3318_v21 = vpop.eup %3317 }
 0x7d0   :  { %v1801_v42 = vmul.f32 0.6931472, %v3318_v21  ;;  %v3320_v13 = vpop.eup %3319 }
 0x7d1   :  { %v1810_v4 = vmul.f32 0.6931472, %v3320_v13 }
 0x7d2   :  { %2285 = vbcast.lane.b32.xlu1 %v2082_v24, 336  ;;  %2289 = vbcast.lane.b32.xlu0 %v4372_v57, 336  ;;  %v1807_v36 = vsel %vm1806_vm1, %v1804_v38, %v1801_v42 }
 0x7d3   :  { %v4429_v17 = vsel %vm1791_vm2, %v1789_v19, %v1807_v36  ;;  %v1816_v22 = vsel %vm1815_vm3, %v1813_v27, %v1810_v4 }
 0x7d4   :  { %v4437_v44 = vmul.f32 %v4429_v17, %v4355_v32  ;;  %v4441_v14 = vsel %vm1792_vm4, %v1790_v12, %v1816_v22 }
 0x7d5   :  { %v4451_v1 = vmul.f32 %v4441_v14, %v4353_v3 }
 0x7d6   :  { %2293 = vbcast.lane.b32.xlu1 %v4369_v62, 336  ;;  %2149 = vbcast.lane.b32.xlu0 %v2146_v55, 320 }
 0x7da   :  { %2349 = vbcast.lane.b32.xlu1 %v2082_v24, 344  ;;  %2237 = vbcast.lane.b32.xlu0 %v2146_v55, 328 }
 0x7de   :  { %2165 = vbcast.lane.b32.xlu0 %v2162_v6, 320  ;;  %2141 = vbcast.lane.b32.xlu1 %v4406_v29, 320 }
 0x7e2   :  { %2245 = vbcast.lane.b32.xlu0 %v2162_v6, 328  ;;  %2233 = vbcast.lane.b32.xlu1 %v4406_v29, 328 }
 0x7e6   :  { %2181 = vbcast.lane.b32.xlu0 %v2178_v40, 320  ;;  %2157 = vbcast.lane.b32.xlu1 %v2154_v37, 320 }
 0x7ea   :  { %2253 = vbcast.lane.b32.xlu0 %v2178_v40, 328  ;;  %2241 = vbcast.lane.b32.xlu1 %v2154_v37, 328 }
 0x7ee   :  { %2197 = vbcast.lane.b32.xlu0 %v4417_v49, 320  ;;  %2173 = vbcast.lane.b32.xlu1 %v2170_v30, 320 }
 0x7f2   :  { %2261 = vbcast.lane.b32.xlu0 %v4417_v49, 328  ;;  %2249 = vbcast.lane.b32.xlu1 %v2170_v30, 328 }
 0x7f6   :  { %2317 = vbcast.lane.b32.xlu0 %v2146_v55, 336  ;;  %2189 = vbcast.lane.b32.xlu1 %v4425_v59, 320 }
 0x7fa   :  { %2325 = vbcast.lane.b32.xlu0 %v2162_v6, 336  ;;  %2257 = vbcast.lane.b32.xlu1 %v4425_v59, 328 }
 0x7fe   :  { %1823 = vrot.lane.b32.xlu0 %v4429_v17, %s3462_s23  ;;  %2321 = vbcast.lane.b32.xlu1 %v2154_v37, 336 }
 0x802   :  { %2353 = vbcast.lane.b32.xlu0 %v4372_v57, 344  ;;  %2357 = vbcast.lane.b32.xlu1 %v4369_v62, 344 }
 0x806   :  { %2381 = vbcast.lane.b32.xlu0 %v2146_v55, 344  ;;  %2385 = vbcast.lane.b32.xlu1 %v2154_v37, 344 }
 0x80a   :  { %2389 = vbcast.lane.b32.xlu0 %v2162_v6, 344  ;;  %1835 = vrot.lane.b32.xlu1 %v4437_v44, %s3462_s23 }
 0x80e   :  { %2301 = vbcast.lane.b32.xlu0 %v4382_v60, 336  ;;  %1825 = vrot.lane.b32.xlu1 %v4441_v14, %s3462_s23 }
 0x812   :  { %2333 = vbcast.lane.b32.xlu0 %v2178_v40, 336  ;;  %2297 = vbcast.lane.b32.xlu1 %v4379_v18, 336 }
 0x816   :  { %2365 = vbcast.lane.b32.xlu0 %v4382_v60, 344  ;;  %2329 = vbcast.lane.b32.xlu1 %v2170_v30, 336 }
 0x81a   :  { %2397 = vbcast.lane.b32.xlu0 %v2178_v40, 344  ;;  %2361 = vbcast.lane.b32.xlu1 %v4379_v18, 344 }
 0x81e   :  { %2393 = vbcast.lane.b32.xlu1 %v2170_v30, 344  ;;  %1837 = vrot.lane.b32.xlu0 %v4451_v1, %s3462_s23 }
 0x822   :  { %2281 = vbcast.lane.b32.xlu1 %v4362_v50, 336  ;;  %2305 = vbcast.lane.b32.xlu0 %v4389_v54, 336 }
 0x824   :  { %v2086_v31 = vpop.permute.xlu1 %2085  ;;  %v2078_v25 = vpop.permute.xlu0 %2077 }
 0x826   :  { %2309 = vbcast.lane.b32.xlu1 %v4392_v23, 336  ;;  %2313 = vbcast.lane.b32.xlu0 %v4406_v29, 336 }
 0x828   :  { %v2206_v34 = vpop.permute.xlu1 %2205  ;;  %v2202_v45 = vpop.permute.xlu0 %2201 }
 0x829   :  { %v4460_v35 = vsel %vm275_vm5, %v2086_v31, %v2206_v34  ;;  %v4463_v24 = vsel %vm275_vm5, %v2078_v25, %v2202_v45 }
 0x82a   :  { %2337 = vbcast.lane.b32.xlu1 %v4425_v59, 336  ;;  %2341 = vbcast.lane.b32.xlu0 %v4417_v49, 336 }
 0x82c   :  { %v2102_v43 = vpop.permute.xlu1 %2101  ;;  %v2094_v52 = vpop.permute.xlu0 %2093 }
 0x82e   :  { %2345 = vbcast.lane.b32.xlu1 %v4362_v50, 344  ;;  %2369 = vbcast.lane.b32.xlu0 %v4389_v54, 344 }
 0x830   :  { %v2214_v62 = vpop.permute.xlu1 %2213  ;;  %v2210_v57 = vpop.permute.xlu0 %2209 }
 0x831   :  { %v4470_v58 = vsel %vm275_vm5, %v2102_v43, %v2214_v62  ;;  %v4473_v18 = vsel %vm275_vm5, %v2094_v52, %v2210_v57  ;;  %v4978_v57 = vld [vmem:[#allocation24_spill] sm:$0xff] }
 0x832   :  { %2373 = vbcast.lane.b32.xlu1 %v4392_v23, 344  ;;  %2377 = vbcast.lane.b32.xlu0 %v4406_v29, 344 }
 0x834   :  { %v2110_v41 = vpop.permute.xlu1 %2109  ;;  %v2118_v60 = vpop.permute.xlu0 %2117 }
 0x836   :  { %2401 = vbcast.lane.b32.xlu1 %v4425_v59, 344  ;;  %2405 = vbcast.lane.b32.xlu0 %v4417_v49, 344 }
 0x838   :  { %v2218_v50 = vpop.permute.xlu1 %2217  ;;  %v2222_v0 = vpop.permute.xlu0 %2221 }
 0x839   :  { %v4480_v54 = vsel %vm275_vm5, %v2110_v41, %v2218_v50  ;;  %v4483_v48 = vsel %vm275_vm5, %v2118_v60, %v2222_v0 }
 0x83c   :  { %v2126_v46 = vpop.permute.xlu1 %2125  ;;  %v2134_v19 = vpop.permute.xlu0 %2133 }
 0x840   :  { %v2226_v61 = vpop.permute.xlu1 %2225  ;;  %v2230_v23 = vpop.permute.xlu0 %2229 }
 0x841   :  { %v4486_v55 = vsel %vm275_vm5, %v2126_v46, %v2226_v61  ;;  %v4489_v5 = vsel %vm275_vm5, %v2134_v19, %v2230_v23  ;;  %v4536_v61 = vld [vmem:[%s4895_s6 + $0x8] sm:$0xff] }
 0x844   :  { %v2286_v6 = vpop.permute.xlu1 %2285  ;;  %v4491_v29 = vpop.permute.xlu0 %2289 }
 0x848   :  { %v4493_v12 = vpop.permute.xlu1 %2293  ;;  %v2150_v11 = vpop.permute.xlu0 %2149 }
 0x84c   :  { %v2350_v9 = vpop.permute.xlu1 %2349  ;;  %v2238_v40 = vpop.permute.xlu0 %2237 }
 0x84d   :  { %v4496_v37 = vsel %vm275_vm5, %v2286_v6, %v2350_v9  ;;  %v4499_v47 = vsel %vm275_vm5, %v2150_v11, %v2238_v40 }
 0x850   :  { %v2166_v51 = vpop.permute.xlu0 %2165  ;;  %v2142_v49 = vpop.permute.xlu1 %2141 }
 0x854   :  { %v2246_v30 = vpop.permute.xlu0 %2245  ;;  %v2234_v7 = vpop.permute.xlu1 %2233 }
 0x855   :  { %v4502_v15 = vsel %vm275_vm5, %v2166_v51, %v2246_v30  ;;  %v4505_v21 = vsel %vm275_vm5, %v2142_v49, %v2234_v7 }
 0x858   :  { %v2182_v59 = vpop.permute.xlu0 %2181  ;;  %v2158_v56 = vpop.permute.xlu1 %2157 }
 0x85c   :  { %v2254_v2 = vpop.permute.xlu0 %2253  ;;  %v2242_v53 = vpop.permute.xlu1 %2241 }
 0x85d   :  { %v4508_v42 = vsel %vm275_vm5, %v2182_v59, %v2254_v2  ;;  %v4511_v38 = vsel %vm275_vm5, %v2158_v56, %v2242_v53  ;;  %v3102_v56 = vmul.f32 -1.442695, %v4316_v10 }
 0x860   :  { %v2198_v36 = vpop.permute.xlu0 %2197  ;;  %v2174_v8 = vpop.permute.xlu1 %2173 }
 0x864   :  { %v2262_v13 = vpop.permute.xlu0 %2261  ;;  %v2250_v33 = vpop.permute.xlu1 %2249 }
 0x865   :  { %v4514_v26 = vsel %vm275_vm5, %v2198_v36, %v2262_v13  ;;  %v4517_v4 = vsel %vm275_vm5, %v2174_v8, %v2250_v33 }
 0x868   :  { %v4519_v27 = vpop.permute.xlu0 %2317  ;;  %v2190_v22 = vpop.permute.xlu1 %2189 }
 0x86c   :  { %v4521_v31 = vpop.permute.xlu0 %2325  ;;  %v2258_v25 = vpop.permute.xlu1 %2257 }
 0x86d   :  { %v4524_v34 = vsel %vm275_vm5, %v2190_v22, %v2258_v25 }
 0x870   :  { %v1824_v45 = vpop.permute.xlu0 %1823  ;;  %v2322_v43 = vpop.permute.xlu1 %2321 }
 0x871   :  { %v1829_v52 = vsel %vm275_vm5, %v4429_v17, %v1824_v45 }
 0x872   :  { %v1845_v62 = vcombine.high %v1829_v52, %v1829_v52  ;;  %v1852_v41 = vrot.slane %v1829_v52, %v4978_v57 }
 0x874   :  { %v1859_v60 = vrot.slane %v1845_v62, %v4978_v57  ;;  %v1860_v50 = vcombine.high %v1852_v41, %v1852_v41  ;;  %v1868_v0 = vrot.slane %v1852_v41, %v4978_v57  ;;  %v2354_v46 = vpop.permute.xlu0 %2353  ;;  %v4531_v19 = vpop.permute.xlu1 %2357  ;;  %v3103_v41 = vmul.f32 -1.442695, %v4320_v63 }
 0x876   :  { %v1861_v23 = vcombine.high %v1859_v60, %v1859_v60  ;;  %v1875_v6 = vrot.slane %v1859_v60, %v4978_v57  ;;  %v1882_v17 = vrot.slane %v1860_v50, %v4978_v57  ;;  %v1890_v11 = vcombine.high %v1868_v0, %v1868_v0 }
 0x877   :  { %v1946_v9 = vrot.slane %v1868_v0, %v3611_v28 }
 0x878   :  { %v1889_v40 = vrot.slane %v1861_v23, %v4978_v57  ;;  %v1891_v51 = vcombine.high %v1875_v6, %v1875_v6  ;;  %v1892_v49 = vcombine.high %v1882_v17, %v1882_v17  ;;  %v1950_v30 = vrot.slane %v1882_v17, %v3611_v28  ;;  %v2382_v7 = vpop.permute.xlu0 %2381  ;;  %v2386_v59 = vpop.permute.xlu1 %2385 }
 0x879   :  { %v1954_v2 = vrot.slane %v1890_v11, %v3611_v28  ;;  %v1962_v53 = vrot.slane %v1875_v6, %v3611_v28  ;;  %v2023_v36 = vmul.f32 %v4536_v61, %v1946_v9 }
 0x87a   :  { %v1893_v8 = vcombine.high %v1889_v40, %v1889_v40  ;;  %v1958_v13 = vrot.slane %v1892_v49, %v3611_v28  ;;  %v1966_v33 = vrot.slane %v1889_v40, %v3611_v28  ;;  %v1970_v22 = vrot.slane %v1891_v51, %v3611_v28 }
 0x87b   :  { %v2024_v25 = vmul.f32 %v4536_v61, %v1950_v30  ;;  %v2025_v45 = vmul.f32 %v4536_v61, %v1954_v2  ;;  %v2027_v52 = vmul.f32 %v4536_v61, %v1962_v53  ;;  %v2039_v62 = vmul.f32 1.442695, %v2023_v36 }
 0x87c   :  { %v1974_v60 = vrot.slane %v1893_v8, %v3611_v28  ;;  %v2026_v50 = vmul.f32 %v4536_v61, %v1958_v13  ;;  %v2028_v0 = vmul.f32 %v4536_v61, %v1966_v33  ;;  %v2390_v23 = vpop.permute.xlu0 %2389  ;;  %v1836_v6 = vpop.permute.xlu1 %1835  ;;  %v2029_v17 = vmul.f32 %v4536_v61, %v1970_v22 }
 0x87d   :  { %3321 = vpow2.f32 %v2039_v62  ;;  %v2041_v11 = vmul.f32 1.442695, %v2024_v25  ;;  %v2043_v9 = vmul.f32 1.442695, %v2025_v45  ;;  %v2047_v49 = vmul.f32 1.442695, %v2027_v52 }
 0x87e   :  { %3323 = vpow2.f32 %v3102_v56  ;;  %v2030_v40 = vmul.f32 %v4536_v61, %v1974_v60  ;;  %v2045_v51 = vmul.f32 1.442695, %v2026_v50  ;;  %v4560_v30 = vsel %vm275_vm5, %v2322_v43, %v2386_v59 }
 0x87f   :  { %3325 = vpow2.f32 %v2041_v11  ;;  %4979 = vst [vmem:[#allocation25_spill] sm:$0xff] %v4560_v30  ;;  %v1841_v2 = vsel %vm275_vm5, %v4437_v44, %v1836_v6  ;;  %v2049_v53 = vmul.f32 1.442695, %v2028_v0  ;;  %v2051_v56 = vmul.f32 1.442695, %v2029_v17 }
 0x880   :  { %3327 = vpow2.f32 %v3103_v41  ;;  %v2425_v36 = vcombine.high %v1841_v2, %v1841_v2  ;;  %v2432_v8 = vrot.slane %v1841_v2, %v4978_v57  ;;  %v4565_v13 = vpop.permute.xlu0 %2301  ;;  %v1826_v33 = vpop.permute.xlu1 %1825  ;;  %v2053_v22 = vmul.f32 1.442695, %v2030_v40 }
 0x881   :  { %3329 = vpow2.f32 %v2043_v9  ;;  %v1830_v25 = vsel %vm275_vm5, %v4441_v14, %v1826_v33  ;;  %v4573_v45 = vsel %vm275_vm5, %v4491_v29, %v2354_v46  ;;  %v4589_v46 = vsel %vm275_vm5, %v4493_v12, %v4531_v19 }
 0x882   :  { %3331 = vpow2.f32 %v2045_v51  ;;  %v2439_v43 = vrot.slane %v2425_v36, %v4978_v57  ;;  %v2440_v59 = vcombine.high %v2432_v8, %v2432_v8  ;;  %v2448_v44 = vrot.slane %v2432_v8, %v4978_v57 }
 0x883   :  { %3333 = vpow2.f32 %v2047_v49  ;;  %v1894_v52 = vcombine.high %v1830_v25, %v1830_v25  ;;  %v1901_v62 = vrot.slane %v1830_v25, %v4978_v57  ;;  %v4593_v11 = vsel %vm275_vm5, %v4519_v27, %v2382_v7 }
 0x884   :  { %3335 = vpow2.f32 %v2049_v53  ;;  %v2441_v41 = vcombine.high %v2439_v43, %v2439_v43  ;;  %v4577_v60 = vrot.slane %v2439_v43, %v4978_v57  ;;  %v2462_v14 = vrot.slane %v2440_v59, %v4978_v57  ;;  %v4580_v50 = vpop.permute.xlu0 %2333  ;;  %v4582_v0 = vpop.permute.xlu1 %2297 }
 0x885   :  { %3337 = vpow2.f32 %v2051_v56  ;;  %v2470_v6 = vcombine.high %v2448_v44, %v2448_v44  ;;  %v2526_v17 = vrot.slane %v2448_v44, %v3611_v28  ;;  %v1908_v29 = vrot.slane %v1894_v52, %v4978_v57 }
 0x886   :  { %3339 = vpow2.f32 %v2053_v22  ;;  %v4597_v9 = vsel %vm275_vm5, %v4521_v31, %v2390_v23  ;;  %v4600_v51 = vrot.slane %v2441_v41, %v4978_v57  ;;  %v1909_v2 = vcombine.high %v1901_v62, %v1901_v62 }
 0x887   :  { %v3322_v40 = vpop.eup %3321  ;;  %v1910_v53 = vcombine.high %v1908_v29, %v1908_v29  ;;  %v2472_v12 = vcombine.high %v2462_v14, %v2462_v14  ;;  %v2530_v19 = vrot.slane %v2462_v14, %v3611_v28  ;;  %v2534_v27 = vrot.slane %v2470_v6, %v3611_v28 }
 0x888   :  { %v4604_v36 = vpop.eup %3323  ;;  %v1917_v7 = vrot.slane %v1901_v62, %v4978_v57  ;;  %v2366_v31 = vpop.permute.xlu0 %2365  ;;  %v2603_v33 = vmul.f32 %v2526_v17, %v4463_v24  ;;  %v1924_v56 = vrot.slane %v1908_v29, %v4978_v57  ;;  %v1931_v22 = vrot.slane %v1909_v2, %v4978_v57 }
 0x889   :  { %4980 = vst [vmem:[#allocation17_spill] sm:$0xff] %v4604_v36  ;;  %v4609_v23 = vpop.permute.xlu1 %2329  ;;  %v3326_v8 = vpop.eup %3325  ;;  %v1938_v25 = vrot.slane %v1910_v53, %v4978_v57  ;;  %v2619_v59 = vmul.f32 0.0, %v3322_v40  ;;  %v2538_v20 = vrot.slane %v2472_v12, %v3611_v28 }
 0x88a   :  { %4981 = vst [vmem:[#allocation14_spill] sm:$0xff] %v4609_v23  ;;  %v4615_v43 = vpop.eup %3327  ;;  %v2620_v44 = vmul.f32 0.0, %v3326_v8  ;;  %v1939_v52 = vcombine.high %v1917_v7, %v1917_v7  ;;  %v1978_v41 = vrot.slane %v1917_v7, %v3611_v28  ;;  %v1940_v14 = vcombine.high %v1924_v56, %v1924_v56 }
 0x88b   :  { %v3330_v62 = vpop.eup %3329  ;;  %v1941_v6 = vcombine.high %v1931_v22, %v1931_v22  ;;  %v1942_v49 = vcombine.high %v1938_v25, %v1938_v25  ;;  %v1982_v16 = vrot.slane %v1931_v22, %v3611_v28  ;;  %v1994_v29 = vrot.slane %v1924_v56, %v3611_v28 }
 0x88c   :  { %v3332_v24 = vpop.eup %3331  ;;  %v1986_v17 = vrot.slane %v1939_v52, %v3611_v28  ;;  %v1998_v2 = vrot.slane %v1938_v25, %v3611_v28  ;;  %v2031_v53 = vmul.f32 %v4536_v61, %v1978_v41  ;;  %v2398_v40 = vpop.permute.xlu0 %2397  ;;  %v2002_v3 = vrot.slane %v1940_v14, %v3611_v28 }
 0x88d   :  { %v2362_v8 = vpop.permute.xlu1 %2361  ;;  %v3334_v39 = vpop.eup %3333  ;;  %v1990_v7 = vrot.slane %v1941_v6, %v3611_v28  ;;  %v2006_v32 = vrot.slane %v1942_v49, %v3611_v28  ;;  %v2032_v22 = vmul.f32 %v4536_v61, %v1982_v16  ;;  %v2035_v56 = vmul.f32 %v4536_v61, %v1994_v29 }
 0x88e   :  { %v3336_v10 = vpop.eup %3335  ;;  %v2033_v52 = vmul.f32 %v4536_v61, %v1986_v17  ;;  %v2036_v25 = vmul.f32 %v4536_v61, %v1998_v2  ;;  %v2055_v63 = vmul.f32 1.442695, %v2031_v53  ;;  %v2037_v14 = vmul.f32 %v4536_v61, %v2002_v3 }
 0x88f   :  { %v4630_v41 = vpop.eup %3337  ;;  %v2034_v6 = vmul.f32 %v4536_v61, %v1990_v7  ;;  %v2057_v36 = vmul.f32 1.442695, %v2032_v22  ;;  %v2604_v16 = vmul.f32 %v2530_v19, %v4460_v35  ;;  %v4638_v30 = vadd.f32 %v2619_v59, %v2603_v33 }
 0x890   :  { %v4635_v49 = vpop.eup %3339  ;;  %v2059_v17 = vmul.f32 1.442695, %v2033_v52  ;;  %v2412_v29 = vsel %vm275_vm5, %v4565_v13, %v2366_v31  ;;  %v1838_v53 = vpop.permute.xlu0 %1837  ;;  %v2038_v12 = vmul.f32 %v4536_v61, %v2006_v32  ;;  %3341 = vpow2.f32 %v2055_v63 }
 0x891   :  { %v4642_v2 = vpop.permute.xlu1 %2393  ;;  %v2061_v7 = vmul.f32 1.442695, %v2034_v6  ;;  %v2063_v23 = vmul.f32 1.442695, %v2035_v56  ;;  %3343 = vpow2.f32 %v2057_v36  ;;  %v2065_v3 = vmul.f32 1.442695, %v2036_v25 }
 0x892   :  { %v2546_v22 = vrot.slane %v4600_v51, %v3611_v28  ;;  %v4647_v35 = vadd.f32 %v2620_v44, %v2604_v16  ;;  %3345 = vpow2.f32 %v2059_v17  ;;  %v2067_v19 = vmul.f32 1.442695, %v2037_v14 }
 0x893   :  { %v2606_v33 = vmul.f32 %v2538_v20, %v4470_v58  ;;  %v2542_v13 = vrot.slane %v4577_v60, %v3611_v28  ;;  %3347 = vpow2.f32 %v2061_v7  ;;  %v2605_v63 = vmul.f32 %v2534_v27, %v4473_v18 }
 0x894   :  { %v2648_v32 = vmul.f32 %v3332_v24, %v4647_v35  ;;  %v2647_v61 = vmul.f32 %v3330_v62, %v4638_v30  ;;  %v4657_v31 = vpop.permute.xlu0 %2305  ;;  %3349 = vpow2.f32 %v2063_v23  ;;  %v2069_v59 = vmul.f32 1.442695, %v2038_v12 }
 0x895   :  { %v4655_v36 = vpop.permute.xlu1 %2281  ;;  %v2608_v44 = vmul.f32 %v2546_v22, %v4483_v48  ;;  %v4662_v20 = vsel %vm275_vm5, %v4580_v50, %v2398_v40  ;;  %3351 = vpow2.f32 %v2065_v3  ;;  %v1842_v18 = vsel %vm275_vm5, %v4451_v1, %v1838_v53 }
 0x896   :  { %v4664_v58 = vadd.f32 %v2648_v32, %v2606_v33  ;;  %v2649_v24 = vadd.f32 %v2647_v61, %v2605_v63  ;;  %v2607_v27 = vmul.f32 %v2542_v13, %v4480_v54  ;;  %v2411_v62 = vsel %vm275_vm5, %v4582_v0, %v2362_v8 }
 0x897   :  { %v2474_v23 = vcombine.high %v1842_v18, %v1842_v18  ;;  %v2481_v52 = vrot.slane %v1842_v18, %v4978_v57  ;;  %v4982_v1 = vcombine.high %v4577_v60, %v4577_v60  ;;  %3353 = vpow2.f32 %v2067_v19 }
 0x898   :  { %v2676_v48 = vmul.f32 %v3336_v10, %v4664_v58  ;;  %v2675_v56 = vmul.f32 %v3334_v39, %v2649_v24  ;;  %v4675_v40 = vpop.permute.xlu0 %2313  ;;  %v2651_v25 = vmul.f32 %v2649_v24, %v4573_v45  ;;  %v2473_v10 = vcombine.high %v4600_v51, %v4600_v51 }
 0x899   :  { %v4673_v50 = vpop.permute.xlu1 %2309  ;;  %v2550_v54 = vrot.slane %v4982_v1, %v3611_v28  ;;  %v2488_v6 = vrot.slane %v2474_v23, %v4978_v57  ;;  %v2489_v0 = vcombine.high %v2481_v52, %v2481_v52  ;;  %v2497_v8 = vrot.slane %v2481_v52, %v4978_v57 }
 0x89a   :  { %v2678_v39 = vadd.f32 %v2676_v48, %v2608_v44  ;;  %v2677_v14 = vadd.f32 %v2675_v56, %v2607_v27  ;;  %v2653_v16 = vrot.slane %v2651_v25, 4  ;;  %v3342_v17 = vpop.eup %3341  ;;  %3355 = vpow2.f32 %v2069_v59 }
 0x89b   :  { %v2490_v53 = vcombine.high %v2488_v6, %v2488_v6  ;;  %v4687_v45 = vrot.slane %v2488_v6, %v4978_v57  ;;  %v2511_v60 = vrot.slane %v2489_v0, %v4978_v57  ;;  %v2519_v12 = vcombine.high %v2497_v8, %v2497_v8  ;;  %v3344_v7 = vpop.eup %3343 }
 0x89c   :  { %v2680_v3 = vmul.f32 %v2678_v39, %v2412_v29  ;;  %v2679_v22 = vmul.f32 %v2677_v14, %v2411_v62  ;;  %v4692_v13 = vpop.permute.xlu0 %2341  ;;  %v2654_v51 = vadd.f32 %v2653_v16, %v2651_v25  ;;  %v4694_v19 = vpop.eup %3345  ;;  %v2558_v63 = vrot.slane %v2497_v8, %v3611_v28 }
 0x89d   :  { %v4690_v33 = vpop.permute.xlu1 %2337  ;;  %v2521_v32 = vcombine.high %v2511_v60, %v2511_v60  ;;  %v2609_v61 = vmul.f32 %v2550_v54, %v4486_v55  ;;  %v2554_v44 = vrot.slane %v2473_v10, %v3611_v28  ;;  %v3348_v24 = vpop.eup %3347  ;;  %v4700_v59 = vrot.slane %v2490_v53, %v4978_v57 }
 0x89e   :  { %v2687_v18 = vrot.slane %v2680_v3, 4  ;;  %v2520_v29 = vcombine.high %v4687_v45, %v4687_v45  ;;  %v2562_v27 = vrot.slane %v2511_v60, %v3611_v28  ;;  %v4705_v62 = vpop.eup %3349  ;;  %v2681_v23 = vrot.slane %v2679_v22, 4 }
 0x89f   :  { %v2566_v52 = vrot.slane %v2519_v12, %v3611_v28  ;;  %v2655_v48 = vrot.slane %v2654_v51, 2  ;;  %v2703_v55 = vmul.f32 %v4630_v41, %v2677_v14  ;;  %v4709_v56 = vpop.eup %3351  ;;  %v2570_v1 = vrot.slane %v2521_v32, %v3611_v28 }
 0x8a0   :  { %v2688_v25 = vadd.f32 %v2687_v18, %v2680_v3  ;;  %v2574_v57 = vrot.slane %v4687_v45, %v3611_v28  ;;  %v2370_v6 = vpop.permute.xlu0 %2369  ;;  %v2704_v0 = vmul.f32 %v4635_v49, %v2678_v39  ;;  %v2610_v53 = vmul.f32 %v2554_v44, %v4489_v5 }
 0x8a1   :  { %v2346_v54 = vpop.permute.xlu1 %2345  ;;  %v2656_v8 = vadd.f32 %v2655_v48, %v2654_v51  ;;  %v2705_v16 = vadd.f32 %v2703_v55, %v2609_v61  ;;  %v2578_v14 = vrot.slane %v4700_v59, %v3611_v28  ;;  %v2413_v45 = vsel %vm275_vm5, %v4657_v31, %v2370_v6  ;;  %v4724_v39 = vpop.eup %3353 }
 0x8a2   :  { %v2407_v10 = vsel %vm275_vm5, %v4655_v36, %v2346_v54  ;;  %v2689_v41 = vrot.slane %v2688_v25, 2  ;;  %v2706_v32 = vadd.f32 %v2704_v0, %v2610_v53  ;;  %v2612_v49 = vmul.f32 %v2562_v27, %v4499_v47 }
 0x8a3   :  { %v2623_v60 = vmul.f32 %v4638_v30, %v2407_v10  ;;  %v2657_v12 = vrot.slane %v2656_v8, 1  ;;  %v2707_v3 = vmul.f32 %v2705_v16, %v2413_v45  ;;  %v4726_v36 = vadd.f32 %v2681_v23, %v2679_v22 }
 0x8a4   :  { %v2690_v5 = vadd.f32 %v2689_v41, %v2688_v25  ;;  %v2611_v44 = vmul.f32 %v2558_v63, %v4505_v21  ;;  %v2378_v18 = vpop.permute.xlu0 %2377  ;;  %v2732_v55 = vmul.f32 %v3344_v7, %v2706_v32  ;;  %v3356_v54 = vpop.eup %3355  ;;  %v2731_v0 = vmul.f32 %v3342_v17, %v2705_v16 }
 0x8a5   :  { %v2625_v51 = vrot.slane %v2623_v60, 4  ;;  %v2374_v61 = vpop.permute.xlu1 %2373  ;;  %v4729_v48 = vadd.f32 %v2657_v12, %v2656_v8  ;;  %v2709_v30 = vrot.slane %v2707_v3, 4  ;;  %v2415_v21 = vsel %vm275_vm5, %v4675_v40, %v2378_v18 }
 0x8a6   :  { %v2414_v31 = vsel %vm275_vm5, %v4673_v50, %v2374_v61  ;;  %v2691_v47 = vrot.slane %v2690_v5, 1  ;;  %v2734_v23 = vadd.f32 %v2732_v55, %v2612_v49  ;;  %v2582_v63 = vrot.slane %v2520_v29, %v3611_v28 }
 0x8a7   :  { %v2626_v6 = vadd.f32 %v2625_v51, %v2623_v60  ;;  %v2708_v27 = vmul.f32 %v2706_v32, %v2414_v31  ;;  %2667 = vrot.lane.b32.xlu0 %v4729_v48, %s3462_s23  ;;  %v2710_v22 = vadd.f32 %v2709_v30, %v2707_v3  ;;  %v2614_v7 = vmul.f32 %v2570_v1, %v4502_v15 }
 0x8a8   :  { %v4739_v8 = vadd.f32 %v2691_v47, %v2690_v5  ;;  %v2733_v50 = vadd.f32 %v2731_v0, %v2611_v44  ;;  %v2683_v53 = vrot.slane %v4726_v36, 2  ;;  %v2760_v16 = vmul.f32 %v3348_v24, %v2734_v23 }
 0x8a9   :  { %v2627_v25 = vrot.slane %v2626_v6, 2  ;;  %v2402_v10 = vpop.permute.xlu1 %2401  ;;  %v2711_v17 = vrot.slane %v2710_v22, 2  ;;  %v2613_v41 = vmul.f32 %v2566_v52, %v4511_v38  ;;  %v2715_v60 = vrot.slane %v2708_v27, 4 }
 0x8aa   :  { %v2759_v45 = vmul.f32 %v4694_v19, %v2733_v50  ;;  %v2735_v12 = vmul.f32 %v2733_v50, %v2415_v21  ;;  %v2421_v40 = vsel %vm275_vm5, %v4690_v33, %v2402_v10  ;;  %v2615_v15 = vmul.f32 %v2574_v57, %v4517_v4 }
 0x8ab   :  { %2697 = vrot.lane.b32.xlu0 %v4739_v8, %s3462_s23  ;;  %v2617_v29 = vmul.f32 %v2582_v63, %v4524_v34  ;;  %v2522_v1 = vcombine.high %v4700_v59, %v4700_v59  ;;  %v2762_v24 = vadd.f32 %v2760_v16, %v2614_v7  ;;  %v2616_v19 = vmul.f32 %v2578_v14, %v4508_v42  ;;  %v2406_v14 = vpop.permute.xlu0 %2405 }
 0x8ac   :  { %v4752_v3 = vadd.f32 %v2759_v45, %v2613_v41  ;;  %v2737_v38 = vrot.slane %v2735_v12, 4  ;;  %v2628_v52 = vadd.f32 %v2627_v25, %v2626_v6  ;;  %v2712_v49 = vadd.f32 %v2711_v17, %v2710_v22 }
 0x8ad   :  { %v2586_v32 = vrot.slane %v2522_v1, %v3611_v28  ;;  %v2788_v33 = vmul.f32 %v4709_v56, %v2762_v24  ;;  %v2624_v4 = vmul.f32 %v4647_v35, %v4496_v37  ;;  %v2652_v51 = vmul.f32 %v4664_v58, %v4589_v46 }
 0x8ae   :  { %v2738_v57 = vadd.f32 %v2737_v38, %v2735_v12  ;;  %v2787_v34 = vmul.f32 %v4705_v62, %v4752_v3  ;;  %v2629_v59 = vrot.slane %v2628_v52, 1  ;;  %v2713_v61 = vrot.slane %v2712_v49, 1 }
 0x8af   :  { %v2618_v5 = vmul.f32 %v2586_v32, %v4514_v26  ;;  %v2790_v42 = vadd.f32 %v2788_v33, %v2616_v19  ;;  %v2631_v28 = vrot.slane %v2624_v4, 4  ;;  %v2659_v30 = vrot.slane %v2652_v51, 4 }
 0x8b0   :  { %v2739_v44 = vrot.slane %v2738_v57, 2  ;;  %v2789_v56 = vadd.f32 %v2787_v34, %v2615_v15  ;;  %v4764_v18 = vadd.f32 %v2629_v59, %v2628_v52  ;;  %v4766_v35 = vadd.f32 %v2713_v61, %v2712_v49 }
 0x8b1   :  { %v2816_v37 = vmul.f32 %v3356_v54, %v2790_v42  ;;  %v2632_v55 = vadd.f32 %v2631_v28, %v2624_v4  ;;  %v2736_v62 = vmul.f32 %v2734_v23, %v4593_v11  ;;  %v2422_v26 = vsel %vm275_vm5, %v4692_v13, %v2406_v14 }
 0x8b2   :  { %v2815_v31 = vmul.f32 %v4724_v39, %v2789_v56  ;;  %2639 = vrot.lane.b32.xlu1 %v4764_v18, %s3462_s23  ;;  %v2740_v46 = vadd.f32 %v2739_v44, %v2738_v57  ;;  %v2660_v58 = vadd.f32 %v2659_v30, %v2652_v51  ;;  %2723 = vrot.lane.b32.xlu0 %v4766_v35, %s3462_s23 }
 0x8b3   :  { %v2818_v6 = vadd.f32 %v2816_v37, %v2618_v5  ;;  %v2633_v54 = vrot.slane %v2632_v55, 2  ;;  %v2743_v47 = vrot.slane %v2736_v62, 4  ;;  %v2764_v0 = vmul.f32 %v2762_v24, %v4597_v9 }
 0x8b4   :  { %v2716_v22 = vadd.f32 %v2715_v60, %v2708_v27  ;;  %v2817_v11 = vadd.f32 %v2815_v31, %v2617_v29  ;;  %v2741_v23 = vrot.slane %v2740_v46, 1  ;;  %v2661_v39 = vrot.slane %v2660_v58, 2 }
 0x8b5   :  { %v2820_v21 = vmul.f32 %v2818_v6, %v2422_v26  ;;  %v2634_v63 = vadd.f32 %v2633_v54, %v2632_v55  ;;  %v2744_v13 = vadd.f32 %v2743_v47, %v2736_v62  ;;  %v2771_v7 = vrot.slane %v2764_v0, 4 }
 0x8b6   :  { %v2819_v25 = vmul.f32 %v2817_v11, %v2421_v40  ;;  %v4777_v50 = vadd.f32 %v2741_v23, %v2740_v46  ;;  %v2662_v10 = vadd.f32 %v2661_v39, %v2660_v58  ;;  %v2684_v17 = vadd.f32 %v2683_v53, %v4726_v36  ;;  %v4983_v36 = vld [vmem:[#allocation14_spill] sm:$0xff]  ;;  %v4985_v58 = vld [vmem:[#allocation17_spill] sm:$0xff] }
 0x8b7   :  { %v2827_v16 = vrot.slane %v2820_v21, 4  ;;  %v2635_v41 = vrot.slane %v2634_v63, 1  ;;  %v2745_v45 = vrot.slane %v2744_v13, 2  ;;  %v2772_v12 = vadd.f32 %v2771_v7, %v2764_v0  ;;  %v3237_v39 = vld [vmem:[%s4897_s8 + $0x20] sm:$0xff]  }
 0x8b8   :  { %v2717_v15 = vrot.slane %v2716_v22, 2  ;;  %2751 = vrot.lane.b32.xlu0 %v4777_v50, %s3462_s23  ;;  %v2663_v9 = vrot.slane %v2662_v10, 1  ;;  %v2792_v27 = vmul.f32 %v2790_v42, %v4662_v20  ;;  %v2914_v24 = vadd.f32 1.0, %v4615_v43  ;;  %v4984_v20 = vld [vmem:[#allocation25_spill] sm:$0xff]  ;;  %3197 = vmatpush3.bf16.msra.mxu1 %v3237_v39 }
 0x8b9   :  { %v2828_v60 = vadd.f32 %v2827_v16, %v2820_v21  ;;  %v4783_v29 = vadd.f32 %v2635_v41, %v2634_v63  ;;  %v2746_v40 = vadd.f32 %v2745_v45, %v2744_v13  ;;  %v2773_v1 = vrot.slane %v2772_v12, 2  ;;  %v4987_v41 = vld [vmem:[#allocation28_spill] sm:$0xff] }
 0x8ba   :  { %v2419_v53 = vsel %vm275_vm5, %v4983_v36, %v4642_v2  ;;  %v2685_v38 = vrot.slane %v2684_v17, 1  ;;  %v2799_v19 = vrot.slane %v2792_v27, 4  ;;  %v2821_v52 = vrot.slane %v2819_v25, 4 }
 0x8bb   :  { %2641 = vrot.lane.b32.xlu1 %v4783_v29, %s3462_s23  ;;  %v2747_v32 = vrot.slane %v2746_v40, 1  ;;  %v2774_v33 = vadd.f32 %v2773_v1, %v2772_v12  ;;  %v2763_v49 = vmul.f32 %v4752_v3, %v4984_v20  ;;  %v4793_v4 = vadd.f32 %v2663_v9, %v2662_v10 }
 0x8bc   :  { %v2718_v57 = vadd.f32 %v2717_v15, %v2716_v22  ;;  %v2800_v34 = vadd.f32 %v2799_v19, %v2792_v27  ;;  %v2791_v43 = vmul.f32 %v2789_v56, %v2419_v53  ;;  %v2829_v59 = vrot.slane %v2828_v60, 2  ;;  %v3239_v15 = vld [vmem:[%s4897_s8 + $0x30] sm:$0xff]  }
 0x8bd   :  { %v4795_v51 = vadd.f32 %v2747_v32, %v2746_v40  ;;  %v2775_v2 = vrot.slane %v2774_v33, 1  ;;  %v2765_v5 = vrot.slane %v2763_v49, 4  ;;  %3357 = vrcp.f32 %v2914_v24  ;;  %v4988_v40 = vld [vmem:[#allocation31_spill] sm:$0xff] }
 0x8be   :  { %v2801_v42 = vrot.slane %v2800_v34, 2  ;;  %v2793_v14 = vrot.slane %v2791_v43, 4  ;;  %v2822_v3 = vadd.f32 %v2821_v52, %v2819_v25  ;;  %v2719_v28 = vrot.slane %v2718_v57, 1 }
 0x8bf   :  { %2669 = vrot.lane.b32.xlu1 %v4793_v4, %s3462_s23  ;;  %2753 = vrot.lane.b32.xlu0 %v4795_v51, %s3462_s23  ;;  %v2766_v61 = vadd.f32 %v2765_v5, %v2763_v49  ;;  %v2686_v56 = vadd.f32 %v2685_v38, %v2684_v17  ;;  %v4801_v37 = vadd.f32 %v2775_v2, %v2774_v33  ;;  %v2913_v6 = vadd.f32 1.0, %v4985_v58  ;;  %v3238_v17 = vld [vmem:[%s4897_s8 + $0x28] sm:$0xff]  }
 0x8c0   :  { %v2802_v44 = vadd.f32 %v2801_v42, %v2800_v34  ;;  %v2794_v30 = vadd.f32 %v2793_v14, %v2791_v43  ;;  %v2830_v62 = vadd.f32 %v2829_v59, %v2828_v60  ;;  %v2823_v54 = vrot.slane %v2822_v3, 2  ;;  %v3240_v60 = vld [vmem:[%s4897_s8 + $0x38] sm:$0xff]  }
 0x8c1   :  { %v2767_v55 = vrot.slane %v2766_v61, 2  ;;  %v2720_v47 = vadd.f32 %v2719_v28, %v2718_v57  ;;  %3359 = vrcp.f32 %v2913_v6  ;;  %v4986_v10 = vmov 0.0  }
 0x8c2   :  { %v2803_v31 = vrot.slane %v2802_v44, 1  ;;  %v2795_v26 = vrot.slane %v2794_v30, 2  ;;  %v2831_v11 = vrot.slane %v2830_v62, 1  ;;  %v2824_v25 = vadd.f32 %v2823_v54, %v2822_v3  ;;  %3198 = vmatprep.subr.bf16.mxu1 %v4986_v10 }
 0x8c3   :  { %2695 = vrot.lane.b32.xlu1 %v2686_v56, %s3462_s23  ;;  %2781 = vrot.lane.b32.xlu0 %v4801_v37, %s3462_s23  ;;  %v2768_v46 = vadd.f32 %v2767_v55, %v2766_v61 }
 0x8c4   :  { %v2804_v0 = vadd.f32 %v2803_v31, %v2802_v44  ;;  %v2796_v23 = vadd.f32 %v2795_v26, %v2794_v30  ;;  %v4812_v13 = vadd.f32 %v2831_v11, %v2830_v62  ;;  %v2825_v12 = vrot.slane %v2824_v25, 1  ;;  %3199 = vmatpush3.bf16.msra.mxu1 %v3238_v17 }
 0x8c5   :  { %v2769_v22 = vrot.slane %v2768_v46, 1  ;;  %3200 = vmatprep.subr.bf16.mxu1 %v4986_v10 }
 0x8c6   :  { %v2797_v7 = vrot.slane %v2796_v23, 1  ;;  %v2826_v9 = vadd.f32 %v2825_v12, %v2824_v25 }
 0x8c7   :  { %2725 = vrot.lane.b32.xlu1 %v2720_v47, %s3462_s23  ;;  %2809 = vrot.lane.b32.xlu0 %v2804_v0, %s3462_s23  ;;  %v3358_v21 = vpop.eup %3357  ;;  %v2770_v63 = vadd.f32 %v2769_v22, %v2768_v46 }
 0x8c8   :  { %v2798_v16 = vadd.f32 %v2797_v7, %v2796_v23  ;;  %v2920_v45 = vmul.f32 %v3358_v21, %v4987_v41  ;;  %3201 = vmatpush3.bf16.msra.mxu1 %v3239_v15 }
 0x8c9   :  { %3202 = vmatprep.subr.bf16.mxu1 %v4986_v10 }
 0x8cb   :  { %2779 = vrot.lane.b32.xlu1 %v2770_v63, %s3462_s23  ;;  %2837 = vrot.lane.b32.xlu0 %v4812_v13, %s3462_s23  ;;  %v3360_v27 = vpop.eup %3359 }
 0x8cc   :  { %v2919_v1 = vmul.f32 %v3360_v27, %v4988_v40  ;;  %3203 = vmatpush3.bf16.msra.mxu1 %v3240_v60  ;;  %v4989_v27 = vld [vmem:[#allocation26_spill] sm:$0xff]  ;;  %v4990_v40 = vld [vmem:[#allocation29_spill] sm:$0xff] }
 0x8cf   :  { %2807 = vrot.lane.b32.xlu1 %v2798_v16, %s3462_s23  ;;  %2925 = vrot.lane.b32.xlu0 %v2920_v45, %s3462_s23 }
 0x8d3   :  { %2835 = vrot.lane.b32.xlu1 %v2826_v9, %s3462_s23 }
 0x8d7   :  { %2923 = vrot.lane.b32.xlu1 %v2919_v1, %s3462_s23 }
 0x919   :  { %v2668_v24 = vpop.permute.xlu0 %2667 }
 0x91a   :  { %v2673_v59 = vadd.f32 %v2668_v24, %v4729_v48 }
 0x91c   :  { %v2850_v62 = vrot.slane %v2673_v59, 6 }
 0x91d   :  { %v2698_v36 = vpop.permute.xlu0 %2697 }
 0x91e   :  { %v2702_v3 = vadd.f32 %v2698_v36, %v4739_v8 }
 0x920   :  { %v2857_v6 = vrot.slane %v2702_v3, 3 }
 0x924   :  { %v2724_v53 = vpop.permute.xlu0 %2723  ;;  %v2640_v38 = vpop.permute.xlu1 %2639 }
 0x925   :  { %v2729_v28 = vadd.f32 %v2724_v53, %v4766_v35  ;;  %v2645_v54 = vadd.f32 %v2640_v38, %v4764_v18 }
 0x927   :  { %v2862_v8 = vrot.slane %v2729_v28, 2 }
 0x92a   :  { %v2752_v19 = vpop.permute.xlu0 %2751 }
 0x92b   :  { %v2757_v11 = vadd.f32 %v2752_v19, %v4777_v50 }
 0x92d   :  { %v2642_v52 = vpop.permute.xlu1 %2641 }
 0x92e   :  { %v2646_v42 = vadd.f32 %v2642_v52, %v4783_v29 }
 0x931   :  { %v2670_v32 = vpop.permute.xlu1 %2669  ;;  %v2754_v33 = vpop.permute.xlu0 %2753 }
 0x932   :  { %v2674_v43 = vadd.f32 %v2670_v32, %v4793_v4  ;;  %v2758_v44 = vadd.f32 %v2754_v33, %v4795_v51 }
 0x934   :  { %v2851_v30 = vrot.slane %v2674_v43, 5 }
 0x935   :  { %v2696_v20 = vpop.permute.xlu1 %2695  ;;  %v2782_v49 = vpop.permute.xlu0 %2781 }
 0x936   :  { %v2701_v2 = vadd.f32 %v2696_v20, %v2686_v56  ;;  %v2786_v55 = vadd.f32 %v2782_v49, %v4801_v37  ;;  %v2845_v56 = vrot.slane %v2646_v42, 7  ;;  %v2852_v35 = vsel %vm1390_vm11, %v2851_v30, %v2850_v62  ;;  %v4991_v49 = vld [vmem:[#allocation27_spill] sm:$0xff] }
 0x938   :  { %v2856_v31 = vrot.slane %v2701_v2, 4  ;;  %v2874_v51 = vrot.slane %v2786_v55, 5  ;;  %v2846_v21 = vsel %vm1383_vm10, %v2845_v56, %v2645_v54  ;;  %v4992_v2 = vld [vmem:[#allocation30_spill] sm:$0xff] }
 0x939   :  { %v2726_v57 = vpop.permute.xlu1 %2725  ;;  %v2810_v34 = vpop.permute.xlu0 %2809  ;;  %v2889_v25 = vsel %vm1430_vm13, %v2846_v21, %v2852_v35 }
 0x93a   :  { %v2730_v14 = vadd.f32 %v2726_v57, %v2720_v47  ;;  %v2814_v4 = vadd.f32 %v2810_v34, %v2804_v0  ;;  %v2868_v47 = vrot.slane %v2758_v44, 7  ;;  %v2858_v0 = vsel %vm1397_vm12, %v2857_v6, %v2856_v31 }
 0x93b   :  { %v2890_v41 = vsel %vm1432_vm14, %v2889_v25, %v2858_v0 }
 0x93c   :  { %v2863_v46 = vrot.slane %v2730_v14, 1  ;;  %v2880_v23 = vrot.slane %v2814_v4, 3  ;;  %v2869_v50 = vsel %vm1383_vm10, %v2868_v47, %v2757_v11 }
 0x93d   :  { %v2780_v5 = vpop.permute.xlu1 %2779  ;;  %v2838_v26 = vpop.permute.xlu0 %2837 }
 0x93e   :  { %v2785_v61 = vadd.f32 %v2780_v5, %v2770_v63  ;;  %v2842_v22 = vadd.f32 %v2838_v26, %v4812_v13  ;;  %v2864_v63 = vsel %vm1404_vm15, %v2863_v46, %v2862_v8  ;;  %v3101_v13 = vld [vmem:[%s4896_s7 + $0x1] ss:$0 sm:$0xff]  ;;  %v3117_v26 = vld [vmem:[%s4898_s9] ss:$0 sm:$0xff] }
 0x93f   :  { %v2891_v12 = vsel %vm1434_vm6, %v2890_v41, %v2864_v63  ;;  %v2903_v60 = vmul.f32 %v3101_v13, %v4989_v27  ;;  %v2904_v1 = vmul.f32 %v3101_v13, %v4990_v40 }
 0x940   :  { %v2873_v58 = vrot.slane %v2785_v61, 6  ;;  %v2886_v17 = vrot.slane %v2842_v22, 1 }
 0x941   :  { %v2808_v48 = vpop.permute.xlu1 %2807  ;;  %v2905_v53 = vadd.f32 %v2903_v60, %v2891_v12  ;;  %v2926_v19 = vpop.permute.xlu0 %2925 }
 0x942   :  { %v2813_v29 = vadd.f32 %v2808_v48, %v2798_v16  ;;  %v2875_v18 = vsel %vm1390_vm11, %v2874_v51, %v2873_v58 }
 0x943   :  { %v2892_v45 = vsel %vm1430_vm13, %v2869_v50, %v2875_v18 }
 0x944   :  { %v2879_v37 = vrot.slane %v2813_v29, 4 }
 0x945   :  { %v2836_v39 = vpop.permute.xlu1 %2835 }
 0x946   :  { %v2841_v7 = vadd.f32 %v2836_v39, %v2826_v9  ;;  %v2881_v10 = vsel %vm1397_vm12, %v2880_v23, %v2879_v37 }
 0x947   :  { %v2893_v15 = vsel %vm1432_vm14, %v2892_v45, %v2881_v10 }
 0x948   :  { %v2885_v16 = vrot.slane %v2841_v7, 2 }
 0x949   :  { %v2924_v24 = vpop.permute.xlu1 %2923 }
 0x94a   :  { %v2887_v9 = vsel %vm1404_vm15, %v2886_v17, %v2885_v16  ;;  %v2929_v52 = vmul.f32 %v2924_v24, %v2905_v53 }
 0x94b   :  { %v2894_v36 = vsel %vm1434_vm6, %v2893_v15, %v2887_v9 }
 0x94c   :  { %v2906_v38 = vadd.f32 %v2904_v1, %v2894_v36 }
 0x94e   :  { %v2930_v32 = vmul.f32 %v2926_v19, %v2906_v38 }
 0x950   :  { %v2931_v33 = vpack.c.bf16 %v2930_v32, %v2929_v52 }
 0x952   :  { %3205 = vmatmul.mubr.msk.bf16.vlgmr.msra.gmra.mrb[8].mxu1 %vm275_vm5, %v2931_v33 }
 0xa25   :  { %v3002_v20 = vpop.f32.mrb[8].mxu1 }
 0xa26   :  { %v3003_v57 = vadd.f32 %v3002_v20, %v4991_v49  ;;  %v3206_v34 = vpop.f32.mrb[9].mxu1 }
 0xa27   :  { %v3005_v43 = vpop.f32.mrb[10].mxu1 }
 0xa28   :  { %v3009_v59 = vmul.f32 %v3003_v57, %v3003_v57  ;;  %v3006_v5 = vadd.f32 %v3005_v43, %v4992_v2  ;;  %v3207_v42 = vpop.f32.mrb[11].mxu1 }
 0xa2a   :  { %v3010_v14 = vmul.f32 %v3006_v5, %v3006_v5  ;;  %v3011_v61 = vsel %vm93_vm0, %v3009_v59, 0.0 }
 0xa2b   :  { %3012 = vadd.xlane.f32.xlu1 %v3011_v61 }
 0xa2c   :  { %v3014_v3 = vsel %vm93_vm0, %v3010_v14, 0.0 }
 0xa2d   :  { %3015 = vadd.xlane.f32.xlu0 %v3014_v3 }
 0xab8   :  { %v3013_v28 = vpop.xlane.xlu1 %3012 }
 0xab9   :  { %v3017_v44 = vmul.f32 0.03125, %v3013_v28 }
 0xaba   :  { %v3016_v30 = vpop.xlane.xlu0 %3015 }
 0xabb   :  { %v3019_v55 = vadd.f32 1e-05, %v3017_v44  ;;  %v3018_v62 = vmul.f32 0.03125, %v3016_v30 }
 0xabd   :  { %3361 = vrsqrt.f32 %v3019_v55  ;;  %v3020_v31 = vadd.f32 1e-05, %v3018_v62 }
 0xabf   :  { %3363 = vrsqrt.f32 %v3020_v31 }
 0xac7   :  { %v3362_v4 = vpop.eup %3361 }
 0xac8   :  { %v3023_v48 = vmul.f32 %v3362_v4, %v3003_v57 }
 0xac9   :  { %v3364_v56 = vpop.eup %3363 }
 0xaca   :  { %v3024_v46 = vmul.f32 %v3364_v56, %v3006_v5  ;;  %v3032_v58 = vmul.f32 %v3117_v26, %v3023_v48 }
 0xacc   :  { %v3033_v29 = vmul.f32 %v3117_v26, %v3024_v46  ;;  %3034 = vst.msk [vmem:[#allocation8] sm:$0xff] %vm93_vm0, %v3032_v58 }
 0xace   :  { %3035 = vst.msk [vmem:[#allocation8 + $0x8] sm:$0xff] %vm93_vm0, %v3033_v29 }
 0xacf   :  { %3444 = shalt.err (!%p3441_p0)
}
 0xad0   :  { %s3445_s25 = scalar_lea.hbm %s4899_s10, 256 }
 0xad1   :  { %p3446_p1 = scmp.ne.s32.totalorder %s4899_s10, %s3445_s25  ;;  %p3449_p2 = scmp.lt.u32.totalorder %s3445_s25, %s4899_s10 }
 0xad3   :  { %p3451_p3 = pnand %p3449_p2, %p3446_p1 }
 0xad5   :  { %3454 = shalt.err (!%p3451_p3)
}
 0xad6   :  { %3047 = dma.vmem_to_hbm [thread:$0]  %s3042_s22, 256, %s4899_s10, [#allocation4], %s3465_s2, %s3465_s2, %s3466_s14  }
 0xad7   :  { %3459 = dma.done.wait [#allocation4], 256  }
 0xad8   :  { %3460 = vsyncadd [#allocation4], 4294967040 }
 0xad9   :  { %3051 = vsyncpa [#allocation3], 1 }
 0xada   :  { %3052 = vsyncpa [#allocation6], 1 }
 0xadb   :  { %3053 = vsyncpa [#allocation4], 1 }

</bundles_post_ra>
